<compile_context>
chip_gen: v6e
topology: v6e:2x2x1
jax: 0.10.0
libtpu: 0.0.40
codegen_flags: <defaults>
</compile_context>

<pallas_src>
import functools

import jax
import jax.numpy as jnp
from jax.experimental import pallas as pl
from jax.experimental.pallas import tpu as pltpu


# ------------------------------ fused kernel --------------------------------

def _bottleneck_kernel(H, W, x_ref, w1_ref, b1_ref, w2_ref, b2_ref,
                       w3_ref, b3_ref, o_ref, p1_ref):
    # x_ref : (1, H*W, Cin)          one image as a token slab (NHWC flattened)
    # w1_ref: (Cin, Cmid)            conv1 1x1, BN1 scale pre-folded
    # w2_ref: (9, Cmid, Cmid)        conv2 3x3 taps (t = ky*3+kx), BN2 scale pre-folded
    # w3_ref: (Cmid, Cexp)           conv3 1x1, BN3 scale pre-folded
    # b*_ref: (1, C) float32         folded BN biases
    # o_ref : (1, H*W, Cexp)
    # p1_ref: ((H+2)*(W+2)+2, Cmid)  FLAT zero-padded conv1 output, +1 guard
    #                                element at each end for the shifted slabs
    Wp = W + 2
    Hw = H * Wp
    Cmid = w1_ref.shape[1]
    cd = p1_ref.dtype

    x2d = x_ref[0]                                            # (H*W, Cin); also the residual

    # ---- stage 1: conv1 (1x1) + bn1 + relu -> flat padded VMEM scratch -----
    y1 = jnp.dot(x2d, w1_ref[...], preferred_element_type=jnp.float32)
    y1 = jnp.maximum(y1 + b1_ref[...], 0.0).astype(cd)        # (H*W, Cmid)

    # Zero ONLY the 1-pixel border (the interior is fully overwritten below).
    z_cap = jnp.zeros((W + 4, Cmid), cd)
    p1_ref[0:W + 4, :] = z_cap                                 # guard + top row + row1 left col
    p1_ref[(H + 1) * Wp:(H + 1) * Wp + W + 4, :] = z_cap       # rowH right col + bottom row + guard
    z_pair = jnp.zeros((2, Cmid), cd)
    for r in range(1, H):                                      # (right col of row r, left col of row r+1)
        p1_ref[(r + 1) * Wp:(r + 1) * Wp + 2, :] = z_pair

    # Interior: padded row y+1, columns 1..W  (flat base offset = 1).
    y1_3d = y1.reshape(H, W, Cmid)
    for y in range(H):
        s = (y + 1) * Wp + 2
        p1_ref[s:s + W, :] = y1_3d[y]

    # ---- stage 2: conv2 (3x3, stride 1) as 9 shifted-slab matmuls ----------
    # "Wide token" trick: compute H*(W+2) output tokens; tap (ky,kx) is the
    # contiguous slice p1[ky*Wp+kx : +Hw] of the flat padded buffer.  The two
    # border columns per row are garbage and are dropped before stage 3.
    acc = None
    for ky in range(3):
        for kx in range(3):
            t = ky * 3 + kx
            off = ky * Wp + kx
            tap = p1_ref[off:off + Hw, :]                      # (H*(W+2), Cmid)
            d = jnp.dot(tap, w2_ref[t], preferred_element_type=jnp.float32)
            acc = d if acc is None else acc + d                # f32 accumulation (MRB on v7x)

    y2w = jnp.maximum(acc + b2_ref[...], 0.0).astype(cd)       # bn2 + relu (wide)
    y2 = y2w.reshape(H, Wp, Cmid)[:, 1:W + 1, :].reshape(H * W, Cmid)

    # ---- stage 3: conv3 (1x1) + bn3 + residual add + relu ------------------
    y3 = jnp.dot(y2, w3_ref[...], preferred_element_type=jnp.float32) + b3_ref[...]
    o_ref[0] = jnp.maximum(x2d + y3.astype(o_ref.dtype), 0.0)


# ------------------------------ helpers --------------------------------------

def _vmem_limit_bytes():
    # ~80% of physical VMEM: ≈51 MiB on v7x (64 MiB phys), capped at 96 MiB on
    # v5e/v6e (128 MiB phys); safe fallback if the query is unavailable.
    try:
        cap = pltpu.get_tpu_info().vmem_capacity_bytes
        return int(min(0.8 * cap, 96 * 1024 * 1024))
    except Exception:
        return 64 * 1024 * 1024


# ------------------------------ public wrapper -------------------------------

def bottleneck_forward_nhwc(x_nhwc, params, compute_dtype=jnp.bfloat16):
    """Fused Bottleneck forward on NHWC input (preferred, no transposes)."""
    cd = jnp.dtype(compute_dtype)
    N, H, W, Cin = x_nhwc.shape
    Cmid, Cexp = params["w3"].shape
    assert Cin == Cexp, "downsample=None requires inplanes == planes * expansion"

    # Fold BN scales into the conv weights offline (f32), keep only biases.
    s1 = params["s1"].reshape(1, -1).astype(jnp.float32)
    s2 = params["s2"].reshape(1, -1).astype(jnp.float32)
    s3 = params["s3"].reshape(1, -1).astype(jnp.float32)
    w1 = (params["w1"].astype(jnp.float32) * s1).astype(cd)                 # (Cin, Cmid)
    w2 = (params["w2"].astype(jnp.float32) * s2.reshape(1, 1, 1, -1)
          ).reshape(9, Cmid, Cmid).astype(cd)                               # (9, Cmid, Cmid)
    w3 = (params["w3"].astype(jnp.float32) * s3).astype(cd)                 # (Cmid, Cexp)
    b1 = params["b1"].reshape(1, -1).astype(jnp.float32)
    b2 = params["b2"].reshape(1, -1).astype(jnp.float32)
    b3 = params["b3"].reshape(1, -1).astype(jnp.float32)

    x_tok = x_nhwc.astype(cd).reshape(N, H * W, Cin)                        # free view
    L = (H + 2) * (W + 2) + 2                                               # flat padded + guards

    out_tok = pl.pallas_call(
        functools.partial(_bottleneck_kernel, H, W),
        out_shape=jax.ShapeDtypeStruct((N, H * W, Cexp), cd),
        grid=(N,),
        in_specs=[
            pl.BlockSpec((1, H * W, Cin), lambda n: (n, 0, 0)),
            pl.BlockSpec((Cin, Cmid), lambda n: (0, 0)),
            pl.BlockSpec((1, Cmid), lambda n: (0, 0)),
            pl.BlockSpec((9, Cmid, Cmid), lambda n: (0, 0, 0)),
            pl.BlockSpec((1, Cmid), lambda n: (0, 0)),
            pl.BlockSpec((Cmid, Cexp), lambda n: (0, 0)),
            pl.BlockSpec((1, Cexp), lambda n: (0, 0)),
        ],
        out_specs=pl.BlockSpec((1, H * W, Cexp), lambda n: (n, 0, 0)),
        scratch_shapes=[pltpu.VMEM((L, Cmid), cd)],   # flat zero-padded conv1 output
        compiler_params=pltpu.CompilerParams(
            dimension_semantics=("parallel",),        # shards over v7x's 2 TensorCores
            vmem_limit_bytes=_vmem_limit_bytes(),
        ),
    )(x_tok, w1, b1, w2, b2, w3, b3)

    return out_tok.reshape(N, H, W, Cexp)


def bottleneck_forward(x_nchw, params, compute_dtype=jnp.bfloat16):
    """NCHW entry point matching the PyTorch module's layout."""
    # TODO(synk): run the surrounding model NHWC and call bottleneck_forward_nhwc
    #             directly to drop this transpose pair (extra HBM pass each way).
    x = jnp.transpose(x_nchw, (0, 2, 3, 1))
    out = bottleneck_forward_nhwc(x, params, compute_dtype)
    return jnp.transpose(out, (0, 3, 1, 2))


bottleneck = jax.jit(bottleneck_forward, static_argnames=("compute_dtype",))


# ------------------------------- BN folding ----------------------------------

def fold_bn(gamma, beta, mean, var, eps=1e-5):
    scale = gamma / jnp.sqrt(var + eps)
    bias = beta - mean * scale
    return scale.reshape(1, -1), bias.reshape(1, -1)


# ------------------------------ pure-JAX reference ---------------------------

def _ref_forward(x_nchw, p, compute_dtype=jnp.float32):
    cd = compute_dtype
    x = jnp.transpose(x_nchw, (0, 2, 3, 1)).astype(cd)
    dn = ("NHWC", "HWIO", "NHWC")
    prec = jax.lax.Precision.HIGHEST

    def c1x1(v, w):
        return jax.lax.conv_general_dilated(
            v, w.reshape(1, 1, *w.shape).astype(cd), (1, 1), "VALID",
            dimension_numbers=dn, precision=prec,
            preferred_element_type=jnp.float32)

    def c3x3(v, w):
        return jax.lax.conv_general_dilated(
            v, w.astype(cd), (1, 1), "SAME",
            dimension_numbers=dn, precision=prec,
            preferred_element_type=jnp.float32)

    o = jnp.maximum(c1x1(x, p["w1"]) * p["s1"] + p["b1"], 0.0).astype(cd)
    o = jnp.maximum(c3x3(o, p["w2"]) * p["s2"] + p["b2"], 0.0).astype(cd)
    o = c1x1(o, p["w3"]) * p["s3"] + p["b3"]
    o = jnp.maximum(x + o.astype(cd), 0.0)
    return jnp.transpose(o, (0, 3, 1, 2))


# ---------------------------------- main --------------------------------------

if __name__ == "__main__":
    N, planes, H, W = 2, 4, 16, 16
    expansion = 4
    inplanes = planes * expansion    # 16 -> identity add is valid (downsample=None)

    key = jax.random.PRNGKey(0)
    ks = jax.random.split(key, 16)
    x = jax.random.normal(ks[0], (N, inplanes, H, W), jnp.float32)

    # conv weights ((Cin, Cout) for 1x1, HWIO for 3x3); bias=False everywhere
    w1 = jax.random.normal(ks[1], (inplanes, planes), jnp.float32) * 0.1
    w2 = jax.random.normal(ks[2], (3, 3, planes, planes), jnp.float32) * 0.1
    w3 = jax.random.normal(ks[3], (planes, planes * expansion), jnp.float32) * 0.1

    def bn_params(kg, kb, km, kv, c):
        gamma = 1.0 + 0.1 * jax.random.normal(kg, (c,), jnp.float32)
        beta = 0.1 * jax.random.normal(kb, (c,), jnp.float32)
        mean = 0.1 * jax.random.normal(km, (c,), jnp.float32)
        var = jnp.abs(jax.random.normal(kv, (c,), jnp.float32)) + 0.5
        return fold_bn(gamma, beta, mean, var)

    s1, b1 = bn_params(ks[4], ks[5], ks[6], ks[7], planes)
    s2, b2 = bn_params(ks[8], ks[9], ks[10], ks[11], planes)
    s3, b3 = bn_params(ks[12], ks[13], ks[14], ks[15], planes * expansion)

    params = dict(w1=w1, w2=w2, w3=w3, s1=s1, b1=b1, s2=s2, b2=b2, s3=s3, b3=b3)

    # float32 path vs. HIGHEST-precision XLA reference.
    out = jax.block_until_ready(bottleneck(x, params, compute_dtype=jnp.float32))
    ref = jax.block_until_ready(_ref_forward(x, params, jnp.float32))
    assert out.shape == (N, planes * expansion, H, W)
    assert jnp.allclose(out, ref, atol=5e-3, rtol=5e-3), "f32 mismatch"

    # bfloat16 MXU path (default), compared apples-to-apples against a bf16 reference.
    out_bf = jax.block_until_ready(bottleneck(x, params))   # default compute_dtype = bf16
    ref_bf = jax.block_until_ready(_ref_forward(x, params, jnp.bfloat16))
    assert out_bf.dtype == jnp.bfloat16
    assert jnp.allclose(out_bf.astype(jnp.float32), ref_bf.astype(jnp.float32),
                        atol=3e-2, rtol=3e-2), "bf16 mismatch"

    print("KERNEL_OK")
</pallas_src>

<mosaic_0001>
module attributes {stable_mosaic.version = 11 : i64} {
  func.func @_bottleneck_kernel(%arg0: i32, %arg1: memref<1x256x16xf32, #tpu.memory_space<vmem>>, %arg2: memref<16x4xf32, #tpu.memory_space<vmem>>, %arg3: memref<1x4xf32, #tpu.memory_space<vmem>>, %arg4: memref<9x4x4xf32, #tpu.memory_space<vmem>>, %arg5: memref<1x4xf32, #tpu.memory_space<vmem>>, %arg6: memref<4x16xf32, #tpu.memory_space<vmem>>, %arg7: memref<1x16xf32, #tpu.memory_space<vmem>>, %arg8: memref<1x256x16xf32, #tpu.memory_space<vmem>>, %arg9: memref<326x4xf32, #tpu.memory_space<vmem>>) attributes {dimension_semantics = [#tpu.dimension_semantics<parallel>], iteration_bounds = array<i64: 2>, scalar_prefetch = 0 : i64, scratch_operands = 1 : i64, tpu.core_type = #tpu.core_type<tc>, window_params = [{transform_indices = @transform_0, window_bounds = array<i64: 1, 256, 16>}, {pipeline_mode = #tpu.pipeline_mode<synchronous>, transform_indices = @transform_1, window_bounds = array<i64: 16, 4>}, {pipeline_mode = #tpu.pipeline_mode<synchronous>, transform_indices = @transform_2, window_bounds = array<i64: 1, 4>}, {pipeline_mode = #tpu.pipeline_mode<synchronous>, transform_indices = @transform_3, window_bounds = array<i64: 9, 4, 4>}, {pipeline_mode = #tpu.pipeline_mode<synchronous>, transform_indices = @transform_4, window_bounds = array<i64: 1, 4>}, {pipeline_mode = #tpu.pipeline_mode<synchronous>, transform_indices = @transform_5, window_bounds = array<i64: 4, 16>}, {pipeline_mode = #tpu.pipeline_mode<synchronous>, transform_indices = @transform_6, window_bounds = array<i64: 1, 16>}, {transform_indices = @transform_7, window_bounds = array<i64: 1, 256, 16>}]} {
    %c0 = arith.constant 0 : index
    %c0_0 = arith.constant 0 : index
    %c0_1 = arith.constant 0 : index
    %0 = vector.load %arg1[%c0, %c0_0, %c0_1] : memref<1x256x16xf32, #tpu.memory_space<vmem>>, vector<1x256x16xf32>
    %1 = vector.shape_cast %0 : vector<1x256x16xf32> to vector<256x16xf32>
    %c0_2 = arith.constant 0 : index
    %c0_3 = arith.constant 0 : index
    %2 = vector.load %arg2[%c0_2, %c0_3] : memref<16x4xf32, #tpu.memory_space<vmem>>, vector<16x4xf32>
    %cst = arith.constant dense<0.000000e+00> : vector<256x4xf32>
    %3 = tpu.matmul %1, %2, %cst {dimension_numbers = #tpu.dot_dimension_numbers<[1], [0], [0], [1], [0, 0, 1, 1], [], []>} : vector<256x16xf32>, vector<16x4xf32>, vector<256x4xf32> -> vector<256x4xf32>
    %c0_4 = arith.constant 0 : index
    %c0_5 = arith.constant 0 : index
    %4 = vector.load %arg3[%c0_4, %c0_5] : memref<1x4xf32, #tpu.memory_space<vmem>>, vector<1x4xf32>
    %5 = vector.broadcast %4 : vector<1x4xf32> to vector<256x4xf32>
    %6 = arith.addf %3, %5 : vector<256x4xf32>
    %cst_6 = arith.constant 0.000000e+00 : f32
    %7 = vector.broadcast %cst_6 : f32 to vector<256x4xf32>
    %8 = arith.maximumf %6, %7 : vector<256x4xf32>
    %cst_7 = arith.constant 0.000000e+00 : f32
    %9 = vector.broadcast %cst_7 : f32 to vector<20x4xf32>
    %c0_8 = arith.constant 0 : index
    %c0_9 = arith.constant 0 : index
    %10 = vector.load %arg9[%c0_8, %c0_9] : memref<326x4xf32, #tpu.memory_space<vmem>>, vector<20x4xf32>
    tpu.vector_store %arg9[%c0_8, %c0_9], %9 {strides = array<i32>} : memref<326x4xf32, #tpu.memory_space<vmem>>, vector<20x4xf32>,
    %c306 = arith.constant 306 : index
    %c0_10 = arith.constant 0 : index
    %11 = vector.load %arg9[%c306, %c0_10] : memref<326x4xf32, #tpu.memory_space<vmem>>, vector<20x4xf32>
    tpu.vector_store %arg9[%c306, %c0_10], %9 {strides = array<i32>} : memref<326x4xf32, #tpu.memory_space<vmem>>, vector<20x4xf32>,
    %cst_11 = arith.constant 0.000000e+00 : f32
    %12 = vector.broadcast %cst_11 : f32 to vector<2x4xf32>
    %c36 = arith.constant 36 : index
    %c0_12 = arith.constant 0 : index
    %13 = vector.load %arg9[%c36, %c0_12] : memref<326x4xf32, #tpu.memory_space<vmem>>, vector<2x4xf32>
    tpu.vector_store %arg9[%c36, %c0_12], %12 {strides = array<i32>} : memref<326x4xf32, #tpu.memory_space<vmem>>, vector<2x4xf32>,
    %c54 = arith.constant 54 : index
    %c0_13 = arith.constant 0 : index
    %14 = vector.load %arg9[%c54, %c0_13] : memref<326x4xf32, #tpu.memory_space<vmem>>, vector<2x4xf32>
    tpu.vector_store %arg9[%c54, %c0_13], %12 {strides = array<i32>} : memref<326x4xf32, #tpu.memory_space<vmem>>, vector<2x4xf32>,
    %c72 = arith.constant 72 : index
    %c0_14 = arith.constant 0 : index
    %15 = vector.load %arg9[%c72, %c0_14] : memref<326x4xf32, #tpu.memory_space<vmem>>, vector<2x4xf32>
    tpu.vector_store %arg9[%c72, %c0_14], %12 {strides = array<i32>} : memref<326x4xf32, #tpu.memory_space<vmem>>, vector<2x4xf32>,
    %c90 = arith.constant 90 : index
    %c0_15 = arith.constant 0 : index
    %16 = vector.load %arg9[%c90, %c0_15] : memref<326x4xf32, #tpu.memory_space<vmem>>, vector<2x4xf32>
    tpu.vector_store %arg9[%c90, %c0_15], %12 {strides = array<i32>} : memref<326x4xf32, #tpu.memory_space<vmem>>, vector<2x4xf32>,
    %c108 = arith.constant 108 : index
    %c0_16 = arith.constant 0 : index
    %17 = vector.load %arg9[%c108, %c0_16] : memref<326x4xf32, #tpu.memory_space<vmem>>, vector<2x4xf32>
    tpu.vector_store %arg9[%c108, %c0_16], %12 {strides = array<i32>} : memref<326x4xf32, #tpu.memory_space<vmem>>, vector<2x4xf32>,
    %c126 = arith.constant 126 : index
    %c0_17 = arith.constant 0 : index
    %18 = vector.load %arg9[%c126, %c0_17] : memref<326x4xf32, #tpu.memory_space<vmem>>, vector<2x4xf32>
    tpu.vector_store %arg9[%c126, %c0_17], %12 {strides = array<i32>} : memref<326x4xf32, #tpu.memory_space<vmem>>, vector<2x4xf32>,
    %c144 = arith.constant 144 : index
    %c0_18 = arith.constant 0 : index
    %19 = vector.load %arg9[%c144, %c0_18] : memref<326x4xf32, #tpu.memory_space<vmem>>, vector<2x4xf32>
    tpu.vector_store %arg9[%c144, %c0_18], %12 {strides = array<i32>} : memref<326x4xf32, #tpu.memory_space<vmem>>, vector<2x4xf32>,
    %c162 = arith.constant 162 : index
    %c0_19 = arith.constant 0 : index
    %20 = vector.load %arg9[%c162, %c0_19] : memref<326x4xf32, #tpu.memory_space<vmem>>, vector<2x4xf32>
    tpu.vector_store %arg9[%c162, %c0_19], %12 {strides = array<i32>} : memref<326x4xf32, #tpu.memory_space<vmem>>, vector<2x4xf32>,
    %c180 = arith.constant 180 : index
    %c0_20 = arith.constant 0 : index
    %21 = vector.load %arg9[%c180, %c0_20] : memref<326x4xf32, #tpu.memory_space<vmem>>, vector<2x4xf32>
    tpu.vector_store %arg9[%c180, %c0_20], %12 {strides = array<i32>} : memref<326x4xf32, #tpu.memory_space<vmem>>, vector<2x4xf32>,
    %c198 = arith.constant 198 : index
    %c0_21 = arith.constant 0 : index
    %22 = vector.load %arg9[%c198, %c0_21] : memref<326x4xf32, #tpu.memory_space<vmem>>, vector<2x4xf32>
    tpu.vector_store %arg9[%c198, %c0_21], %12 {strides = array<i32>} : memref<326x4xf32, #tpu.memory_space<vmem>>, vector<2x4xf32>,
    %c216 = arith.constant 216 : index
    %c0_22 = arith.constant 0 : index
    %23 = vector.load %arg9[%c216, %c0_22] : memref<326x4xf32, #tpu.memory_space<vmem>>, vector<2x4xf32>
    tpu.vector_store %arg9[%c216, %c0_22], %12 {strides = array<i32>} : memref<326x4xf32, #tpu.memory_space<vmem>>, vector<2x4xf32>,
    %c234 = arith.constant 234 : index
    %c0_23 = arith.constant 0 : index
    %24 = vector.load %arg9[%c234, %c0_23] : memref<326x4xf32, #tpu.memory_space<vmem>>, vector<2x4xf32>
    tpu.vector_store %arg9[%c234, %c0_23], %12 {strides = array<i32>} : memref<326x4xf32, #tpu.memory_space<vmem>>, vector<2x4xf32>,
    %c252 = arith.constant 252 : index
    %c0_24 = arith.constant 0 : index
    %25 = vector.load %arg9[%c252, %c0_24] : memref<326x4xf32, #tpu.memory_space<vmem>>, vector<2x4xf32>
    tpu.vector_store %arg9[%c252, %c0_24], %12 {strides = array<i32>} : memref<326x4xf32, #tpu.memory_space<vmem>>, vector<2x4xf32>,
    %c270 = arith.constant 270 : index
    %c0_25 = arith.constant 0 : index
    %26 = vector.load %arg9[%c270, %c0_25] : memref<326x4xf32, #tpu.memory_space<vmem>>, vector<2x4xf32>
    tpu.vector_store %arg9[%c270, %c0_25], %12 {strides = array<i32>} : memref<326x4xf32, #tpu.memory_space<vmem>>, vector<2x4xf32>,
    %c288 = arith.constant 288 : index
    %c0_26 = arith.constant 0 : index
    %27 = vector.load %arg9[%c288, %c0_26] : memref<326x4xf32, #tpu.memory_space<vmem>>, vector<2x4xf32>
    tpu.vector_store %arg9[%c288, %c0_26], %12 {strides = array<i32>} : memref<326x4xf32, #tpu.memory_space<vmem>>, vector<2x4xf32>,
    %28 = vector.shape_cast %8 : vector<256x4xf32> to vector<16x16x4xf32>
    %29 = vector.extract_strided_slice %28 {offsets = [0, 0, 0], sizes = [1, 16, 4], strides = [1, 1, 1]} : vector<16x16x4xf32> to vector<1x16x4xf32>
    %30 = vector.shape_cast %29 : vector<1x16x4xf32> to vector<16x4xf32>
    %c20 = arith.constant 20 : index
    %c0_27 = arith.constant 0 : index
    %31 = vector.load %arg9[%c20, %c0_27] : memref<326x4xf32, #tpu.memory_space<vmem>>, vector<16x4xf32>
    tpu.vector_store %arg9[%c20, %c0_27], %30 {strides = array<i32>} : memref<326x4xf32, #tpu.memory_space<vmem>>, vector<16x4xf32>,
    %32 = vector.extract_strided_slice %28 {offsets = [1, 0, 0], sizes = [1, 16, 4], strides = [1, 1, 1]} : vector<16x16x4xf32> to vector<1x16x4xf32>
    %33 = vector.shape_cast %32 : vector<1x16x4xf32> to vector<16x4xf32>
    %c38 = arith.constant 38 : index
    %c0_28 = arith.constant 0 : index
    %34 = vector.load %arg9[%c38, %c0_28] : memref<326x4xf32, #tpu.memory_space<vmem>>, vector<16x4xf32>
    tpu.vector_store %arg9[%c38, %c0_28], %33 {strides = array<i32>} : memref<326x4xf32, #tpu.memory_space<vmem>>, vector<16x4xf32>,
    %35 = vector.extract_strided_slice %28 {offsets = [2, 0, 0], sizes = [1, 16, 4], strides = [1, 1, 1]} : vector<16x16x4xf32> to vector<1x16x4xf32>
    %36 = vector.shape_cast %35 : vector<1x16x4xf32> to vector<16x4xf32>
    %c56 = arith.constant 56 : index
    %c0_29 = arith.constant 0 : index
    %37 = vector.load %arg9[%c56, %c0_29] : memref<326x4xf32, #tpu.memory_space<vmem>>, vector<16x4xf32>
    tpu.vector_store %arg9[%c56, %c0_29], %36 {strides = array<i32>} : memref<326x4xf32, #tpu.memory_space<vmem>>, vector<16x4xf32>,
    %38 = vector.extract_strided_slice %28 {offsets = [3, 0, 0], sizes = [1, 16, 4], strides = [1, 1, 1]} : vector<16x16x4xf32> to vector<1x16x4xf32>
    %39 = vector.shape_cast %38 : vector<1x16x4xf32> to vector<16x4xf32>
    %c74 = arith.constant 74 : index
    %c0_30 = arith.constant 0 : index
    %40 = vector.load %arg9[%c74, %c0_30] : memref<326x4xf32, #tpu.memory_space<vmem>>, vector<16x4xf32>
    tpu.vector_store %arg9[%c74, %c0_30], %39 {strides = array<i32>} : memref<326x4xf32, #tpu.memory_space<vmem>>, vector<16x4xf32>,
    %41 = vector.extract_strided_slice %28 {offsets = [4, 0, 0], sizes = [1, 16, 4], strides = [1, 1, 1]} : vector<16x16x4xf32> to vector<1x16x4xf32>
    %42 = vector.shape_cast %41 : vector<1x16x4xf32> to vector<16x4xf32>
    %c92 = arith.constant 92 : index
    %c0_31 = arith.constant 0 : index
    %43 = vector.load %arg9[%c92, %c0_31] : memref<326x4xf32, #tpu.memory_space<vmem>>, vector<16x4xf32>
    tpu.vector_store %arg9[%c92, %c0_31], %42 {strides = array<i32>} : memref<326x4xf32, #tpu.memory_space<vmem>>, vector<16x4xf32>,
    %44 = vector.extract_strided_slice %28 {offsets = [5, 0, 0], sizes = [1, 16, 4], strides = [1, 1, 1]} : vector<16x16x4xf32> to vector<1x16x4xf32>
    %45 = vector.shape_cast %44 : vector<1x16x4xf32> to vector<16x4xf32>
    %c110 = arith.constant 110 : index
    %c0_32 = arith.constant 0 : index
    %46 = vector.load %arg9[%c110, %c0_32] : memref<326x4xf32, #tpu.memory_space<vmem>>, vector<16x4xf32>
    tpu.vector_store %arg9[%c110, %c0_32], %45 {strides = array<i32>} : memref<326x4xf32, #tpu.memory_space<vmem>>, vector<16x4xf32>,
    %47 = vector.extract_strided_slice %28 {offsets = [6, 0, 0], sizes = [1, 16, 4], strides = [1, 1, 1]} : vector<16x16x4xf32> to vector<1x16x4xf32>
    %48 = vector.shape_cast %47 : vector<1x16x4xf32> to vector<16x4xf32>
    %c128 = arith.constant 128 : index
    %c0_33 = arith.constant 0 : index
    %49 = vector.load %arg9[%c128, %c0_33] : memref<326x4xf32, #tpu.memory_space<vmem>>, vector<16x4xf32>
    tpu.vector_store %arg9[%c128, %c0_33], %48 {strides = array<i32>} : memref<326x4xf32, #tpu.memory_space<vmem>>, vector<16x4xf32>,
    %50 = vector.extract_strided_slice %28 {offsets = [7, 0, 0], sizes = [1, 16, 4], strides = [1, 1, 1]} : vector<16x16x4xf32> to vector<1x16x4xf32>
    %51 = vector.shape_cast %50 : vector<1x16x4xf32> to vector<16x4xf32>
    %c146 = arith.constant 146 : index
    %c0_34 = arith.constant 0 : index
    %52 = vector.load %arg9[%c146, %c0_34] : memref<326x4xf32, #tpu.memory_space<vmem>>, vector<16x4xf32>
    tpu.vector_store %arg9[%c146, %c0_34], %51 {strides = array<i32>} : memref<326x4xf32, #tpu.memory_space<vmem>>, vector<16x4xf32>,
    %53 = vector.extract_strided_slice %28 {offsets = [8, 0, 0], sizes = [1, 16, 4], strides = [1, 1, 1]} : vector<16x16x4xf32> to vector<1x16x4xf32>
    %54 = vector.shape_cast %53 : vector<1x16x4xf32> to vector<16x4xf32>
    %c164 = arith.constant 164 : index
    %c0_35 = arith.constant 0 : index
    %55 = vector.load %arg9[%c164, %c0_35] : memref<326x4xf32, #tpu.memory_space<vmem>>, vector<16x4xf32>
    tpu.vector_store %arg9[%c164, %c0_35], %54 {strides = array<i32>} : memref<326x4xf32, #tpu.memory_space<vmem>>, vector<16x4xf32>,
    %56 = vector.extract_strided_slice %28 {offsets = [9, 0, 0], sizes = [1, 16, 4], strides = [1, 1, 1]} : vector<16x16x4xf32> to vector<1x16x4xf32>
    %57 = vector.shape_cast %56 : vector<1x16x4xf32> to vector<16x4xf32>
    %c182 = arith.constant 182 : index
    %c0_36 = arith.constant 0 : index
    %58 = vector.load %arg9[%c182, %c0_36] : memref<326x4xf32, #tpu.memory_space<vmem>>, vector<16x4xf32>
    tpu.vector_store %arg9[%c182, %c0_36], %57 {strides = array<i32>} : memref<326x4xf32, #tpu.memory_space<vmem>>, vector<16x4xf32>,
    %59 = vector.extract_strided_slice %28 {offsets = [10, 0, 0], sizes = [1, 16, 4], strides = [1, 1, 1]} : vector<16x16x4xf32> to vector<1x16x4xf32>
    %60 = vector.shape_cast %59 : vector<1x16x4xf32> to vector<16x4xf32>
    %c200 = arith.constant 200 : index
    %c0_37 = arith.constant 0 : index
    %61 = vector.load %arg9[%c200, %c0_37] : memref<326x4xf32, #tpu.memory_space<vmem>>, vector<16x4xf32>
    tpu.vector_store %arg9[%c200, %c0_37], %60 {strides = array<i32>} : memref<326x4xf32, #tpu.memory_space<vmem>>, vector<16x4xf32>,
    %62 = vector.extract_strided_slice %28 {offsets = [11, 0, 0], sizes = [1, 16, 4], strides = [1, 1, 1]} : vector<16x16x4xf32> to vector<1x16x4xf32>
    %63 = vector.shape_cast %62 : vector<1x16x4xf32> to vector<16x4xf32>
    %c218 = arith.constant 218 : index
    %c0_38 = arith.constant 0 : index
    %64 = vector.load %arg9[%c218, %c0_38] : memref<326x4xf32, #tpu.memory_space<vmem>>, vector<16x4xf32>
    tpu.vector_store %arg9[%c218, %c0_38], %63 {strides = array<i32>} : memref<326x4xf32, #tpu.memory_space<vmem>>, vector<16x4xf32>,
    %65 = vector.extract_strided_slice %28 {offsets = [12, 0, 0], sizes = [1, 16, 4], strides = [1, 1, 1]} : vector<16x16x4xf32> to vector<1x16x4xf32>
    %66 = vector.shape_cast %65 : vector<1x16x4xf32> to vector<16x4xf32>
    %c236 = arith.constant 236 : index
    %c0_39 = arith.constant 0 : index
    %67 = vector.load %arg9[%c236, %c0_39] : memref<326x4xf32, #tpu.memory_space<vmem>>, vector<16x4xf32>
    tpu.vector_store %arg9[%c236, %c0_39], %66 {strides = array<i32>} : memref<326x4xf32, #tpu.memory_space<vmem>>, vector<16x4xf32>,
    %68 = vector.extract_strided_slice %28 {offsets = [13, 0, 0], sizes = [1, 16, 4], strides = [1, 1, 1]} : vector<16x16x4xf32> to vector<1x16x4xf32>
    %69 = vector.shape_cast %68 : vector<1x16x4xf32> to vector<16x4xf32>
    %c254 = arith.constant 254 : index
    %c0_40 = arith.constant 0 : index
    %70 = vector.load %arg9[%c254, %c0_40] : memref<326x4xf32, #tpu.memory_space<vmem>>, vector<16x4xf32>
    tpu.vector_store %arg9[%c254, %c0_40], %69 {strides = array<i32>} : memref<326x4xf32, #tpu.memory_space<vmem>>, vector<16x4xf32>,
    %71 = vector.extract_strided_slice %28 {offsets = [14, 0, 0], sizes = [1, 16, 4], strides = [1, 1, 1]} : vector<16x16x4xf32> to vector<1x16x4xf32>
    %72 = vector.shape_cast %71 : vector<1x16x4xf32> to vector<16x4xf32>
    %c272 = arith.constant 272 : index
    %c0_41 = arith.constant 0 : index
    %73 = vector.load %arg9[%c272, %c0_41] : memref<326x4xf32, #tpu.memory_space<vmem>>, vector<16x4xf32>
    tpu.vector_store %arg9[%c272, %c0_41], %72 {strides = array<i32>} : memref<326x4xf32, #tpu.memory_space<vmem>>, vector<16x4xf32>,
    %74 = vector.extract_strided_slice %28 {offsets = [15, 0, 0], sizes = [1, 16, 4], strides = [1, 1, 1]} : vector<16x16x4xf32> to vector<1x16x4xf32>
    %75 = vector.shape_cast %74 : vector<1x16x4xf32> to vector<16x4xf32>
    %c290 = arith.constant 290 : index
    %c0_42 = arith.constant 0 : index
    %76 = vector.load %arg9[%c290, %c0_42] : memref<326x4xf32, #tpu.memory_space<vmem>>, vector<16x4xf32>
    tpu.vector_store %arg9[%c290, %c0_42], %75 {strides = array<i32>} : memref<326x4xf32, #tpu.memory_space<vmem>>, vector<16x4xf32>,
    %c0_43 = arith.constant 0 : index
    %c0_44 = arith.constant 0 : index
    %77 = vector.load %arg9[%c0_43, %c0_44] : memref<326x4xf32, #tpu.memory_space<vmem>>, vector<288x4xf32>
    %c0_45 = arith.constant 0 : index
    %c0_46 = arith.constant 0 : index
    %c0_47 = arith.constant 0 : index
    %78 = vector.load %arg4[%c0_45, %c0_46, %c0_47] : memref<9x4x4xf32, #tpu.memory_space<vmem>>, vector<1x4x4xf32>
    %79 = vector.shape_cast %78 : vector<1x4x4xf32> to vector<4x4xf32>
    %cst_48 = arith.constant dense<0.000000e+00> : vector<288x4xf32>
    %80 = tpu.matmul %77, %79, %cst_48 {dimension_numbers = #tpu.dot_dimension_numbers<[1], [0], [0], [1], [0, 0, 1, 1], [], []>} : vector<288x4xf32>, vector<4x4xf32>, vector<288x4xf32> -> vector<288x4xf32>
    %c1 = arith.constant 1 : index
    %c0_49 = arith.constant 0 : index
    %81 = vector.load %arg9[%c1, %c0_49] : memref<326x4xf32, #tpu.memory_space<vmem>>, vector<288x4xf32>
    %c1_50 = arith.constant 1 : index
    %c0_51 = arith.constant 0 : index
    %c0_52 = arith.constant 0 : index
    %82 = vector.load %arg4[%c1_50, %c0_51, %c0_52] : memref<9x4x4xf32, #tpu.memory_space<vmem>>, vector<1x4x4xf32>
    %83 = vector.shape_cast %82 : vector<1x4x4xf32> to vector<4x4xf32>
    %cst_53 = arith.constant dense<0.000000e+00> : vector<288x4xf32>
    %84 = tpu.matmul %81, %83, %cst_53 {dimension_numbers = #tpu.dot_dimension_numbers<[1], [0], [0], [1], [0, 0, 1, 1], [], []>} : vector<288x4xf32>, vector<4x4xf32>, vector<288x4xf32> -> vector<288x4xf32>
    %85 = arith.addf %80, %84 : vector<288x4xf32>
    %c2 = arith.constant 2 : index
    %c0_54 = arith.constant 0 : index
    %86 = vector.load %arg9[%c2, %c0_54] : memref<326x4xf32, #tpu.memory_space<vmem>>, vector<288x4xf32>
    %c2_55 = arith.constant 2 : index
    %c0_56 = arith.constant 0 : index
    %c0_57 = arith.constant 0 : index
    %87 = vector.load %arg4[%c2_55, %c0_56, %c0_57] : memref<9x4x4xf32, #tpu.memory_space<vmem>>, vector<1x4x4xf32>
    %88 = vector.shape_cast %87 : vector<1x4x4xf32> to vector<4x4xf32>
    %cst_58 = arith.constant dense<0.000000e+00> : vector<288x4xf32>
    %89 = tpu.matmul %86, %88, %cst_58 {dimension_numbers = #tpu.dot_dimension_numbers<[1], [0], [0], [1], [0, 0, 1, 1], [], []>} : vector<288x4xf32>, vector<4x4xf32>, vector<288x4xf32> -> vector<288x4xf32>
    %90 = arith.addf %85, %89 : vector<288x4xf32>
    %c18 = arith.constant 18 : index
    %c0_59 = arith.constant 0 : index
    %91 = vector.load %arg9[%c18, %c0_59] : memref<326x4xf32, #tpu.memory_space<vmem>>, vector<288x4xf32>
    %c3 = arith.constant 3 : index
    %c0_60 = arith.constant 0 : index
    %c0_61 = arith.constant 0 : index
    %92 = vector.load %arg4[%c3, %c0_60, %c0_61] : memref<9x4x4xf32, #tpu.memory_space<vmem>>, vector<1x4x4xf32>
    %93 = vector.shape_cast %92 : vector<1x4x4xf32> to vector<4x4xf32>
    %cst_62 = arith.constant dense<0.000000e+00> : vector<288x4xf32>
    %94 = tpu.matmul %91, %93, %cst_62 {dimension_numbers = #tpu.dot_dimension_numbers<[1], [0], [0], [1], [0, 0, 1, 1], [], []>} : vector<288x4xf32>, vector<4x4xf32>, vector<288x4xf32> -> vector<288x4xf32>
    %95 = arith.addf %90, %94 : vector<288x4xf32>
    %c19 = arith.constant 19 : index
    %c0_63 = arith.constant 0 : index
    %96 = vector.load %arg9[%c19, %c0_63] : memref<326x4xf32, #tpu.memory_space<vmem>>, vector<288x4xf32>
    %c4 = arith.constant 4 : index
    %c0_64 = arith.constant 0 : index
    %c0_65 = arith.constant 0 : index
    %97 = vector.load %arg4[%c4, %c0_64, %c0_65] : memref<9x4x4xf32, #tpu.memory_space<vmem>>, vector<1x4x4xf32>
    %98 = vector.shape_cast %97 : vector<1x4x4xf32> to vector<4x4xf32>
    %cst_66 = arith.constant dense<0.000000e+00> : vector<288x4xf32>
    %99 = tpu.matmul %96, %98, %cst_66 {dimension_numbers = #tpu.dot_dimension_numbers<[1], [0], [0], [1], [0, 0, 1, 1], [], []>} : vector<288x4xf32>, vector<4x4xf32>, vector<288x4xf32> -> vector<288x4xf32>
    %100 = arith.addf %95, %99 : vector<288x4xf32>
    %c20_67 = arith.constant 20 : index
    %c0_68 = arith.constant 0 : index
    %101 = vector.load %arg9[%c20_67, %c0_68] : memref<326x4xf32, #tpu.memory_space<vmem>>, vector<288x4xf32>
    %c5 = arith.constant 5 : index
    %c0_69 = arith.constant 0 : index
    %c0_70 = arith.constant 0 : index
    %102 = vector.load %arg4[%c5, %c0_69, %c0_70] : memref<9x4x4xf32, #tpu.memory_space<vmem>>, vector<1x4x4xf32>
    %103 = vector.shape_cast %102 : vector<1x4x4xf32> to vector<4x4xf32>
    %cst_71 = arith.constant dense<0.000000e+00> : vector<288x4xf32>
    %104 = tpu.matmul %101, %103, %cst_71 {dimension_numbers = #tpu.dot_dimension_numbers<[1], [0], [0], [1], [0, 0, 1, 1], [], []>} : vector<288x4xf32>, vector<4x4xf32>, vector<288x4xf32> -> vector<288x4xf32>
    %105 = arith.addf %100, %104 : vector<288x4xf32>
    %c36_72 = arith.constant 36 : index
    %c0_73 = arith.constant 0 : index
    %106 = vector.load %arg9[%c36_72, %c0_73] : memref<326x4xf32, #tpu.memory_space<vmem>>, vector<288x4xf32>
    %c6 = arith.constant 6 : index
    %c0_74 = arith.constant 0 : index
    %c0_75 = arith.constant 0 : index
    %107 = vector.load %arg4[%c6, %c0_74, %c0_75] : memref<9x4x4xf32, #tpu.memory_space<vmem>>, vector<1x4x4xf32>
    %108 = vector.shape_cast %107 : vector<1x4x4xf32> to vector<4x4xf32>
    %cst_76 = arith.constant dense<0.000000e+00> : vector<288x4xf32>
    %109 = tpu.matmul %106, %108, %cst_76 {dimension_numbers = #tpu.dot_dimension_numbers<[1], [0], [0], [1], [0, 0, 1, 1], [], []>} : vector<288x4xf32>, vector<4x4xf32>, vector<288x4xf32> -> vector<288x4xf32>
    %110 = arith.addf %105, %109 : vector<288x4xf32>
    %c37 = arith.constant 37 : index
    %c0_77 = arith.constant 0 : index
    %111 = vector.load %arg9[%c37, %c0_77] : memref<326x4xf32, #tpu.memory_space<vmem>>, vector<288x4xf32>
    %c7 = arith.constant 7 : index
    %c0_78 = arith.constant 0 : index
    %c0_79 = arith.constant 0 : index
    %112 = vector.load %arg4[%c7, %c0_78, %c0_79] : memref<9x4x4xf32, #tpu.memory_space<vmem>>, vector<1x4x4xf32>
    %113 = vector.shape_cast %112 : vector<1x4x4xf32> to vector<4x4xf32>
    %cst_80 = arith.constant dense<0.000000e+00> : vector<288x4xf32>
    %114 = tpu.matmul %111, %113, %cst_80 {dimension_numbers = #tpu.dot_dimension_numbers<[1], [0], [0], [1], [0, 0, 1, 1], [], []>} : vector<288x4xf32>, vector<4x4xf32>, vector<288x4xf32> -> vector<288x4xf32>
    %115 = arith.addf %110, %114 : vector<288x4xf32>
    %c38_81 = arith.constant 38 : index
    %c0_82 = arith.constant 0 : index
    %116 = vector.load %arg9[%c38_81, %c0_82] : memref<326x4xf32, #tpu.memory_space<vmem>>, vector<288x4xf32>
    %c8 = arith.constant 8 : index
    %c0_83 = arith.constant 0 : index
    %c0_84 = arith.constant 0 : index
    %117 = vector.load %arg4[%c8, %c0_83, %c0_84] : memref<9x4x4xf32, #tpu.memory_space<vmem>>, vector<1x4x4xf32>
    %118 = vector.shape_cast %117 : vector<1x4x4xf32> to vector<4x4xf32>
    %cst_85 = arith.constant dense<0.000000e+00> : vector<288x4xf32>
    %119 = tpu.matmul %116, %118, %cst_85 {dimension_numbers = #tpu.dot_dimension_numbers<[1], [0], [0], [1], [0, 0, 1, 1], [], []>} : vector<288x4xf32>, vector<4x4xf32>, vector<288x4xf32> -> vector<288x4xf32>
    %120 = arith.addf %115, %119 : vector<288x4xf32>
    %c0_86 = arith.constant 0 : index
    %c0_87 = arith.constant 0 : index
    %121 = vector.load %arg5[%c0_86, %c0_87] : memref<1x4xf32, #tpu.memory_space<vmem>>, vector<1x4xf32>
    %122 = vector.broadcast %121 : vector<1x4xf32> to vector<288x4xf32>
    %123 = arith.addf %120, %122 : vector<288x4xf32>
    %cst_88 = arith.constant 0.000000e+00 : f32
    %124 = vector.broadcast %cst_88 : f32 to vector<288x4xf32>
    %125 = arith.maximumf %123, %124 : vector<288x4xf32>
    %126 = vector.shape_cast %125 : vector<288x4xf32> to vector<16x18x4xf32>
    %127 = vector.extract_strided_slice %126 {offsets = [0, 1, 0], sizes = [16, 16, 4], strides = [1, 1, 1]} : vector<16x18x4xf32> to vector<16x16x4xf32>
    %128 = vector.shape_cast %127 : vector<16x16x4xf32> to vector<256x4xf32>
    %c0_89 = arith.constant 0 : index
    %c0_90 = arith.constant 0 : index
    %129 = vector.load %arg6[%c0_89, %c0_90] : memref<4x16xf32, #tpu.memory_space<vmem>>, vector<4x16xf32>
    %cst_91 = arith.constant dense<0.000000e+00> : vector<256x16xf32>
    %130 = tpu.matmul %128, %129, %cst_91 {dimension_numbers = #tpu.dot_dimension_numbers<[1], [0], [0], [1], [0, 0, 1, 1], [], []>} : vector<256x4xf32>, vector<4x16xf32>, vector<256x16xf32> -> vector<256x16xf32>
    %c0_92 = arith.constant 0 : index
    %c0_93 = arith.constant 0 : index
    %131 = vector.load %arg7[%c0_92, %c0_93] : memref<1x16xf32, #tpu.memory_space<vmem>>, vector<1x16xf32>
    %132 = vector.broadcast %131 : vector<1x16xf32> to vector<256x16xf32>
    %133 = arith.addf %130, %132 : vector<256x16xf32>
    %134 = arith.addf %1, %133 : vector<256x16xf32>
    %cst_94 = arith.constant 0.000000e+00 : f32
    %135 = vector.broadcast %cst_94 : f32 to vector<256x16xf32>
    %136 = arith.maximumf %134, %135 : vector<256x16xf32>
    %c0_95 = arith.constant 0 : index
    %c0_96 = arith.constant 0 : index
    %c0_97 = arith.constant 0 : index
    %137 = vector.load %arg8[%c0_95, %c0_96, %c0_97] : memref<1x256x16xf32, #tpu.memory_space<vmem>>, vector<1x256x16xf32>
    %138 = vector.shape_cast %137 : vector<1x256x16xf32> to vector<256x16xf32>
    %139 = vector.shape_cast %136 : vector<256x16xf32> to vector<1x256x16xf32>
    tpu.vector_store %arg8[%c0_95, %c0_96, %c0_97], %139 {strides = array<i32>} : memref<1x256x16xf32, #tpu.memory_space<vmem>>, vector<1x256x16xf32>,
    return
  }
  func.func @transform_0(%arg0: i32) -> (i32, i32, i32) {
    %c0_i32 = arith.constant 0 : i32
    %c0_i32_0 = arith.constant 0 : i32
    %c0_i32_1 = arith.constant 0 : i32
    return %arg0, %c0_i32, %c0_i32_0 : i32, i32, i32
  }
  func.func @transform_1(%arg0: i32) -> (i32, i32) {
    %c0_i32 = arith.constant 0 : i32
    %c0_i32_0 = arith.constant 0 : i32
    %c0_i32_1 = arith.constant 0 : i32
    return %c0_i32, %c0_i32_0 : i32, i32
  }
  func.func @transform_2(%arg0: i32) -> (i32, i32) {
    %c0_i32 = arith.constant 0 : i32
    %c0_i32_0 = arith.constant 0 : i32
    %c0_i32_1 = arith.constant 0 : i32
    return %c0_i32, %c0_i32_0 : i32, i32
  }
  func.func @transform_3(%arg0: i32) -> (i32, i32, i32) {
    %c0_i32 = arith.constant 0 : i32
    %c0_i32_0 = arith.constant 0 : i32
    %c0_i32_1 = arith.constant 0 : i32
    %c0_i32_2 = arith.constant 0 : i32
    return %c0_i32, %c0_i32_0, %c0_i32_1 : i32, i32, i32
  }
  func.func @transform_4(%arg0: i32) -> (i32, i32) {
    %c0_i32 = arith.constant 0 : i32
    %c0_i32_0 = arith.constant 0 : i32
    %c0_i32_1 = arith.constant 0 : i32
    return %c0_i32, %c0_i32_0 : i32, i32
  }
  func.func @transform_5(%arg0: i32) -> (i32, i32) {
    %c0_i32 = arith.constant 0 : i32
    %c0_i32_0 = arith.constant 0 : i32
    %c0_i32_1 = arith.constant 0 : i32
    return %c0_i32, %c0_i32_0 : i32, i32
  }
  func.func @transform_6(%arg0: i32) -> (i32, i32) {
    %c0_i32 = arith.constant 0 : i32
    %c0_i32_0 = arith.constant 0 : i32
    %c0_i32_1 = arith.constant 0 : i32
    return %c0_i32, %c0_i32_0 : i32, i32
  }
  func.func @transform_7(%arg0: i32) -> (i32, i32, i32) {
    %c0_i32 = arith.constant 0 : i32
    %c0_i32_0 = arith.constant 0 : i32
    %c0_i32_1 = arith.constant 0 : i32
    return %arg0, %c0_i32, %c0_i32_0 : i32, i32, i32
  }
}

</mosaic_0001>

<bundles_post_ra>
// kernel: bottleneck_forward.1
= control target key start
LH: loop header
LB: loop body
LE: loop exit
PB: predicated region body
PF: predicated region fallthrough
CT: control target
= control target key end

     0   :  { %s8198_s24 = smov 0   ;;  %s10913_s0 = inlined_call_operand.vmem [shape: f32[2,256,16], index: 0, kind: input, shape index: {}]   ;;  %s10914_s1 = inlined_call_operand.vmem [shape: f32[16,4], index: 1, kind: input, shape index: {}]   ;;  %s10915_s2 = inlined_call_operand.vmem [shape: f32[1,4], index: 2, kind: input, shape index: {}]   ;;  %s10916_s3 = inlined_call_operand.vmem [shape: f32[9,4,4], index: 3, kind: input, shape index: {}]   ;;  %s10917_s4 = inlined_call_operand.vmem [shape: f32[1,4], index: 4, kind: input, shape index: {}]   ;;  %s10918_s5 = inlined_call_operand.vmem [shape: f32[4,16], index: 5, kind: input, shape index: {}]   ;;  %s10919_s6 = inlined_call_operand.vmem [shape: f32[1,16], index: 6, kind: input, shape index: {}]   ;;  %s10920_s7 = inlined_call_operand.vmem [shape: f32[2,256,16], index: 7, kind: output, shape index: {}]  }
   0x1 LB: > { %s6657_s25 = sadd.s32 4294967295, %s8154_s24   ;;  %p6661_p0 = scmp.ge.s32.totalorder %s8154_s24, 1  ;;  %s8154_s24 = sphi %s8198_s24, %s17_s24  }
   0x2   : > { %p237_p1 = scmp.lt.s32.totalorder %s8154_s24, 3 }
   0x4   : > { %p238_p2 = pnand %p6661_p0, %p237_p1 }
   0x6   : > { %241 = sbr.rel (%p238_p2) target bundleno = 1133 (0x46d), region = 48 }
   0xb   : > { %v312_v0 = vld [vmem:[%s10914_s1 + $0x8] sm:$0xff]  ;;  %v311_v1 = vld [vmem:[%s10914_s1] sm:$0xff]  ;;  %p269_p3 = scmp.lt.s32.totalorder %s6657_s25, 1  ;;  %vm913_vm0 = vcmask 1043456   ;;  %vm320_vm1 = vcmask 130048   ;;  %vm674_vm2 = vcmask 31744  }
   0xc   : > { %7495 = vmatprep.subr.mxu0 %v312_v0  ;;  %8101 = vmatprep.subr.mxu1 %v312_v0  ;;  %v6699_v2 = vld [vmem:[%s10916_s3 + $0x4] sm:$0xf]  ;;  %v8156_v35 = vmov 0.0   ;;  %vm677_vm3 = vcmask 27648   ;;  %v766_v36 = vld [vmem:[%s10916_s3] sm:$0xf] }
   0xd   : > { %7496 = vmatpush3.msra.mxu0 %v312_v0  ;;  %s11108_s25 = smov (!%p269_p3, %s6657_s25), 1  ;;  %8103 = vmatpush3.msra.mxu1 %v312_v0  ;;  %675 = vst.msk [vmem:[#allocation2] sm:$0xff] %vm674_vm2, %v8156_v35  ;;  %676 = vst.msk [vmem:[#allocation2 + $0x8] sm:$0xff] %vm674_vm2, %v8156_v35  ;;  %vm682_vm4 = vcmask 25600   ;;  %v6774_v41 = vld [vmem:[%s10916_s3 + $0x8] sm:$0xf] }
   0xe   : > { %7497 = vmatprep.subr.mxu0 %v311_v1  ;;  %8102 = vmatprep.subr.mxu1 %v311_v1  ;;  %s7093_s9 = sshll.u32 %s11108_s25, 8  ;;  %679 = vst.msk [vmem:[#allocation2 + $0x132] sm:$0xff] %vm674_vm2, %v8156_v35  ;;  %680 = vst.msk [vmem:[#allocation2 + $0x13a] sm:$0xff] %vm674_vm2, %v8156_v35  ;;  %v6812_v42 = vld [vmem:[%s10916_s3 + $0xc] sm:$0xf]  ;;  %vm5255_vm5 = vcmask 1040384  }
   0xf   : > { %7498 = vmatpush3.msra.mxu0 %v311_v1  ;;  %8104 = vmatpush3.msra.mxu1 %v311_v1  ;;  %s8223_s12 = scalar_lea.vmem %s10913_s0, %s7093_s9  ;;  %678 = vst.msk [vmem:[#allocation2 + $0x10] sm:$0xf] %vm677_vm3, %v8156_v35  ;;  %681 = vst.msk [vmem:[#allocation2 + $0x142] sm:$0xf] %vm677_vm3, %v8156_v35  ;;  %v8331_v43 = vld [vmem:[%s10916_s3 + $0x10] sm:$0xf]  ;;  %s10783_s22 = scalar_lea.vmem %s10920_s7, %s7093_s9 }
  0x10   : > { %7547 = vmatprep.subr.msk.mxu1 %vm913_vm0, %v6699_v2  ;;  %v279_v3 = vld [vmem:[%s8223_s12] sm:$0xff]  ;;  %v280_v4 = vld [vmem:[%s8223_s12 + $0x8] sm:$0xff]  ;;  %v281_v5 = vld [vmem:[%s8223_s12 + $0x10] sm:$0xff]  ;;  %7603 = vmatprep.subr.msk.mxu0 %vm913_vm0, %v766_v36  ;;  %683 = vst.msk [vmem:[#allocation2 + $0x24] sm:$0x3] %vm682_vm4, %v8156_v35  ;;  %vm5256_vm6 = vcmask 1042434  }
  0x11   : > { %7499 = vmatprep.mubr.msk.f32.mxu0 %vm320_vm1, %v279_v3  ;;  %v282_v6 = vld [vmem:[%s8223_s12 + $0x18] sm:$0xff]  ;;  %v283_v7 = vld [vmem:[%s8223_s12 + $0x20] sm:$0xff]  ;;  %v297_v8 = vld [vmem:[%s8223_s12 + $0x90] sm:$0xff]  ;;  %684 = vst.msk [vmem:[#allocation2 + $0x36] sm:$0x3] %vm682_vm4, %v8156_v35  ;;  %vm5258_vm7 = vcmask 1044484  }
  0x12   : > { %7500 = vmatmul.mubr.msk.f32.vlgmr.msra.gmra.mxu0 %vm320_vm1, %v280_v4  ;;  %v298_v9 = vld [vmem:[%s8223_s12 + $0x98] sm:$0xff]  ;;  %v299_v10 = vld [vmem:[%s8223_s12 + $0xa0] sm:$0xff]  ;;  %v284_v11 = vld [vmem:[%s8223_s12 + $0x28] sm:$0xff]  ;;  %7526 = vmatprep.mubr.msk.f32.mxu1 %vm320_vm1, %v297_v8  ;;  %685 = vst.msk [vmem:[#allocation2 + $0x48] sm:$0x3] %vm682_vm4, %v8156_v35  ;;  %vm5260_vm8 = vcmask 1046534  }
  0x13   : > { %7502 = vmatprep.mubr.msk.f32.mxu0 %vm320_vm1, %v281_v5  ;;  %v285_v12 = vld [vmem:[%s8223_s12 + $0x30] sm:$0xff]  ;;  %7527 = vmatmul.mubr.msk.f32.vlgmr.msra.gmra.mxu1 %vm320_vm1, %v298_v9  ;;  %v300_v13 = vld [vmem:[%s8223_s12 + $0xa8] sm:$0xff]  ;;  %v286_v15 = vld [vmem:[%s8223_s12 + $0x38] sm:$0xff]  ;;  %686 = vst.msk [vmem:[#allocation2 + $0x5a] sm:$0x3] %vm682_vm4, %v8156_v35 }
  0x14   : > { %7529 = vmatprep.mubr.msk.f32.mxu1 %vm320_vm1, %v299_v10  ;;  %7548 = vmatpush3.msk.msra.mxu1 %vm913_vm0, %v6699_v2  ;;  %v301_v14 = vld [vmem:[%s8223_s12 + $0xb0] sm:$0xff]  ;;  %v287_v16 = vld [vmem:[%s8223_s12 + $0x40] sm:$0xff]  ;;  %v302_v17 = vld [vmem:[%s8223_s12 + $0xb8] sm:$0xff]  ;;  %687 = vst.msk [vmem:[#allocation2 + $0x6c] sm:$0x3] %vm682_vm4, %v8156_v35 }
  0x15   : > { %v303_v18 = vld [vmem:[%s8223_s12 + $0xc0] sm:$0xff]  ;;  %v288_v19 = vld [vmem:[%s8223_s12 + $0x48] sm:$0xff]  ;;  %v289_v20 = vld [vmem:[%s8223_s12 + $0x50] sm:$0xff]  ;;  %7604 = vmatpush3.msk.msra.mxu0 %vm913_vm0, %v766_v36  ;;  %688 = vst.msk [vmem:[#allocation2 + $0x7e] sm:$0x3] %vm682_vm4, %v8156_v35  ;;  %7659 = vmatprep.subr.msk.mxu1 %vm913_vm0, %v6774_v41 }
  0x16   : > { %7503 = vmatmul.mubr.msk.f32.gmra.mxu0 %vm320_vm1, %v282_v6  ;;  %v304_v21 = vld [vmem:[%s8223_s12 + $0xc8] sm:$0xff]  ;;  %v305_v22 = vld [vmem:[%s8223_s12 + $0xd0] sm:$0xff]  ;;  %v290_v23 = vld [vmem:[%s8223_s12 + $0x58] sm:$0xff]  ;;  %689 = vst.msk [vmem:[#allocation2 + $0x90] sm:$0x3] %vm682_vm4, %v8156_v35  ;;  %7715 = vmatprep.subr.msk.mxu0 %vm913_vm0, %v6812_v42 }
  0x17   : > { %7505 = vmatprep.mubr.msk.f32.mxu0 %vm320_vm1, %v283_v7  ;;  %7530 = vmatmul.mubr.msk.f32.gmra.mxu1 %vm320_vm1, %v300_v13  ;;  %v291_v24 = vld [vmem:[%s8223_s12 + $0x60] sm:$0xff]  ;;  %v306_v25 = vld [vmem:[%s8223_s12 + $0xd8] sm:$0xff]  ;;  %v292_v27 = vld [vmem:[%s8223_s12 + $0x68] sm:$0xff]  ;;  %690 = vst.msk [vmem:[#allocation2 + $0xa2] sm:$0x3] %vm682_vm4, %v8156_v35 }
  0x18   : > { %7532 = vmatprep.mubr.msk.f32.mxu1 %vm320_vm1, %v301_v14  ;;  %v307_v26 = vld [vmem:[%s8223_s12 + $0xe0] sm:$0xff]  ;;  %v293_v28 = vld [vmem:[%s8223_s12 + $0x70] sm:$0xff]  ;;  %v308_v29 = vld [vmem:[%s8223_s12 + $0xe8] sm:$0xff]  ;;  %691 = vst.msk [vmem:[#allocation2 + $0xb4] sm:$0x3] %vm682_vm4, %v8156_v35 }
  0x19   : > { %v309_v30 = vld [vmem:[%s8223_s12 + $0xf0] sm:$0xff]  ;;  %v294_v31 = vld [vmem:[%s8223_s12 + $0x78] sm:$0xff]  ;;  %v295_v32 = vld [vmem:[%s8223_s12 + $0x80] sm:$0xff]  ;;  %692 = vst.msk [vmem:[#allocation2 + $0xc6] sm:$0x3] %vm682_vm4, %v8156_v35 }
  0x1a   : > { %7506 = vmatmul.mubr.msk.f32.gmra.mxu0 %vm320_vm1, %v284_v11  ;;  %v310_v33 = vld [vmem:[%s8223_s12 + $0xf8] sm:$0xff]  ;;  %v296_v34 = vld [vmem:[%s8223_s12 + $0x88] sm:$0xff]  ;;  %v730_v38 = vld [vmem:[#allocation2] sm:$0xff]  ;;  %693 = vst.msk [vmem:[#allocation2 + $0xd8] sm:$0x3] %vm682_vm4, %v8156_v35 }
  0x1b   : > { %7508 = vmatprep.mubr.msk.f32.mxu0 %vm320_vm1, %v285_v12  ;;  %7533 = vmatmul.mubr.msk.f32.gmra.mxu1 %vm320_vm1, %v302_v17  ;;  %v767_v37 = vld [vmem:[#allocation2 + $0x1] sm:$0xff]  ;;  %v768_v39 = vld [vmem:[#allocation2 + $0x9] sm:$0xff]  ;;  %694 = vst.msk [vmem:[#allocation2 + $0xea] sm:$0x3] %vm682_vm4, %v8156_v35  ;;  %695 = vst.msk [vmem:[#allocation2 + $0xfc] sm:$0x3] %vm682_vm4, %v8156_v35 }
  0x1c   : > { %7535 = vmatprep.mubr.msk.f32.mxu1 %vm320_vm1, %v303_v18  ;;  %v731_v40 = vld [vmem:[#allocation2 + $0x8] sm:$0xff]  ;;  %696 = vst.msk [vmem:[#allocation2 + $0x10e] sm:$0x3] %vm682_vm4, %v8156_v35  ;;  %697 = vst.msk [vmem:[#allocation2 + $0x120] sm:$0x3] %vm682_vm4, %v8156_v35 }
  0x1d   : > { %v8339_v44 = vld [vmem:[%s10915_s2] ss:$0 sm:$0xff]  ;;  %vm5257_vm9 = vmor %vm5255_vm5, %vm5256_vm6 }
  0x1e   : > { %7509 = vmatmul.mubr.msk.f32.gmra.mxu0 %vm320_vm1, %v286_v15  ;;  %vm5259_vm10 = vmor %vm5257_vm9, %vm5258_vm7 }
  0x1f   : > { %7511 = vmatprep.mubr.msk.f32.mxu0 %vm320_vm1, %v287_v16  ;;  %7536 = vmatmul.mubr.msk.f32.gmra.mxu1 %vm320_vm1, %v304_v21  ;;  %vm9556_vm11 = vmor %vm5259_vm10, %vm5260_vm8 }
  0x20   : > { %7538 = vmatprep.mubr.msk.f32.mxu1 %vm320_vm1, %v305_v22 }
  0x22   : > { %7512 = vmatmul.mubr.msk.f32.gmra.mxu0 %vm320_vm1, %v288_v19 }
  0x23   : > { %7514 = vmatprep.mubr.msk.f32.mxu0 %vm320_vm1, %v289_v20  ;;  %7539 = vmatmul.mubr.msk.f32.gmra.mxu1 %vm320_vm1, %v306_v25 }
  0x24   : > { %7541 = vmatprep.mubr.msk.f32.mxu1 %vm320_vm1, %v307_v26 }
  0x26   : > { %7515 = vmatmul.mubr.msk.f32.gmra.mxu0 %vm320_vm1, %v290_v23 }
  0x27   : > { %7517 = vmatprep.mubr.msk.f32.mxu0 %vm320_vm1, %v291_v24  ;;  %7542 = vmatmul.mubr.msk.f32.gmra.mxu1 %vm320_vm1, %v308_v29 }
  0x28   : > { %7544 = vmatprep.mubr.msk.f32.mxu1 %vm320_vm1, %v309_v30 }
  0x2a   : > { %7518 = vmatmul.mubr.msk.f32.gmra.mxu0 %vm320_vm1, %v292_v27 }
  0x2b   : > { %7520 = vmatprep.mubr.msk.f32.mxu0 %vm320_vm1, %v293_v28  ;;  %7545 = vmatmul.mubr.msk.f32.gmra.mxu1 %vm320_vm1, %v310_v33 }
  0x2c   : > { %7549 = vmatprep.mubr.msk.f32.mxu1 %vm674_vm2, %v767_v37 }
  0x2e   : > { %7521 = vmatmul.mubr.msk.f32.gmra.mxu0 %vm320_vm1, %v294_v31 }
  0x2f   : > { %7523 = vmatprep.mubr.msk.f32.mxu0 %vm320_vm1, %v295_v32  ;;  %7550 = vmatmul.mubr.msk.f32.vlgmr.msra.gmra.mxu1 %vm674_vm2, %v768_v39 }
  0x30   : > { %7660 = vmatpush3.msk.msra.mxu1 %vm913_vm0, %v6774_v41 }
  0x31   : > { %7771 = vmatprep.subr.msk.mxu1 %vm913_vm0, %v8331_v43 }
  0x32   : > { %7524 = vmatmul.mubr.msk.f32.gmra.mxu0 %vm320_vm1, %v296_v34 }
  0x33   : > { %7605 = vmatprep.mubr.msk.f32.mxu0 %vm674_vm2, %v730_v38 }
  0x36   : > { %7606 = vmatmul.mubr.msk.f32.vlgmr.msra.gmra.mxu0 %vm674_vm2, %v731_v40 }
  0x37   : > { %7716 = vmatpush3.msk.msra.mxu0 %vm913_vm0, %v6812_v42 }
  0xd2   : > { %v7501_v45 = vpop.f32.mrf.mxu0 }
  0xd3   : > { %v489_v46 = vadd.f32 %v7501_v45, %v8339_v44  ;;  %v7528_v54 = vpop.f32.mrf.mxu1 }
  0xd4   : > { %v483_v47 = vpop.f32.mrf.mxu0  ;;  %v579_v57 = vadd.f32 %v7528_v54, %v8339_v44 }
  0xd5   : > { %v643_v48 = vmax.f32 %v489_v46, 0.0  ;;  %v484_v49 = vadd.f32 %v8339_v44, %v483_v47  ;;  %v573_v59 = vpop.f32.mrf.mxu1 }
  0xd6   : > { %v7504_v50 = vpop.f32.mrf.mxu0  ;;  %v661_v62 = vmax.f32 %v579_v57, 0.0  ;;  %v574_v63 = vadd.f32 %v8339_v44, %v573_v59 }
  0xd7   : > { %699 = vst.msk [vmem:[#allocation2 + $0x1c] sm:$0xff] %vm674_vm2, %v643_v48  ;;  %v642_v51 = vmax.f32 %v484_v49, 0.0  ;;  %v499_v52 = vadd.f32 %v7504_v50, %v8339_v44  ;;  %v7531_v1 = vpop.f32.mrf.mxu1 }
  0xd8   : > { %v493_v53 = vpop.f32.mrf.mxu0  ;;  %717 = vst.msk [vmem:[#allocation2 + $0xbe] sm:$0xff] %vm674_vm2, %v661_v62  ;;  %v660_v4 = vmax.f32 %v574_v63, 0.0  ;;  %v589_v5 = vadd.f32 %v7531_v1, %v8339_v44 }
  0xd9   : > { %698 = vst.msk [vmem:[#allocation2 + $0x14] sm:$0xff] %vm674_vm2, %v642_v51  ;;  %v645_v55 = vmax.f32 %v499_v52, 0.0  ;;  %v494_v56 = vadd.f32 %v8339_v44, %v493_v53  ;;  %v583_v7 = vpop.f32.mrf.mxu1 }
  0xda   : > { %v7507_v58 = vpop.f32.mrf.mxu0  ;;  %716 = vst.msk [vmem:[#allocation2 + $0xb6] sm:$0xff] %vm674_vm2, %v660_v4  ;;  %v663_v10 = vmax.f32 %v589_v5, 0.0  ;;  %v584_v11 = vadd.f32 %v8339_v44, %v583_v7 }
  0xdb   : > { %701 = vst.msk [vmem:[#allocation2 + $0x2e] sm:$0xff] %vm674_vm2, %v645_v55  ;;  %v644_v60 = vmax.f32 %v494_v56, 0.0  ;;  %v509_v61 = vadd.f32 %v7507_v58, %v8339_v44  ;;  %v7534_v16 = vpop.f32.mrf.mxu1 }
  0xdc   : > { %v503_v0 = vpop.f32.mrf.mxu0  ;;  %719 = vst.msk [vmem:[#allocation2 + $0xd0] sm:$0xff] %vm674_vm2, %v663_v10  ;;  %v662_v20 = vmax.f32 %v584_v11, 0.0  ;;  %v599_v21 = vadd.f32 %v7534_v16, %v8339_v44 }
  0xdd   : > { %700 = vst.msk [vmem:[#allocation2 + $0x26] sm:$0xff] %vm674_vm2, %v644_v60  ;;  %v647_v2 = vmax.f32 %v509_v61, 0.0  ;;  %v504_v3 = vadd.f32 %v8339_v44, %v503_v0  ;;  %v593_v23 = vpop.f32.mrf.mxu1 }
  0xde   : > { %v7510_v6 = vpop.f32.mrf.mxu0  ;;  %718 = vst.msk [vmem:[#allocation2 + $0xc8] sm:$0xff] %vm674_vm2, %v662_v20  ;;  %v665_v26 = vmax.f32 %v599_v21, 0.0  ;;  %v594_v27 = vadd.f32 %v8339_v44, %v593_v23 }
  0xdf   : > { %703 = vst.msk [vmem:[#allocation2 + $0x40] sm:$0xff] %vm674_vm2, %v647_v2  ;;  %v646_v8 = vmax.f32 %v504_v3, 0.0  ;;  %v519_v9 = vadd.f32 %v7510_v6, %v8339_v44  ;;  %v7537_v32 = vpop.f32.mrf.mxu1 }
  0xe0   : > { %v513_v12 = vpop.f32.mrf.mxu0  ;;  %v769_v13 = vld [vmem:[#allocation2 + $0x11] sm:$0xff]  ;;  %v770_v15 = vld [vmem:[#allocation2 + $0x19] sm:$0xff]  ;;  %721 = vst.msk [vmem:[#allocation2 + $0xe2] sm:$0xff] %vm674_vm2, %v665_v26  ;;  %v664_v36 = vmax.f32 %v594_v27, 0.0  ;;  %v609_v37 = vadd.f32 %v7537_v32, %v8339_v44 }
  0xe1   : > { %v732_v14 = vld [vmem:[#allocation2 + $0x10] sm:$0xff]  ;;  %702 = vst.msk [vmem:[#allocation2 + $0x38] sm:$0xff] %vm674_vm2, %v646_v8  ;;  %v649_v17 = vmax.f32 %v519_v9, 0.0  ;;  %v514_v18 = vadd.f32 %v8339_v44, %v513_v12  ;;  %7552 = vmatprep.mubr.msk.f32.mxu1 %vm674_vm2, %v769_v13  ;;  %v733_v19 = vld [vmem:[#allocation2 + $0x18] sm:$0xff]  ;;  %v603_v40 = vpop.f32.mrf.mxu1 }
  0xe2   : > { %7608 = vmatprep.mubr.msk.f32.mxu0 %vm674_vm2, %v732_v14  ;;  %v7513_v22 = vpop.f32.mrf.mxu0  ;;  %7553 = vmatmul.mubr.msk.f32.gmra.mxu1 %vm674_vm2, %v770_v15  ;;  %v736_v39 = vld [vmem:[#allocation2 + $0x30] sm:$0xff]  ;;  %720 = vst.msk [vmem:[#allocation2 + $0xda] sm:$0xff] %vm674_vm2, %v664_v36  ;;  %v667_v45 = vmax.f32 %v609_v37, 0.0  ;;  %v604_v46 = vadd.f32 %v8339_v44, %v603_v40 }
  0xe3   : > { %7609 = vmatmul.mubr.msk.f32.gmra.mxu0 %vm674_vm2, %v733_v19  ;;  %705 = vst.msk [vmem:[#allocation2 + $0x52] sm:$0xff] %vm674_vm2, %v649_v17  ;;  %v648_v24 = vmax.f32 %v514_v18, 0.0  ;;  %v529_v25 = vadd.f32 %v7513_v22, %v8339_v44  ;;  %v7540_v51 = vpop.f32.mrf.mxu1 }
  0xe4   : > { %v523_v28 = vpop.f32.mrf.mxu0  ;;  %v771_v29 = vld [vmem:[#allocation2 + $0x21] sm:$0xff]  ;;  %v772_v31 = vld [vmem:[#allocation2 + $0x29] sm:$0xff]  ;;  %723 = vst.msk [vmem:[#allocation2 + $0xf4] sm:$0xff] %vm674_vm2, %v667_v45  ;;  %v666_v54 = vmax.f32 %v604_v46, 0.0  ;;  %v619_v55 = vadd.f32 %v7540_v51, %v8339_v44 }
  0xe5   : > { %v734_v30 = vld [vmem:[#allocation2 + $0x20] sm:$0xff]  ;;  %704 = vst.msk [vmem:[#allocation2 + $0x4a] sm:$0xff] %vm674_vm2, %v648_v24  ;;  %v651_v33 = vmax.f32 %v529_v25, 0.0  ;;  %v524_v34 = vadd.f32 %v8339_v44, %v523_v28  ;;  %7555 = vmatprep.mubr.msk.f32.mxu1 %vm674_vm2, %v771_v29  ;;  %v735_v35 = vld [vmem:[#allocation2 + $0x28] sm:$0xff]  ;;  %v613_v59 = vpop.f32.mrf.mxu1 }
  0xe6   : > { %7611 = vmatprep.mubr.msk.f32.mxu0 %vm674_vm2, %v734_v30  ;;  %v7516_v38 = vpop.f32.mrf.mxu0  ;;  %7556 = vmatmul.mubr.msk.f32.gmra.mxu1 %vm674_vm2, %v772_v31  ;;  %v775_v57 = vld [vmem:[#allocation2 + $0x41] sm:$0xff]  ;;  %722 = vst.msk [vmem:[#allocation2 + $0xec] sm:$0xff] %vm674_vm2, %v666_v54  ;;  %v669_v62 = vmax.f32 %v619_v55, 0.0  ;;  %v614_v63 = vadd.f32 %v8339_v44, %v613_v59  ;;  %v8446_v54 = vld [vmem:[%s10916_s3 + $0x14] sm:$0xf]  ;;  %v790_v59 = vld [vmem:[#allocation2 + $0xb9] sm:$0xff] }
  0xe7   : > { %7612 = vmatmul.mubr.msk.f32.gmra.mxu0 %vm674_vm2, %v735_v35  ;;  %707 = vst.msk [vmem:[#allocation2 + $0x64] sm:$0xff] %vm674_vm2, %v651_v33  ;;  %v650_v41 = vmax.f32 %v524_v34, 0.0  ;;  %v539_v42 = vadd.f32 %v7516_v38, %v8339_v44  ;;  %v738_v58 = vld [vmem:[#allocation2 + $0x40] sm:$0xff]  ;;  %v7543_v3 = vpop.f32.mrf.mxu1  ;;  %7827 = vmatprep.subr.msk.mxu0 %vm913_vm0, %v8446_v54 }
  0xe8   : > { %7614 = vmatprep.mubr.msk.f32.mxu0 %vm674_vm2, %v736_v39  ;;  %v533_v47 = vpop.f32.mrf.mxu0  ;;  %v773_v48 = vld [vmem:[#allocation2 + $0x31] sm:$0xff]  ;;  %v774_v49 = vld [vmem:[#allocation2 + $0x39] sm:$0xff]  ;;  %725 = vst.msk [vmem:[#allocation2 + $0x106] sm:$0xff] %vm674_vm2, %v669_v62  ;;  %v668_v6 = vmax.f32 %v614_v63, 0.0  ;;  %v629_v7 = vadd.f32 %v7543_v3, %v8339_v44  ;;  %v792_v63 = vld [vmem:[#allocation2 + $0xc9] sm:$0xff] }
  0xe9   : > { %v737_v50 = vld [vmem:[#allocation2 + $0x38] sm:$0xff]  ;;  %706 = vst.msk [vmem:[#allocation2 + $0x5c] sm:$0xff] %vm674_vm2, %v650_v41  ;;  %v653_v52 = vmax.f32 %v539_v42, 0.0  ;;  %v534_v53 = vadd.f32 %v8339_v44, %v533_v47  ;;  %7558 = vmatprep.mubr.msk.f32.mxu1 %vm674_vm2, %v773_v48  ;;  %v623_v11 = vpop.f32.mrf.mxu1  ;;  %v754_v62 = vld [vmem:[#allocation2 + $0xc0] sm:$0xff] }
  0xea   : > { %v7519_v56 = vpop.f32.mrf.mxu0  ;;  %7559 = vmatmul.mubr.msk.f32.gmra.mxu1 %vm674_vm2, %v774_v49  ;;  %724 = vst.msk [vmem:[#allocation2 + $0xfe] sm:$0xff] %vm674_vm2, %v668_v6  ;;  %v671_v14 = vmax.f32 %v629_v7, 0.0  ;;  %v624_v15 = vadd.f32 %v8339_v44, %v623_v11  ;;  %v794_v3 = vld [vmem:[#allocation2 + $0xd9] sm:$0xff] }
  0xeb   : > { %7615 = vmatmul.mubr.msk.f32.gmra.mxu0 %vm674_vm2, %v737_v50  ;;  %709 = vst.msk [vmem:[#allocation2 + $0x76] sm:$0xff] %vm674_vm2, %v653_v52  ;;  %v652_v60 = vmax.f32 %v534_v53, 0.0  ;;  %v549_v61 = vadd.f32 %v7519_v56, %v8339_v44  ;;  %7561 = vmatprep.mubr.msk.f32.mxu1 %vm674_vm2, %v775_v57  ;;  %v7546_v19 = vpop.f32.mrf.mxu1  ;;  %v758_v6 = vld [vmem:[#allocation2 + $0xe0] sm:$0xff] }
  0xec   : > { %7617 = vmatprep.mubr.msk.f32.mxu0 %vm674_vm2, %v738_v58  ;;  %v543_v0 = vpop.f32.mrf.mxu0  ;;  %v776_v1 = vld [vmem:[#allocation2 + $0x49] sm:$0xff]  ;;  %v777_v9 = vld [vmem:[#allocation2 + $0x51] sm:$0xff]  ;;  %727 = vst.msk [vmem:[#allocation2 + $0x118] sm:$0xff] %vm674_vm2, %v671_v14  ;;  %v670_v22 = vmax.f32 %v624_v15, 0.0  ;;  %v639_v23 = vadd.f32 %v7546_v19, %v8339_v44 }
  0xed   : > { %v739_v2 = vld [vmem:[#allocation2 + $0x48] sm:$0xff]  ;;  %708 = vst.msk [vmem:[#allocation2 + $0x6e] sm:$0xff] %vm674_vm2, %v652_v60  ;;  %v655_v4 = vmax.f32 %v549_v61, 0.0  ;;  %v544_v5 = vadd.f32 %v8339_v44, %v543_v0  ;;  %v740_v10 = vld [vmem:[#allocation2 + $0x50] sm:$0xff]  ;;  %v633_v27 = vpop.f32.mrf.mxu1  ;;  %v753_v60 = vld [vmem:[#allocation2 + $0xb8] sm:$0xff] }
  0xee   : > { %v7522_v8 = vpop.f32.mrf.mxu0  ;;  %7562 = vmatmul.mubr.msk.f32.gmra.mxu1 %vm674_vm2, %v776_v1  ;;  %726 = vst.msk [vmem:[#allocation2 + $0x110] sm:$0xff] %vm674_vm2, %v670_v22  ;;  %v673_v30 = vmax.f32 %v639_v23, 0.0  ;;  %v634_v31 = vadd.f32 %v8339_v44, %v633_v27  ;;  %v791_v61 = vld [vmem:[#allocation2 + $0xc1] sm:$0xff]  ;;  %v793_v1 = vld [vmem:[#allocation2 + $0xd1] sm:$0xff]  ;;  %v796_v7 = vld [vmem:[#allocation2 + $0xe9] sm:$0xff] }
  0xef   : > { %7618 = vmatmul.mubr.msk.f32.gmra.mxu0 %vm674_vm2, %v739_v2  ;;  %711 = vst.msk [vmem:[#allocation2 + $0x88] sm:$0xff] %vm674_vm2, %v655_v4  ;;  %v654_v12 = vmax.f32 %v544_v5, 0.0  ;;  %v559_v13 = vadd.f32 %v7522_v8, %v8339_v44  ;;  %7564 = vmatprep.mubr.msk.f32.mxu1 %vm674_vm2, %v777_v9  ;;  %v755_v0 = vld [vmem:[#allocation2 + $0xc8] sm:$0xff]  ;;  %v756_v2 = vld [vmem:[#allocation2 + $0xd0] sm:$0xff]  ;;  %v757_v4 = vld [vmem:[#allocation2 + $0xd8] sm:$0xff] }
  0xf0   : > { %7620 = vmatprep.mubr.msk.f32.mxu0 %vm674_vm2, %v740_v10  ;;  %v553_v16 = vpop.f32.mrf.mxu0  ;;  %v778_v17 = vld [vmem:[#allocation2 + $0x59] sm:$0xff]  ;;  %v779_v25 = vld [vmem:[#allocation2 + $0x61] sm:$0xff]  ;;  %729 = vst.msk [vmem:[#allocation2 + $0x12a] sm:$0xff] %vm674_vm2, %v673_v30  ;;  %v672_v37 = vmax.f32 %v634_v31, 0.0  ;;  %v797_v9 = vld [vmem:[#allocation2 + $0xf1] sm:$0xff] }
  0xf1   : > { %v741_v18 = vld [vmem:[#allocation2 + $0x58] sm:$0xff]  ;;  %710 = vst.msk [vmem:[#allocation2 + $0x80] sm:$0xff] %vm674_vm2, %v654_v12  ;;  %v657_v20 = vmax.f32 %v559_v13, 0.0  ;;  %v554_v21 = vadd.f32 %v8339_v44, %v553_v16  ;;  %v742_v26 = vld [vmem:[#allocation2 + $0x60] sm:$0xff]  ;;  %v759_v8 = vld [vmem:[#allocation2 + $0xe8] sm:$0xff] }
  0xf2   : > { %v7525_v24 = vpop.f32.mrf.mxu0  ;;  %7565 = vmatmul.mubr.msk.f32.gmra.mxu1 %vm674_vm2, %v778_v17  ;;  %728 = vst.msk [vmem:[#allocation2 + $0x122] sm:$0xff] %vm674_vm2, %v672_v37  ;;  %v795_v5 = vld [vmem:[#allocation2 + $0xe1] sm:$0xff]  ;;  %v760_v10 = vld [vmem:[#allocation2 + $0xf0] sm:$0xff]  ;;  %v798_v11 = vld [vmem:[#allocation2 + $0xf9] sm:$0xff]  ;;  %v7551_v17 = vpop.f32.mrf.mxu1 }
  0xf3   : > { %7621 = vmatmul.mubr.msk.f32.gmra.mxu0 %vm674_vm2, %v741_v18  ;;  %713 = vst.msk [vmem:[#allocation2 + $0x9a] sm:$0xff] %vm674_vm2, %v657_v20  ;;  %v656_v28 = vmax.f32 %v554_v21, 0.0  ;;  %v569_v29 = vadd.f32 %v7525_v24, %v8339_v44  ;;  %7567 = vmatprep.mubr.msk.f32.mxu1 %vm674_vm2, %v779_v25  ;;  %v761_v12 = vld [vmem:[#allocation2 + $0xf8] sm:$0xff]  ;;  %v799_v13 = vld [vmem:[#allocation2 + $0x101] sm:$0xff]  ;;  %v1951_v30 = vld [vmem:[#allocation2 + $0x2a] sm:$0xff] }
  0xf4   : > { %7623 = vmatprep.mubr.msk.f32.mxu0 %vm674_vm2, %v742_v26  ;;  %v563_v32 = vpop.f32.mrf.mxu0  ;;  %v780_v33 = vld [vmem:[#allocation2 + $0x69] sm:$0xff]  ;;  %v781_v38 = vld [vmem:[#allocation2 + $0x71] sm:$0xff]  ;;  %v762_v14 = vld [vmem:[#allocation2 + $0x100] sm:$0xff] }
  0xf5   : > { %v743_v34 = vld [vmem:[#allocation2 + $0x68] sm:$0xff]  ;;  %712 = vst.msk [vmem:[#allocation2 + $0x92] sm:$0xff] %vm674_vm2, %v656_v28  ;;  %v659_v35 = vmax.f32 %v569_v29, 0.0  ;;  %v564_v36 = vadd.f32 %v8339_v44, %v563_v32  ;;  %v744_v39 = vld [vmem:[#allocation2 + $0x70] sm:$0xff]  ;;  %v745_v44 = vld [vmem:[#allocation2 + $0x78] sm:$0xff] }
  0xf6   : > { %7568 = vmatmul.mubr.msk.f32.gmra.mxu1 %vm674_vm2, %v780_v33  ;;  %v784_v48 = vld [vmem:[#allocation2 + $0x89] sm:$0xff]  ;;  %v7607_v18 = vpop.f32.mrf.mxu0  ;;  %v801_v19 = vld [vmem:[#allocation2 + $0x111] sm:$0xff]  ;;  %v802_v23 = vld [vmem:[#allocation2 + $0x119] sm:$0xff] }
  0xf7   : > { %7624 = vmatmul.mubr.msk.f32.gmra.mxu0 %vm674_vm2, %v743_v34  ;;  %715 = vst.msk [vmem:[#allocation2 + $0xac] sm:$0xff] %vm674_vm2, %v659_v35  ;;  %v658_v40 = vmax.f32 %v564_v36, 0.0  ;;  %7570 = vmatprep.mubr.msk.f32.mxu1 %vm674_vm2, %v781_v38  ;;  %v747_v49 = vld [vmem:[#allocation2 + $0x88] sm:$0xff]  ;;  %v764_v20 = vld [vmem:[#allocation2 + $0x110] sm:$0xff]  ;;  %v8476_v21 = vadd.f32 %v7607_v18, %v7551_v17  ;;  %v765_v24 = vld [vmem:[#allocation2 + $0x118] sm:$0xff] }
  0xf8   : > { %7626 = vmatprep.mubr.msk.f32.mxu0 %vm674_vm2, %v744_v39  ;;  %v782_v41 = vld [vmem:[#allocation2 + $0x79] sm:$0xff]  ;;  %v783_v42 = vld [vmem:[#allocation2 + $0x81] sm:$0xff]  ;;  %v800_v15 = vld [vmem:[#allocation2 + $0x109] sm:$0xff] }
  0xf9   : > { %714 = vst.msk [vmem:[#allocation2 + $0xa4] sm:$0xff] %vm674_vm2, %v658_v40  ;;  %v746_v45 = vld [vmem:[#allocation2 + $0x80] sm:$0xff]  ;;  %v763_v16 = vld [vmem:[#allocation2 + $0x108] sm:$0xff]  ;;  %v1948_v25 = vld [vmem:[#allocation2 + $0x12] sm:$0xff] }
  0xfa   : > { %7571 = vmatmul.mubr.msk.f32.gmra.mxu1 %vm674_vm2, %v782_v41  ;;  %v1518_v22 = vld [vmem:[#allocation2 + $0x2] sm:$0xff]  ;;  %v1519_v26 = vld [vmem:[#allocation2 + $0xa] sm:$0xff]  ;;  %v1949_v27 = vld [vmem:[#allocation2 + $0x1a] sm:$0xff] }
  0xfb   : > { %7627 = vmatmul.mubr.msk.f32.gmra.mxu0 %vm674_vm2, %v745_v44  ;;  %7573 = vmatprep.mubr.msk.f32.mxu1 %vm674_vm2, %v783_v42  ;;  %v8489_v28 = vld [vmem:[%s10916_s3 + $0x18] sm:$0xf]  ;;  %v1950_v29 = vld [vmem:[#allocation2 + $0x22] sm:$0xff]  ;;  %v1955_v33 = vld [vmem:[#allocation2 + $0x4a] sm:$0xff] }
  0xfc   : > { %7629 = vmatprep.mubr.msk.f32.mxu0 %vm674_vm2, %v746_v45  ;;  %v785_v46 = vld [vmem:[#allocation2 + $0x91] sm:$0xff]  ;;  %v786_v50 = vld [vmem:[#allocation2 + $0x99] sm:$0xff]  ;;  %v1954_v32 = vld [vmem:[#allocation2 + $0x42] sm:$0xff] }
  0xfd   : > { %v748_v47 = vld [vmem:[#allocation2 + $0x90] sm:$0xff]  ;;  %v749_v51 = vld [vmem:[#allocation2 + $0x98] sm:$0xff]  ;;  %v1958_v37 = vld [vmem:[#allocation2 + $0x62] sm:$0xff] }
  0xfe   : > { %7574 = vmatmul.mubr.msk.f32.gmra.mxu1 %vm674_vm2, %v784_v48  ;;  %v789_v57 = vld [vmem:[#allocation2 + $0xb1] sm:$0xff]  ;;  %v8514_v35 = vld [vmem:[%s10916_s3 + $0x1c] sm:$0xf]  ;;  %v1962_v41 = vld [vmem:[#allocation2 + $0x82] sm:$0xff] }
  0xff   : > { %7630 = vmatmul.mubr.msk.f32.gmra.mxu0 %vm674_vm2, %v747_v49  ;;  %7576 = vmatprep.mubr.msk.f32.mxu1 %vm674_vm2, %v785_v46  ;;  %v752_v58 = vld [vmem:[#allocation2 + $0xb0] sm:$0xff]  ;;  %v1957_v36 = vld [vmem:[#allocation2 + $0x5a] sm:$0xff] }
 0x100   : > { %7632 = vmatprep.mubr.msk.f32.mxu0 %vm674_vm2, %v748_v47  ;;  %v787_v52 = vld [vmem:[#allocation2 + $0xa1] sm:$0xff]  ;;  %v788_v55 = vld [vmem:[#allocation2 + $0xa9] sm:$0xff]  ;;  %v1952_v31 = vld [vmem:[#allocation2 + $0x32] sm:$0xff] }
 0x101   : > { %v750_v53 = vld [vmem:[#allocation2 + $0xa0] sm:$0xff]  ;;  %v751_v56 = vld [vmem:[#allocation2 + $0xa8] sm:$0xff]  ;;  %v1956_v34 = vld [vmem:[#allocation2 + $0x52] sm:$0xff] }
 0x102   : > { %7577 = vmatmul.mubr.msk.f32.gmra.mxu1 %vm674_vm2, %v786_v50  ;;  %v1959_v38 = vld [vmem:[#allocation2 + $0x6a] sm:$0xff]  ;;  %v1960_v39 = vld [vmem:[#allocation2 + $0x72] sm:$0xff]  ;;  %v1961_v40 = vld [vmem:[#allocation2 + $0x7a] sm:$0xff] }
 0x103   : > { %7633 = vmatmul.mubr.msk.f32.gmra.mxu0 %vm674_vm2, %v749_v51  ;;  %7579 = vmatprep.mubr.msk.f32.mxu1 %vm674_vm2, %v787_v52  ;;  %v1963_v44 = vld [vmem:[#allocation2 + $0x8a] sm:$0xff]  ;;  %v1964_v42 = vld [vmem:[#allocation2 + $0x92] sm:$0xff]  ;;  %v1965_v45 = vld [vmem:[#allocation2 + $0x9a] sm:$0xff] }
 0x104   : > { %7635 = vmatprep.mubr.msk.f32.mxu0 %vm674_vm2, %v750_v53  ;;  %v1966_v46 = vld [vmem:[#allocation2 + $0xa2] sm:$0xff]  ;;  %v1967_v47 = vld [vmem:[#allocation2 + $0xaa] sm:$0xff]  ;;  %v1968_v48 = vld [vmem:[#allocation2 + $0xb2] sm:$0xff] }
 0x105   : > { %v1969_v49 = vld [vmem:[#allocation2 + $0xba] sm:$0xff]  ;;  %v1970_v50 = vld [vmem:[#allocation2 + $0xc2] sm:$0xff]  ;;  %v1971_v51 = vld [vmem:[#allocation2 + $0xca] sm:$0xff] }
 0x106   : > { %7580 = vmatmul.mubr.msk.f32.gmra.mxu1 %vm674_vm2, %v788_v55  ;;  %v1972_v52 = vld [vmem:[#allocation2 + $0xd2] sm:$0xff]  ;;  %v1973_v53 = vld [vmem:[#allocation2 + $0xda] sm:$0xff]  ;;  %v1975_v55 = vld [vmem:[#allocation2 + $0xea] sm:$0xff] }
 0x107   : > { %7636 = vmatmul.mubr.msk.f32.gmra.mxu0 %vm674_vm2, %v751_v56  ;;  %7582 = vmatprep.mubr.msk.f32.mxu1 %vm674_vm2, %v789_v57  ;;  %v1976_v56 = vld [vmem:[#allocation2 + $0xf2] sm:$0xff]  ;;  %v1977_v57 = vld [vmem:[#allocation2 + $0xfa] sm:$0xff] }
 0x108   : > { %7638 = vmatprep.mubr.msk.f32.mxu0 %vm674_vm2, %v752_v58  ;;  %v1978_v58 = vld [vmem:[#allocation2 + $0x102] sm:$0xff]  ;;  %v2386_v17 = vld [vmem:[#allocation2 + $0x53] sm:$0xff] }
 0x109   : > { %v8617_v18 = vld [vmem:[#allocation2 + $0x54] sm:$0xff] }
 0x10a   : > { %7583 = vmatmul.mubr.msk.f32.gmra.mxu1 %vm674_vm2, %v790_v59  ;;  %v1979_v59 = vld [vmem:[#allocation2 + $0x10a] sm:$0xff] }
 0x10b   : > { %7639 = vmatmul.mubr.msk.f32.gmra.mxu0 %vm674_vm2, %v753_v60  ;;  %7585 = vmatprep.mubr.msk.f32.mxu1 %vm674_vm2, %v791_v61  ;;  %v1980_v60 = vld [vmem:[#allocation2 + $0x112] sm:$0xff]  ;;  %v1982_v61 = vld [vmem:[#allocation2 + $0x122] sm:$0xff] }
 0x10c   : > { %7641 = vmatprep.mubr.msk.f32.mxu0 %vm674_vm2, %v754_v62  ;;  %v1981_v62 = vld [vmem:[#allocation2 + $0x11a] sm:$0xff] }
 0x10e   : > { %7586 = vmatmul.mubr.msk.f32.gmra.mxu1 %vm674_vm2, %v792_v63  ;;  %v1983_v63 = vld [vmem:[#allocation2 + $0x12a] sm:$0xff] }
 0x10f   : > { %7642 = vmatmul.mubr.msk.f32.gmra.mxu0 %vm674_vm2, %v755_v0  ;;  %7588 = vmatprep.mubr.msk.f32.mxu1 %vm674_vm2, %v793_v1  ;;  %v2378_v0 = vld [vmem:[#allocation2 + $0x13] sm:$0xff] }
 0x110   : > { %7644 = vmatprep.mubr.msk.f32.mxu0 %vm674_vm2, %v756_v2  ;;  %v2808_v1 = vld [vmem:[#allocation2 + $0x14] sm:$0xff] }
 0x111   : > { %v2379_v2 = vld [vmem:[#allocation2 + $0x1b] sm:$0xff] }
 0x112   : > { %7589 = vmatmul.mubr.msk.f32.gmra.mxu1 %vm674_vm2, %v794_v3  ;;  %v2809_v3 = vld [vmem:[#allocation2 + $0x1c] sm:$0xff] }
 0x113   : > { %7645 = vmatmul.mubr.msk.f32.gmra.mxu0 %vm674_vm2, %v757_v4  ;;  %7591 = vmatprep.mubr.msk.f32.mxu1 %vm674_vm2, %v795_v5  ;;  %v2380_v4 = vld [vmem:[#allocation2 + $0x23] sm:$0xff] }
 0x114   : > { %7647 = vmatprep.mubr.msk.f32.mxu0 %vm674_vm2, %v758_v6  ;;  %v8579_v5 = vld [vmem:[%s10916_s3 + $0x20] sm:$0xf]  ;;  %v8584_v6 = vld [vmem:[#allocation2 + $0x24] sm:$0xff] }
 0x116   : > { %7592 = vmatmul.mubr.msk.f32.gmra.mxu1 %vm674_vm2, %v796_v7  ;;  %v2381_v7 = vld [vmem:[#allocation2 + $0x2b] sm:$0xff] }
 0x117   : > { %7648 = vmatmul.mubr.msk.f32.gmra.mxu0 %vm674_vm2, %v759_v8  ;;  %7594 = vmatprep.mubr.msk.f32.mxu1 %vm674_vm2, %v797_v9  ;;  %v8590_v8 = vld [vmem:[#allocation2 + $0x2c] sm:$0xff] }
 0x118   : > { %7650 = vmatprep.mubr.msk.f32.mxu0 %vm674_vm2, %v760_v10  ;;  %v2382_v9 = vld [vmem:[#allocation2 + $0x33] sm:$0xff] }
 0x119   : > { %v8597_v10 = vld [vmem:[#allocation2 + $0x34] sm:$0xff] }
 0x11a   : > { %7595 = vmatmul.mubr.msk.f32.gmra.mxu1 %vm674_vm2, %v798_v11  ;;  %v2383_v11 = vld [vmem:[#allocation2 + $0x3b] sm:$0xff] }
 0x11b   : > { %7651 = vmatmul.mubr.msk.f32.gmra.mxu0 %vm674_vm2, %v761_v12  ;;  %7597 = vmatprep.mubr.msk.f32.mxu1 %vm674_vm2, %v799_v13  ;;  %v8602_v12 = vld [vmem:[#allocation2 + $0x3c] sm:$0xff] }
 0x11c   : > { %7653 = vmatprep.mubr.msk.f32.mxu0 %vm674_vm2, %v762_v14  ;;  %v2384_v13 = vld [vmem:[#allocation2 + $0x43] sm:$0xff] }
 0x11d   : > { %v8607_v14 = vld [vmem:[#allocation2 + $0x44] sm:$0xff] }
 0x11e   : > { %7598 = vmatmul.mubr.msk.f32.gmra.mxu1 %vm674_vm2, %v800_v15  ;;  %v2385_v15 = vld [vmem:[#allocation2 + $0x4b] sm:$0xff] }
 0x11f   : > { %7654 = vmatmul.mubr.msk.f32.gmra.mxu0 %vm674_vm2, %v763_v16  ;;  %7600 = vmatprep.mubr.msk.f32.mxu1 %vm674_vm2, %v801_v19  ;;  %v8612_v16 = vld [vmem:[#allocation2 + $0x4c] sm:$0xff]  ;;  %v2387_v19 = vld [vmem:[#allocation2 + $0x5b] sm:$0xff] }
 0x120   : > { %7656 = vmatprep.mubr.msk.f32.mxu0 %vm674_vm2, %v764_v20  ;;  %v8622_v20 = vld [vmem:[#allocation2 + $0x5c] sm:$0xff] }
 0x122   : > { %7601 = vmatmul.mubr.msk.f32.gmra.mxu1 %vm674_vm2, %v802_v23  ;;  %v8627_v23 = vld [vmem:[#allocation2 + $0x64] sm:$0xff] }
 0x123   : > { %7657 = vmatmul.mubr.msk.f32.gmra.mxu0 %vm674_vm2, %v765_v24  ;;  %7661 = vmatprep.mubr.msk.f32.mxu1 %vm674_vm2, %v1518_v22  ;;  %v2388_v22 = vld [vmem:[#allocation2 + $0x63] sm:$0xff]  ;;  %v2389_v24 = vld [vmem:[#allocation2 + $0x6b] sm:$0xff] }
 0x124   : > { %7717 = vmatprep.mubr.msk.f32.mxu0 %vm674_vm2, %v1948_v25 }
 0x126   : > { %7662 = vmatmul.mubr.msk.f32.vlgmr.msra.gmra.mxu1 %vm674_vm2, %v1519_v26  ;;  %v2390_v26 = vld [vmem:[#allocation2 + $0x73] sm:$0xff] }
 0x127   : > { %7718 = vmatmul.mubr.msk.f32.vlgmr.msra.gmra.mxu0 %vm674_vm2, %v1949_v27  ;;  %7772 = vmatpush3.msk.msra.mxu1 %vm913_vm0, %v8331_v43  ;;  %v1953_v43 = vld [vmem:[#allocation2 + $0x3a] sm:$0xff] }
 0x128   : > { %7664 = vmatprep.mubr.msk.f32.mxu1 %vm674_vm2, %v1948_v25  ;;  %7720 = vmatprep.mubr.msk.f32.mxu0 %vm674_vm2, %v1950_v29  ;;  %v8632_v25 = vld [vmem:[#allocation2 + $0x6c] sm:$0xff] }
 0x129   : > { %7828 = vmatpush3.msk.msra.mxu0 %vm913_vm0, %v8446_v54  ;;  %7883 = vmatprep.subr.msk.mxu1 %vm913_vm0, %v8489_v28  ;;  %v1974_v54 = vld [vmem:[#allocation2 + $0xe2] sm:$0xff] }
 0x12a   : > { %7665 = vmatmul.mubr.msk.f32.gmra.mxu1 %vm674_vm2, %v1949_v27  ;;  %7939 = vmatprep.subr.msk.mxu0 %vm913_vm0, %v8514_v35  ;;  %v8637_v27 = vld [vmem:[#allocation2 + $0x74] sm:$0xff] }
 0x12b   : > { %7721 = vmatmul.mubr.msk.f32.gmra.mxu0 %vm674_vm2, %v1951_v30  ;;  %7667 = vmatprep.mubr.msk.f32.mxu1 %vm674_vm2, %v1950_v29  ;;  %v8642_v29 = vld [vmem:[#allocation2 + $0x7c] sm:$0xff] }
 0x12c   : > { %7723 = vmatprep.mubr.msk.f32.mxu0 %vm674_vm2, %v1952_v31 }
 0x12e   : > { %7668 = vmatmul.mubr.msk.f32.gmra.mxu1 %vm674_vm2, %v1951_v30  ;;  %v2392_v30 = vld [vmem:[#allocation2 + $0x83] sm:$0xff] }
 0x12f   : > { %7724 = vmatmul.mubr.msk.f32.gmra.mxu0 %vm674_vm2, %v1953_v43  ;;  %7670 = vmatprep.mubr.msk.f32.mxu1 %vm674_vm2, %v1952_v31  ;;  %v8647_v31 = vld [vmem:[#allocation2 + $0x84] sm:$0xff] }
 0x130   : > { %7726 = vmatprep.mubr.msk.f32.mxu0 %vm674_vm2, %v1954_v32 }
 0x132   : > { %7671 = vmatmul.mubr.msk.f32.gmra.mxu1 %vm674_vm2, %v1953_v43  ;;  %v2393_v43 = vld [vmem:[#allocation2 + $0x8b] sm:$0xff] }
 0x133   : > { %7727 = vmatmul.mubr.msk.f32.gmra.mxu0 %vm674_vm2, %v1955_v33  ;;  %7673 = vmatprep.mubr.msk.f32.mxu1 %vm674_vm2, %v1954_v32  ;;  %v8652_v32 = vld [vmem:[#allocation2 + $0x8c] sm:$0xff] }
 0x134   : > { %7729 = vmatprep.mubr.msk.f32.mxu0 %vm674_vm2, %v1956_v34 }
 0x136   : > { %7674 = vmatmul.mubr.msk.f32.gmra.mxu1 %vm674_vm2, %v1955_v33  ;;  %v2394_v33 = vld [vmem:[#allocation2 + $0x93] sm:$0xff] }
 0x137   : > { %7730 = vmatmul.mubr.msk.f32.gmra.mxu0 %vm674_vm2, %v1957_v36  ;;  %7676 = vmatprep.mubr.msk.f32.mxu1 %vm674_vm2, %v1956_v34  ;;  %v8657_v34 = vld [vmem:[#allocation2 + $0x94] sm:$0xff] }
 0x138   : > { %7732 = vmatprep.mubr.msk.f32.mxu0 %vm674_vm2, %v1958_v37 }
 0x13a   : > { %7677 = vmatmul.mubr.msk.f32.gmra.mxu1 %vm674_vm2, %v1957_v36  ;;  %v8662_v36 = vld [vmem:[#allocation2 + $0x9c] sm:$0xff] }
 0x13b   : > { %7733 = vmatmul.mubr.msk.f32.gmra.mxu0 %vm674_vm2, %v1959_v38  ;;  %7679 = vmatprep.mubr.msk.f32.mxu1 %vm674_vm2, %v1958_v37  ;;  %v2396_v37 = vld [vmem:[#allocation2 + $0xa3] sm:$0xff] }
 0x13c   : > { %7735 = vmatprep.mubr.msk.f32.mxu0 %vm674_vm2, %v1960_v39 }
 0x13e   : > { %7680 = vmatmul.mubr.msk.f32.gmra.mxu1 %vm674_vm2, %v1959_v38  ;;  %v8667_v38 = vld [vmem:[#allocation2 + $0xa4] sm:$0xff] }
 0x13f   : > { %7736 = vmatmul.mubr.msk.f32.gmra.mxu0 %vm674_vm2, %v1961_v40  ;;  %7682 = vmatprep.mubr.msk.f32.mxu1 %vm674_vm2, %v1960_v39  ;;  %v2397_v39 = vld [vmem:[#allocation2 + $0xab] sm:$0xff] }
 0x140   : > { %7738 = vmatprep.mubr.msk.f32.mxu0 %vm674_vm2, %v1962_v41 }
 0x142   : > { %7683 = vmatmul.mubr.msk.f32.gmra.mxu1 %vm674_vm2, %v1961_v40  ;;  %v8672_v40 = vld [vmem:[#allocation2 + $0xac] sm:$0xff] }
 0x143   : > { %7739 = vmatmul.mubr.msk.f32.gmra.mxu0 %vm674_vm2, %v1963_v44  ;;  %7685 = vmatprep.mubr.msk.f32.mxu1 %vm674_vm2, %v1962_v41  ;;  %v2398_v41 = vld [vmem:[#allocation2 + $0xb3] sm:$0xff] }
 0x144   : > { %7741 = vmatprep.mubr.msk.f32.mxu0 %vm674_vm2, %v1964_v42 }
 0x146   : > { %7686 = vmatmul.mubr.msk.f32.gmra.mxu1 %vm674_vm2, %v1963_v44  ;;  %v8677_v44 = vld [vmem:[#allocation2 + $0xb4] sm:$0xff] }
 0x147   : > { %7742 = vmatmul.mubr.msk.f32.gmra.mxu0 %vm674_vm2, %v1965_v45  ;;  %7688 = vmatprep.mubr.msk.f32.mxu1 %vm674_vm2, %v1964_v42  ;;  %v2399_v42 = vld [vmem:[#allocation2 + $0xbb] sm:$0xff] }
 0x148   : > { %7744 = vmatprep.mubr.msk.f32.mxu0 %vm674_vm2, %v1966_v46 }
 0x14a   : > { %7689 = vmatmul.mubr.msk.f32.gmra.mxu1 %vm674_vm2, %v1965_v45  ;;  %v8682_v45 = vld [vmem:[#allocation2 + $0xbc] sm:$0xff] }
 0x14b   : > { %7745 = vmatmul.mubr.msk.f32.gmra.mxu0 %vm674_vm2, %v1967_v47  ;;  %7691 = vmatprep.mubr.msk.f32.mxu1 %vm674_vm2, %v1966_v46  ;;  %v2400_v46 = vld [vmem:[#allocation2 + $0xc3] sm:$0xff] }
 0x14c   : > { %7747 = vmatprep.mubr.msk.f32.mxu0 %vm674_vm2, %v1968_v48 }
 0x14e   : > { %7692 = vmatmul.mubr.msk.f32.gmra.mxu1 %vm674_vm2, %v1967_v47  ;;  %v8687_v47 = vld [vmem:[#allocation2 + $0xc4] sm:$0xff] }
 0x14f   : > { %7748 = vmatmul.mubr.msk.f32.gmra.mxu0 %vm674_vm2, %v1969_v49  ;;  %7694 = vmatprep.mubr.msk.f32.mxu1 %vm674_vm2, %v1968_v48  ;;  %v2401_v48 = vld [vmem:[#allocation2 + $0xcb] sm:$0xff] }
 0x150   : > { %7750 = vmatprep.mubr.msk.f32.mxu0 %vm674_vm2, %v1970_v50 }
 0x152   : > { %7695 = vmatmul.mubr.msk.f32.gmra.mxu1 %vm674_vm2, %v1969_v49  ;;  %v8692_v49 = vld [vmem:[#allocation2 + $0xcc] sm:$0xff] }
 0x153   : > { %7751 = vmatmul.mubr.msk.f32.gmra.mxu0 %vm674_vm2, %v1971_v51  ;;  %7697 = vmatprep.mubr.msk.f32.mxu1 %vm674_vm2, %v1970_v50  ;;  %v2402_v50 = vld [vmem:[#allocation2 + $0xd3] sm:$0xff] }
 0x154   : > { %7753 = vmatprep.mubr.msk.f32.mxu0 %vm674_vm2, %v1972_v52 }
 0x156   : > { %7698 = vmatmul.mubr.msk.f32.gmra.mxu1 %vm674_vm2, %v1971_v51  ;;  %v8697_v51 = vld [vmem:[#allocation2 + $0xd4] sm:$0xff] }
 0x157   : > { %7754 = vmatmul.mubr.msk.f32.gmra.mxu0 %vm674_vm2, %v1973_v53  ;;  %7700 = vmatprep.mubr.msk.f32.mxu1 %vm674_vm2, %v1972_v52  ;;  %v2403_v52 = vld [vmem:[#allocation2 + $0xdb] sm:$0xff] }
 0x158   : > { %7756 = vmatprep.mubr.msk.f32.mxu0 %vm674_vm2, %v1974_v54 }
 0x15a   : > { %7701 = vmatmul.mubr.msk.f32.gmra.mxu1 %vm674_vm2, %v1973_v53  ;;  %v8702_v53 = vld [vmem:[#allocation2 + $0xdc] sm:$0xff] }
 0x15b   : > { %7757 = vmatmul.mubr.msk.f32.gmra.mxu0 %vm674_vm2, %v1975_v55  ;;  %7703 = vmatprep.mubr.msk.f32.mxu1 %vm674_vm2, %v1974_v54  ;;  %v2404_v54 = vld [vmem:[#allocation2 + $0xe3] sm:$0xff] }
 0x15c   : > { %7759 = vmatprep.mubr.msk.f32.mxu0 %vm674_vm2, %v1976_v56 }
 0x15e   : > { %7704 = vmatmul.mubr.msk.f32.gmra.mxu1 %vm674_vm2, %v1975_v55  ;;  %v8707_v55 = vld [vmem:[#allocation2 + $0xe4] sm:$0xff] }
 0x15f   : > { %7760 = vmatmul.mubr.msk.f32.gmra.mxu0 %vm674_vm2, %v1977_v57  ;;  %7706 = vmatprep.mubr.msk.f32.mxu1 %vm674_vm2, %v1976_v56  ;;  %v8712_v56 = vpop.f32.mrf.mxu1 }
 0x160   : > { %7762 = vmatprep.mubr.msk.f32.mxu0 %vm674_vm2, %v1978_v58 }
 0x162   : > { %7707 = vmatmul.mubr.msk.f32.gmra.mxu1 %vm674_vm2, %v1977_v57  ;;  %v8714_v57 = vpop.f32.mrf.mxu0 }
 0x163   : > { %7763 = vmatmul.mubr.msk.f32.gmra.mxu0 %vm674_vm2, %v1979_v59  ;;  %7709 = vmatprep.mubr.msk.f32.mxu1 %vm674_vm2, %v1978_v58  ;;  %v2405_v58 = vld [vmem:[#allocation2 + $0xeb] sm:$0xff] }
 0x164   : > { %7765 = vmatprep.mubr.msk.f32.mxu0 %vm674_vm2, %v1980_v60 }
 0x166   : > { %7710 = vmatmul.mubr.msk.f32.gmra.mxu1 %vm674_vm2, %v1979_v59  ;;  %v8716_v59 = vld [vmem:[#allocation2 + $0xec] sm:$0xff] }
 0x167   : > { %7766 = vmatmul.mubr.msk.f32.gmra.mxu0 %vm674_vm2, %v1981_v62  ;;  %7712 = vmatprep.mubr.msk.f32.mxu1 %vm674_vm2, %v1980_v60 }
 0x168   : > { %7768 = vmatprep.mubr.msk.f32.mxu0 %vm674_vm2, %v1982_v61 }
 0x16a   : > { %7713 = vmatmul.mubr.msk.f32.gmra.mxu1 %vm674_vm2, %v1981_v62  ;;  %v2406_v62 = vld [vmem:[#allocation2 + $0xf3] sm:$0xff] }
 0x16b   : > { %7769 = vmatmul.mubr.msk.f32.gmra.mxu0 %vm674_vm2, %v1983_v63  ;;  %7773 = vmatprep.mubr.msk.f32.mxu1 %vm674_vm2, %v2378_v0  ;;  %v8721_v63 = vld [vmem:[#allocation2 + $0xf4] sm:$0xff] }
 0x16c   : > { %7829 = vmatprep.mubr.msk.f32.mxu0 %vm674_vm2, %v2808_v1 }
 0x16e   : > { %7774 = vmatmul.mubr.msk.f32.vlgmr.msra.gmra.mxu1 %vm674_vm2, %v2379_v2 }
 0x16f   : > { %7830 = vmatmul.mubr.msk.f32.vlgmr.msra.gmra.mxu0 %vm674_vm2, %v2809_v3  ;;  %7884 = vmatpush3.msk.msra.mxu1 %vm913_vm0, %v8489_v28  ;;  %v2391_v28 = vld [vmem:[#allocation2 + $0x7b] sm:$0xff] }
 0x170   : > { %7776 = vmatprep.mubr.msk.f32.mxu1 %vm674_vm2, %v2380_v4  ;;  %7832 = vmatprep.mubr.msk.f32.mxu0 %vm674_vm2, %v8584_v6  ;;  %v2407_v4 = vld [vmem:[#allocation2 + $0xfb] sm:$0xff] }
 0x171   : > { %7940 = vmatpush3.msk.msra.mxu0 %vm913_vm0, %v8514_v35  ;;  %7995 = vmatprep.subr.msk.mxu1 %vm913_vm0, %v8579_v5  ;;  %v2395_v35 = vld [vmem:[#allocation2 + $0x9b] sm:$0xff] }
 0x172   : > { %7777 = vmatmul.mubr.msk.f32.gmra.mxu1 %vm674_vm2, %v2381_v7  ;;  %v8730_v7 = vld [vmem:[#allocation2 + $0xfc] sm:$0xff] }
 0x173   : > { %7833 = vmatmul.mubr.msk.f32.gmra.mxu0 %vm674_vm2, %v8590_v8  ;;  %7779 = vmatprep.mubr.msk.f32.mxu1 %vm674_vm2, %v2382_v9 }
 0x174   : > { %7835 = vmatprep.mubr.msk.f32.mxu0 %vm674_vm2, %v8597_v10 }
 0x176   : > { %7780 = vmatmul.mubr.msk.f32.gmra.mxu1 %vm674_vm2, %v2383_v11 }
 0x177   : > { %7836 = vmatmul.mubr.msk.f32.gmra.mxu0 %vm674_vm2, %v8602_v12  ;;  %7782 = vmatprep.mubr.msk.f32.mxu1 %vm674_vm2, %v2384_v13  ;;  %v2408_v13 = vld [vmem:[#allocation2 + $0x103] sm:$0xff] }
 0x178   : > { %7838 = vmatprep.mubr.msk.f32.mxu0 %vm674_vm2, %v8607_v14 }
 0x17a   : > { %7783 = vmatmul.mubr.msk.f32.gmra.mxu1 %vm674_vm2, %v2385_v15  ;;  %v8735_v15 = vld [vmem:[#allocation2 + $0x104] sm:$0xff] }
 0x17b   : > { %7839 = vmatmul.mubr.msk.f32.gmra.mxu0 %vm674_vm2, %v8612_v16  ;;  %7785 = vmatprep.mubr.msk.f32.mxu1 %vm674_vm2, %v2386_v17 }
 0x17c   : > { %7841 = vmatprep.mubr.msk.f32.mxu0 %vm674_vm2, %v8617_v18 }
 0x17e   : > { %7786 = vmatmul.mubr.msk.f32.gmra.mxu1 %vm674_vm2, %v2387_v19 }
 0x17f   : > { %7842 = vmatmul.mubr.msk.f32.gmra.mxu0 %vm674_vm2, %v8622_v20  ;;  %7788 = vmatprep.mubr.msk.f32.mxu1 %vm674_vm2, %v2388_v22 }
 0x180   : > { %7844 = vmatprep.mubr.msk.f32.mxu0 %vm674_vm2, %v8627_v23 }
 0x182   : > { %7789 = vmatmul.mubr.msk.f32.gmra.mxu1 %vm674_vm2, %v2389_v24 }
 0x183   : > { %7845 = vmatmul.mubr.msk.f32.gmra.mxu0 %vm674_vm2, %v8632_v25  ;;  %7791 = vmatprep.mubr.msk.f32.mxu1 %vm674_vm2, %v2390_v26  ;;  %v2409_v26 = vld [vmem:[#allocation2 + $0x10b] sm:$0xff] }
 0x184   : > { %7847 = vmatprep.mubr.msk.f32.mxu0 %vm674_vm2, %v8637_v27 }
 0x186   : > { %7792 = vmatmul.mubr.msk.f32.gmra.mxu1 %vm674_vm2, %v2391_v28  ;;  %v8744_v28 = vld [vmem:[#allocation2 + $0x10c] sm:$0xff] }
 0x187   : > { %7848 = vmatmul.mubr.msk.f32.gmra.mxu0 %vm674_vm2, %v8642_v29  ;;  %7794 = vmatprep.mubr.msk.f32.mxu1 %vm674_vm2, %v2392_v30 }
 0x188   : > { %7850 = vmatprep.mubr.msk.f32.mxu0 %vm674_vm2, %v8647_v31 }
 0x18a   : > { %7795 = vmatmul.mubr.msk.f32.gmra.mxu1 %vm674_vm2, %v2393_v43 }
 0x18b   : > { %7851 = vmatmul.mubr.msk.f32.gmra.mxu0 %vm674_vm2, %v8652_v32  ;;  %7797 = vmatprep.mubr.msk.f32.mxu1 %vm674_vm2, %v2394_v33  ;;  %v2410_v33 = vld [vmem:[#allocation2 + $0x113] sm:$0xff] }
 0x18c   : > { %7853 = vmatprep.mubr.msk.f32.mxu0 %vm674_vm2, %v8657_v34 }
 0x18e   : > { %7798 = vmatmul.mubr.msk.f32.gmra.mxu1 %vm674_vm2, %v2395_v35  ;;  %v8749_v35 = vld [vmem:[#allocation2 + $0x114] sm:$0xff] }
 0x18f   : > { %7854 = vmatmul.mubr.msk.f32.gmra.mxu0 %vm674_vm2, %v8662_v36  ;;  %7800 = vmatprep.mubr.msk.f32.mxu1 %vm674_vm2, %v2396_v37 }
 0x190   : > { %7856 = vmatprep.mubr.msk.f32.mxu0 %vm674_vm2, %v8667_v38 }
 0x192   : > { %7801 = vmatmul.mubr.msk.f32.gmra.mxu1 %vm674_vm2, %v2397_v39 }
 0x193   : > { %7857 = vmatmul.mubr.msk.f32.gmra.mxu0 %vm674_vm2, %v8672_v40  ;;  %7803 = vmatprep.mubr.msk.f32.mxu1 %vm674_vm2, %v2398_v41 }
 0x194   : > { %7859 = vmatprep.mubr.msk.f32.mxu0 %vm674_vm2, %v8677_v44 }
 0x196   : > { %7804 = vmatmul.mubr.msk.f32.gmra.mxu1 %vm674_vm2, %v2399_v42 }
 0x197   : > { %7860 = vmatmul.mubr.msk.f32.gmra.mxu0 %vm674_vm2, %v8682_v45  ;;  %7806 = vmatprep.mubr.msk.f32.mxu1 %vm674_vm2, %v2400_v46  ;;  %v2411_v46 = vld [vmem:[#allocation2 + $0x11b] sm:$0xff] }
 0x198   : > { %7862 = vmatprep.mubr.msk.f32.mxu0 %vm674_vm2, %v8687_v47 }
 0x19a   : > { %7807 = vmatmul.mubr.msk.f32.gmra.mxu1 %vm674_vm2, %v2401_v48  ;;  %v8758_v48 = vld [vmem:[#allocation2 + $0x11c] sm:$0xff] }
 0x19b   : > { %7863 = vmatmul.mubr.msk.f32.gmra.mxu0 %vm674_vm2, %v8692_v49  ;;  %7809 = vmatprep.mubr.msk.f32.mxu1 %vm674_vm2, %v2402_v50 }
 0x19c   : > { %7865 = vmatprep.mubr.msk.f32.mxu0 %vm674_vm2, %v8697_v51 }
 0x19e   : > { %7810 = vmatmul.mubr.msk.f32.gmra.mxu1 %vm674_vm2, %v2403_v52 }
 0x19f   : > { %7866 = vmatmul.mubr.msk.f32.gmra.mxu0 %vm674_vm2, %v8702_v53  ;;  %7812 = vmatprep.mubr.msk.f32.mxu1 %vm674_vm2, %v2404_v54  ;;  %v2412_v54 = vld [vmem:[#allocation2 + $0x123] sm:$0xff] }
 0x1a0   : > { %7868 = vmatprep.mubr.msk.f32.mxu0 %vm674_vm2, %v8707_v55 }
 0x1a2   : > { %v7554_v60 = vpop.f32.mrf.mxu1  ;;  %7813 = vmatmul.mubr.msk.f32.gmra.mxu1 %vm674_vm2, %v2405_v58  ;;  %v8763_v58 = vld [vmem:[#allocation2 + $0x124] sm:$0xff] }
 0x1a3   : > { %v7610_v61 = vpop.f32.mrf.mxu0  ;;  %7869 = vmatmul.mubr.msk.f32.gmra.mxu0 %vm674_vm2, %v8716_v59  ;;  %7815 = vmatprep.mubr.msk.f32.mxu1 %vm674_vm2, %v2406_v62 }
 0x1a4   : > { %v8723_v0 = vadd.f32 %v7610_v61, %v7554_v60  ;;  %7871 = vmatprep.mubr.msk.f32.mxu0 %vm674_vm2, %v8721_v63  ;;  %v993_v1 = vpop.f32.mrf.mxu1 }
 0x1a5   : > { %v1349_v2 = vpop.f32.mrf.mxu0 }
 0x1a6   : > { %v8728_v3 = vadd.f32 %v1349_v2, %v993_v1  ;;  %v7557_v9 = vpop.f32.mrf.mxu1  ;;  %7816 = vmatmul.mubr.msk.f32.gmra.mxu1 %vm674_vm2, %v2407_v4  ;;  %v2413_v2 = vld [vmem:[#allocation2 + $0x12b] sm:$0xff] }
 0x1a7   : > { %v7613_v11 = vpop.f32.mrf.mxu0  ;;  %7872 = vmatmul.mubr.msk.f32.gmra.mxu0 %vm674_vm2, %v8730_v7  ;;  %7818 = vmatprep.mubr.msk.f32.mxu1 %vm674_vm2, %v2408_v13  ;;  %v8772_v4 = vld [vmem:[#allocation2 + $0x12c] sm:$0xff] }
 0x1a8   : > { %v8737_v17 = vadd.f32 %v7613_v11, %v7557_v9  ;;  %7874 = vmatprep.mubr.msk.f32.mxu0 %vm674_vm2, %v8735_v15  ;;  %v1003_v19 = vpop.f32.mrf.mxu1  ;;  %v3668_v13 = vld [vmem:[#allocation2 + $0x25] sm:$0xff] }
 0x1a9   : > { %v1359_v22 = vpop.f32.mrf.mxu0 }
 0x1aa   : > { %v8742_v24 = vadd.f32 %v1359_v22, %v1003_v19  ;;  %v7560_v30 = vpop.f32.mrf.mxu1  ;;  %7819 = vmatmul.mubr.msk.f32.gmra.mxu1 %vm674_vm2, %v2409_v26 }
 0x1ab   : > { %v7616_v43 = vpop.f32.mrf.mxu0  ;;  %7875 = vmatmul.mubr.msk.f32.gmra.mxu0 %vm674_vm2, %v8744_v28  ;;  %7821 = vmatprep.mubr.msk.f32.mxu1 %vm674_vm2, %v2410_v33 }
 0x1ac   : > { %v8751_v37 = vadd.f32 %v7616_v43, %v7560_v30  ;;  %7877 = vmatprep.mubr.msk.f32.mxu0 %vm674_vm2, %v8749_v35  ;;  %v1013_v39 = vpop.f32.mrf.mxu1  ;;  %v3669_v43 = vld [vmem:[#allocation2 + $0x2d] sm:$0xff] }
 0x1ad   : > { %v1369_v41 = vpop.f32.mrf.mxu0 }
 0x1ae   : > { %v8756_v42 = vadd.f32 %v1369_v41, %v1013_v39  ;;  %v7563_v50 = vpop.f32.mrf.mxu1  ;;  %7822 = vmatmul.mubr.msk.f32.gmra.mxu1 %vm674_vm2, %v2411_v46 }
 0x1af   : > { %v7619_v52 = vpop.f32.mrf.mxu0  ;;  %7878 = vmatmul.mubr.msk.f32.gmra.mxu0 %vm674_vm2, %v8758_v48  ;;  %7824 = vmatprep.mubr.msk.f32.mxu1 %vm674_vm2, %v2412_v54  ;;  %v3671_v54 = vld [vmem:[#allocation2 + $0x3d] sm:$0xff] }
 0x1b0   : > { %v8765_v60 = vadd.f32 %v7619_v52, %v7563_v50  ;;  %7880 = vmatprep.mubr.msk.f32.mxu0 %vm674_vm2, %v8763_v58  ;;  %v1023_v61 = vpop.f32.mrf.mxu1 }
 0x1b1   : > { %v1379_v62 = vpop.f32.mrf.mxu0 }
 0x1b2   : > { %v8770_v1 = vadd.f32 %v1379_v62, %v1023_v61  ;;  %v7566_v9 = vpop.f32.mrf.mxu1  ;;  %7825 = vmatmul.mubr.msk.f32.gmra.mxu1 %vm674_vm2, %v2413_v2  ;;  %v3672_v62 = vld [vmem:[#allocation2 + $0x45] sm:$0xff] }
 0x1b3   : > { %v7622_v11 = vpop.f32.mrf.mxu0  ;;  %7881 = vmatmul.mubr.msk.f32.gmra.mxu0 %vm674_vm2, %v8772_v4  ;;  %7885 = vmatprep.mubr.msk.f32.mxu1 %vm674_vm2, %v8584_v6  ;;  %v3670_v6 = vld [vmem:[#allocation2 + $0x35] sm:$0xff] }
 0x1b4   : > { %v8777_v19 = vadd.f32 %v7622_v11, %v7566_v9  ;;  %7941 = vmatprep.mubr.msk.f32.mxu0 %vm674_vm2, %v3668_v13  ;;  %v1033_v22 = vpop.f32.mrf.mxu1  ;;  %v3673_v11 = vld [vmem:[#allocation2 + $0x4d] sm:$0xff] }
 0x1b5   : > { %v1389_v26 = vpop.f32.mrf.mxu0 }
 0x1b6   : > { %v8782_v30 = vadd.f32 %v1389_v26, %v1033_v22  ;;  %v7569_v33 = vpop.f32.mrf.mxu1  ;;  %7886 = vmatmul.mubr.msk.f32.vlgmr.msra.gmra.mxu1 %vm674_vm2, %v8590_v8 }
 0x1b7   : > { %v7625_v39 = vpop.f32.mrf.mxu0  ;;  %7942 = vmatmul.mubr.msk.f32.vlgmr.msra.gmra.mxu0 %vm674_vm2, %v3669_v43  ;;  %7996 = vmatpush3.msk.msra.mxu1 %vm913_vm0, %v8579_v5 }
 0x1b8   : > { %v8787_v41 = vadd.f32 %v7625_v39, %v7569_v33  ;;  %7888 = vmatprep.mubr.msk.f32.mxu1 %vm674_vm2, %v8597_v10  ;;  %7944 = vmatprep.mubr.msk.f32.mxu0 %vm674_vm2, %v3670_v6  ;;  %v1043_v46 = vpop.f32.mrf.mxu1  ;;  %v3675_v39 = vld [vmem:[#allocation2 + $0x5d] sm:$0xff] }
 0x1b9   : > { %v1399_v50 = vpop.f32.mrf.mxu0 }
 0x1ba   : > { %v8794_v52 = vadd.f32 %v1399_v50, %v1043_v46  ;;  %v7572_v61 = vpop.f32.mrf.mxu1  ;;  %7889 = vmatmul.mubr.msk.f32.gmra.mxu1 %vm674_vm2, %v8602_v12  ;;  %v3674_v12 = vld [vmem:[#allocation2 + $0x55] sm:$0xff] }
 0x1bb   : > { %v7628_v8 = vpop.f32.mrf.mxu0  ;;  %7945 = vmatmul.mubr.msk.f32.gmra.mxu0 %vm674_vm2, %v3671_v54  ;;  %7891 = vmatprep.mubr.msk.f32.mxu1 %vm674_vm2, %v8607_v14 }
 0x1bc   : > { %v8799_v5 = vadd.f32 %v7628_v8, %v7572_v61  ;;  %7947 = vmatprep.mubr.msk.f32.mxu0 %vm674_vm2, %v3672_v62  ;;  %v1053_v10 = vpop.f32.mrf.mxu1  ;;  %v3677_v8 = vld [vmem:[#allocation2 + $0x6d] sm:$0xff] }
 0x1bd   : > { %v1409_v2 = vpop.f32.mrf.mxu0 }
 0x1be   : > { %v8804_v9 = vadd.f32 %v1409_v2, %v1053_v10  ;;  %v7575_v13 = vpop.f32.mrf.mxu1  ;;  %7892 = vmatmul.mubr.msk.f32.gmra.mxu1 %vm674_vm2, %v8612_v16  ;;  %v3676_v16 = vld [vmem:[#allocation2 + $0x65] sm:$0xff] }
 0x1bf   : > { %v7631_v22 = vpop.f32.mrf.mxu0  ;;  %7948 = vmatmul.mubr.msk.f32.gmra.mxu0 %vm674_vm2, %v3673_v11  ;;  %7894 = vmatprep.mubr.msk.f32.mxu1 %vm674_vm2, %v8617_v18 }
 0x1c0   : > { %v8809_v26 = vadd.f32 %v7631_v22, %v7575_v13  ;;  %7950 = vmatprep.mubr.msk.f32.mxu0 %vm674_vm2, %v3674_v12  ;;  %v1063_v14 = vpop.f32.mrf.mxu1  ;;  %v3679_v22 = vld [vmem:[#allocation2 + $0x7d] sm:$0xff] }
 0x1c1   : > { %v1419_v43 = vpop.f32.mrf.mxu0 }
 0x1c2   : > { %v8814_v33 = vadd.f32 %v1419_v43, %v1063_v14  ;;  %v7578_v6 = vpop.f32.mrf.mxu1  ;;  %7895 = vmatmul.mubr.msk.f32.gmra.mxu1 %vm674_vm2, %v8622_v20  ;;  %v3678_v20 = vld [vmem:[#allocation2 + $0x75] sm:$0xff] }
 0x1c3   : > { %v7634_v46 = vpop.f32.mrf.mxu0  ;;  %7951 = vmatmul.mubr.msk.f32.gmra.mxu0 %vm674_vm2, %v3675_v39  ;;  %7897 = vmatprep.mubr.msk.f32.mxu1 %vm674_vm2, %v8627_v23 }
 0x1c4   : > { %v8819_v50 = vadd.f32 %v7634_v46, %v7578_v6  ;;  %7953 = vmatprep.mubr.msk.f32.mxu0 %vm674_vm2, %v3676_v16  ;;  %v1073_v18 = vpop.f32.mrf.mxu1  ;;  %v3681_v46 = vld [vmem:[#allocation2 + $0x8d] sm:$0xff] }
 0x1c5   : > { %v1429_v54 = vpop.f32.mrf.mxu0 }
 0x1c6   : > { %v8824_v61 = vadd.f32 %v1429_v54, %v1073_v18  ;;  %v7581_v62 = vpop.f32.mrf.mxu1  ;;  %7898 = vmatmul.mubr.msk.f32.gmra.mxu1 %vm674_vm2, %v8632_v25  ;;  %v3680_v25 = vld [vmem:[#allocation2 + $0x85] sm:$0xff] }
 0x1c7   : > { %v7637_v10 = vpop.f32.mrf.mxu0  ;;  %7954 = vmatmul.mubr.msk.f32.gmra.mxu0 %vm674_vm2, %v3677_v8  ;;  %7900 = vmatprep.mubr.msk.f32.mxu1 %vm674_vm2, %v8637_v27 }
 0x1c8   : > { %v8829_v2 = vadd.f32 %v7637_v10, %v7581_v62  ;;  %7956 = vmatprep.mubr.msk.f32.mxu0 %vm674_vm2, %v3678_v20  ;;  %v1083_v23 = vpop.f32.mrf.mxu1  ;;  %v3683_v10 = vld [vmem:[#allocation2 + $0x9d] sm:$0xff] }
 0x1c9   : > { %v1439_v11 = vpop.f32.mrf.mxu0 }
 0x1ca   : > { %v8834_v13 = vadd.f32 %v1439_v11, %v1083_v23  ;;  %v7584_v12 = vpop.f32.mrf.mxu1  ;;  %7901 = vmatmul.mubr.msk.f32.gmra.mxu1 %vm674_vm2, %v8642_v29  ;;  %v3682_v29 = vld [vmem:[#allocation2 + $0x95] sm:$0xff] }
 0x1cb   : > { %v7640_v14 = vpop.f32.mrf.mxu0  ;;  %7957 = vmatmul.mubr.msk.f32.gmra.mxu0 %vm674_vm2, %v3679_v22  ;;  %7903 = vmatprep.mubr.msk.f32.mxu1 %vm674_vm2, %v8647_v31 }
 0x1cc   : > { %v8839_v43 = vadd.f32 %v7640_v14, %v7584_v12  ;;  %7959 = vmatprep.mubr.msk.f32.mxu0 %vm674_vm2, %v3680_v25  ;;  %v1093_v27 = vpop.f32.mrf.mxu1  ;;  %v3685_v14 = vld [vmem:[#allocation2 + $0xad] sm:$0xff] }
 0x1cd   : > { %v1449_v39 = vpop.f32.mrf.mxu0 }
 0x1ce   : > { %v8844_v6 = vadd.f32 %v1449_v39, %v1093_v27  ;;  %v7587_v16 = vpop.f32.mrf.mxu1  ;;  %7904 = vmatmul.mubr.msk.f32.gmra.mxu1 %vm674_vm2, %v8652_v32  ;;  %v3684_v32 = vld [vmem:[#allocation2 + $0xa5] sm:$0xff] }
 0x1cf   : > { %v7643_v18 = vpop.f32.mrf.mxu0  ;;  %7960 = vmatmul.mubr.msk.f32.gmra.mxu0 %vm674_vm2, %v3681_v46  ;;  %7906 = vmatprep.mubr.msk.f32.mxu1 %vm674_vm2, %v8657_v34 }
 0x1d0   : > { %v8849_v54 = vadd.f32 %v7643_v18, %v7587_v16  ;;  %7962 = vmatprep.mubr.msk.f32.mxu0 %vm674_vm2, %v3682_v29  ;;  %v1103_v31 = vpop.f32.mrf.mxu1  ;;  %v3687_v18 = vld [vmem:[#allocation2 + $0xbd] sm:$0xff] }
 0x1d1   : > { %v1459_v8 = vpop.f32.mrf.mxu0 }
 0x1d2   : > { %v8854_v62 = vadd.f32 %v1459_v8, %v1103_v31  ;;  %v7590_v20 = vpop.f32.mrf.mxu1  ;;  %7907 = vmatmul.mubr.msk.f32.gmra.mxu1 %vm674_vm2, %v8662_v36  ;;  %v3686_v36 = vld [vmem:[#allocation2 + $0xb5] sm:$0xff] }
 0x1d3   : > { %v7646_v23 = vpop.f32.mrf.mxu0  ;;  %7963 = vmatmul.mubr.msk.f32.gmra.mxu0 %vm674_vm2, %v3683_v10  ;;  %7909 = vmatprep.mubr.msk.f32.mxu1 %vm674_vm2, %v8667_v38 }
 0x1d4   : > { %v8859_v11 = vadd.f32 %v7646_v23, %v7590_v20  ;;  %7965 = vmatprep.mubr.msk.f32.mxu0 %vm674_vm2, %v3684_v32  ;;  %v1113_v34 = vpop.f32.mrf.mxu1  ;;  %v3689_v23 = vld [vmem:[#allocation2 + $0xcd] sm:$0xff] }
 0x1d5   : > { %v1469_v22 = vpop.f32.mrf.mxu0 }
 0x1d6   : > { %v8864_v12 = vadd.f32 %v1469_v22, %v1113_v34  ;;  %v7593_v25 = vpop.f32.mrf.mxu1  ;;  %7910 = vmatmul.mubr.msk.f32.gmra.mxu1 %vm674_vm2, %v8672_v40  ;;  %v3688_v40 = vld [vmem:[#allocation2 + $0xc5] sm:$0xff] }
 0x1d7   : > { %v7649_v27 = vpop.f32.mrf.mxu0  ;;  %7966 = vmatmul.mubr.msk.f32.gmra.mxu0 %vm674_vm2, %v3685_v14  ;;  %7912 = vmatprep.mubr.msk.f32.mxu1 %vm674_vm2, %v8677_v44 }
 0x1d8   : > { %v8869_v39 = vadd.f32 %v7649_v27, %v7593_v25  ;;  %7968 = vmatprep.mubr.msk.f32.mxu0 %vm674_vm2, %v3686_v36  ;;  %v1123_v38 = vpop.f32.mrf.mxu1  ;;  %v3691_v25 = vld [vmem:[#allocation2 + $0xdd] sm:$0xff] }
 0x1d9   : > { %v1479_v46 = vpop.f32.mrf.mxu0 }
 0x1da   : > { %v8874_v16 = vadd.f32 %v1479_v46, %v1123_v38  ;;  %v7596_v29 = vpop.f32.mrf.mxu1  ;;  %7913 = vmatmul.mubr.msk.f32.gmra.mxu1 %vm674_vm2, %v8682_v45  ;;  %v3690_v45 = vld [vmem:[#allocation2 + $0xd5] sm:$0xff] }
 0x1db   : > { %v7652_v31 = vpop.f32.mrf.mxu0  ;;  %7969 = vmatmul.mubr.msk.f32.gmra.mxu0 %vm674_vm2, %v3687_v18  ;;  %7915 = vmatprep.mubr.msk.f32.mxu1 %vm674_vm2, %v8687_v47  ;;  %v3693_v18 = vld [vmem:[#allocation2 + $0xed] sm:$0xff] }
 0x1dc   : > { %v8879_v8 = vadd.f32 %v7652_v31, %v7596_v29  ;;  %7971 = vmatprep.mubr.msk.f32.mxu0 %vm674_vm2, %v3688_v40  ;;  %v1133_v44 = vpop.f32.mrf.mxu1 }
 0x1dd   : > { %v1489_v10 = vpop.f32.mrf.mxu0 }
 0x1de   : > { %v8884_v20 = vadd.f32 %v1489_v10, %v1133_v44  ;;  %v7599_v32 = vpop.f32.mrf.mxu1  ;;  %7916 = vmatmul.mubr.msk.f32.gmra.mxu1 %vm674_vm2, %v8692_v49  ;;  %v3692_v49 = vld [vmem:[#allocation2 + $0xe5] sm:$0xff] }
 0x1df   : > { %v7655_v34 = vpop.f32.mrf.mxu0  ;;  %7972 = vmatmul.mubr.msk.f32.gmra.mxu0 %vm674_vm2, %v3689_v23  ;;  %7918 = vmatprep.mubr.msk.f32.mxu1 %vm674_vm2, %v8697_v51  ;;  %v3695_v23 = vld [vmem:[#allocation2 + $0xfd] sm:$0xff] }
 0x1e0   : > { %v8889_v22 = vadd.f32 %v7655_v34, %v7599_v32  ;;  %7974 = vmatprep.mubr.msk.f32.mxu0 %vm674_vm2, %v3690_v45  ;;  %v8894_v47 = vpop.f32.mrf.mxu1 }
 0x1e1   : > { %v8896_v14 = vpop.f32.mrf.mxu0 }
 0x1e2   : > { %v7602_v27 = vpop.f32.mrf.mxu1  ;;  %7919 = vmatmul.mubr.msk.f32.gmra.mxu1 %vm674_vm2, %v8702_v53  ;;  %v3694_v53 = vld [vmem:[#allocation2 + $0xf5] sm:$0xff] }
 0x1e3   : > { %v7658_v36 = vpop.f32.mrf.mxu0  ;;  %7975 = vmatmul.mubr.msk.f32.gmra.mxu0 %vm674_vm2, %v3691_v25  ;;  %7921 = vmatprep.mubr.msk.f32.mxu1 %vm674_vm2, %v8707_v55 }
 0x1e4   : > { %v8901_v38 = vadd.f32 %v7658_v36, %v7602_v27  ;;  %7977 = vmatprep.mubr.msk.f32.mxu0 %vm674_vm2, %v3692_v49  ;;  %v8906_v51 = vpop.f32.mrf.mxu1  ;;  %v3697_v36 = vld [vmem:[#allocation2 + $0x10d] sm:$0xff] }
 0x1e5   : > { %v8908_v46 = vpop.f32.mrf.mxu0 }
 0x1e6   : > { %v7663_v29 = vpop.f32.mrf.mxu1  ;;  %7922 = vmatmul.mubr.msk.f32.gmra.mxu1 %vm674_vm2, %v8716_v59 }
 0x1e7   : > { %v7719_v31 = vpop.f32.mrf.mxu0  ;;  %7978 = vmatmul.mubr.msk.f32.gmra.mxu0 %vm674_vm2, %v3693_v18  ;;  %v1913_v40 = vadd.f32 %v7663_v29, %v8476_v21  ;;  %7924 = vmatprep.mubr.msk.f32.mxu1 %vm674_vm2, %v8721_v63  ;;  %v3696_v21 = vld [vmem:[#allocation2 + $0x105] sm:$0xff] }
 0x1e8   : > { %7980 = vmatprep.mubr.msk.f32.mxu0 %vm674_vm2, %v3694_v53  ;;  %v8917_v55 = vpop.f32.mrf.mxu1  ;;  %v3699_v53 = vld [vmem:[#allocation2 + $0x11d] sm:$0xff] }
 0x1e9   : > { %v8919_v44 = vpop.f32.mrf.mxu0  ;;  %v8921_v10 = vadd.f32 %v7719_v31, %v1913_v40 }
 0x1ea   : > { %v7666_v32 = vpop.f32.mrf.mxu1  ;;  %7925 = vmatmul.mubr.msk.f32.gmra.mxu1 %vm674_vm2, %v8730_v7 }
 0x1eb   : > { %v7722_v34 = vpop.f32.mrf.mxu0  ;;  %7981 = vmatmul.mubr.msk.f32.gmra.mxu0 %vm674_vm2, %v3695_v23  ;;  %v1915_v59 = vadd.f32 %v7666_v32, %v8723_v0  ;;  %7927 = vmatprep.mubr.msk.f32.mxu1 %vm674_vm2, %v8735_v15  ;;  %v3698_v0 = vld [vmem:[#allocation2 + $0x115] sm:$0xff] }
 0x1ec   : > { %7983 = vmatprep.mubr.msk.f32.mxu0 %vm674_vm2, %v3696_v21  ;;  %v1743_v63 = vpop.f32.mrf.mxu1 }
 0x1ed   : > { %v8930_v45 = vpop.f32.mrf.mxu0  ;;  %v8932_v25 = vadd.f32 %v7722_v34, %v1915_v59  ;;  %v8935_v27 = vadd.f32 %v1743_v63, %v8728_v3  ;;  %v3702_v34 = vld [vmem:[#allocation2 + $0x135] sm:$0xff] }
 0x1ee   : > { %v7669_v7 = vpop.f32.mrf.mxu1  ;;  %7928 = vmatmul.mubr.msk.f32.gmra.mxu1 %vm674_vm2, %v8744_v28 }
 0x1ef   : > { %v7725_v49 = vpop.f32.mrf.mxu0  ;;  %7984 = vmatmul.mubr.msk.f32.gmra.mxu0 %vm674_vm2, %v3697_v36  ;;  %v1917_v15 = vadd.f32 %v7669_v7, %v8737_v17  ;;  %7930 = vmatprep.mubr.msk.f32.mxu1 %vm674_vm2, %v8749_v35  ;;  %v3700_v17 = vld [vmem:[#allocation2 + $0x125] sm:$0xff]  ;;  %v3703_v7 = vld [vmem:[#allocation2 + $0x13d] sm:$0xff] }
 0x1f0   : > { %7986 = vmatprep.mubr.msk.f32.mxu0 %vm674_vm2, %v3698_v0  ;;  %v1753_v18 = vpop.f32.mrf.mxu1 }
 0x1f1   : > { %v8944_v29 = vpop.f32.mrf.mxu0  ;;  %v8946_v3 = vadd.f32 %v7725_v49, %v1917_v15  ;;  %v8949_v31 = vadd.f32 %v1753_v18, %v8742_v24  ;;  %v3272_v24 = vld [vmem:[#allocation2 + $0x134] sm:$0xff] }
 0x1f2   : > { %v7672_v28 = vpop.f32.mrf.mxu1  ;;  %7931 = vmatmul.mubr.msk.f32.gmra.mxu1 %vm674_vm2, %v8758_v48  ;;  %v3701_v48 = vld [vmem:[#allocation2 + $0x12d] sm:$0xff] }
 0x1f3   : > { %v7728_v40 = vpop.f32.mrf.mxu0  ;;  %7987 = vmatmul.mubr.msk.f32.gmra.mxu0 %vm674_vm2, %v3699_v53  ;;  %v1919_v35 = vadd.f32 %v7672_v28, %v8751_v37  ;;  %7933 = vmatprep.mubr.msk.f32.mxu1 %vm674_vm2, %v8763_v58  ;;  %v3273_v58 = vld [vmem:[#allocation2 + $0x13c] sm:$0xff]  ;;  %v4098_v53 = vld [vmem:[#allocation2 + $0x26] sm:$0xff] }
 0x1f4   : > { %7989 = vmatprep.mubr.msk.f32.mxu0 %vm674_vm2, %v3700_v17  ;;  %v1763_v23 = vpop.f32.mrf.mxu1 }
 0x1f5   : > { %v8958_v32 = vpop.f32.mrf.mxu0  ;;  %v8960_v21 = vadd.f32 %v7728_v40, %v1919_v35  ;;  %v8963_v59 = vadd.f32 %v1763_v23, %v8756_v42 }
 0x1f6   : > { %v7675_v63 = vpop.f32.mrf.mxu1  ;;  %7934 = vmatmul.mubr.msk.f32.gmra.mxu1 %vm674_vm2, %v8772_v4 }
 0x1f7   : > { %v7731_v36 = vpop.f32.mrf.mxu0  ;;  %7990 = vmatmul.mubr.msk.f32.gmra.mxu0 %vm674_vm2, %v3701_v48  ;;  %v1921_v37 = vadd.f32 %v7675_v63, %v8765_v60  ;;  %7936 = vmatprep.mubr.msk.f32.mxu1 %vm674_vm2, %v3272_v24 }
 0x1f8   : > { %7992 = vmatprep.mubr.msk.f32.mxu0 %vm674_vm2, %v3702_v34  ;;  %v1773_v49 = vpop.f32.mrf.mxu1  ;;  %v4100_v34 = vld [vmem:[#allocation2 + $0x36] sm:$0xff] }
 0x1f9   : > { %v8971_v0 = vpop.f32.mrf.mxu0  ;;  %v8973_v42 = vadd.f32 %v7731_v36, %v1921_v37  ;;  %v8976_v15 = vadd.f32 %v1773_v49, %v8770_v1  ;;  %v4099_v1 = vld [vmem:[#allocation2 + $0x2e] sm:$0xff]  ;;  %v4102_v49 = vld [vmem:[#allocation2 + $0x46] sm:$0xff] }
 0x1fa   : > { %v7678_v18 = vpop.f32.mrf.mxu1  ;;  %7937 = vmatmul.mubr.msk.f32.gmra.mxu1 %vm674_vm2, %v3273_v58 }
 0x1fb   : > { %v7734_v4 = vpop.f32.mrf.mxu0  ;;  %7993 = vmatmul.mubr.msk.f32.gmra.mxu0 %vm674_vm2, %v3703_v7  ;;  %v1923_v60 = vadd.f32 %v7678_v18, %v8777_v19  ;;  %7997 = vmatprep.mubr.msk.f32.mxu1 %vm674_vm2, %v4098_v53 }
 0x1fc   : > { %v1783_v28 = vpop.f32.mrf.mxu1 }
 0x1fd   : > { %v8982_v40 = vpop.f32.mrf.mxu0  ;;  %v8984_v17 = vadd.f32 %v7734_v4, %v1923_v60  ;;  %v8987_v35 = vadd.f32 %v1783_v28, %v8782_v30  ;;  %v4101_v30 = vld [vmem:[#allocation2 + $0x3e] sm:$0xff] }
 0x1fe   : > { %v7681_v23 = vpop.f32.mrf.mxu1  ;;  %7998 = vmatmul.mubr.msk.f32.vlgmr.msra.gmra.mxu1 %vm674_vm2, %v4099_v1 }
 0x1ff   : > { %v7737_v24 = vpop.f32.mrf.mxu0  ;;  %v1925_v48 = vadd.f32 %v7681_v23, %v8787_v41  ;;  %8000 = vmatprep.mubr.msk.f32.mxu1 %vm674_vm2, %v4100_v34  ;;  %v4104_v23 = vld [vmem:[#allocation2 + $0x56] sm:$0xff] }
 0x200   : > { %v1793_v19 = vpop.f32.mrf.mxu1 }
 0x201   : > { %v8992_v63 = vpop.f32.mrf.mxu0  ;;  %v8994_v36 = vadd.f32 %v7737_v24, %v1925_v48  ;;  %v8997_v37 = vadd.f32 %v1793_v19, %v8794_v52  ;;  %v4103_v52 = vld [vmem:[#allocation2 + $0x4e] sm:$0xff] }
 0x202   : > { %v7684_v58 = vpop.f32.mrf.mxu1  ;;  %8001 = vmatmul.mubr.msk.f32.gmra.mxu1 %vm674_vm2, %v4101_v30 }
 0x203   : > { %v7740_v7 = vpop.f32.mrf.mxu0  ;;  %v1927_v18 = vadd.f32 %v7684_v58, %v8799_v5  ;;  %8003 = vmatprep.mubr.msk.f32.mxu1 %vm674_vm2, %v4102_v49 }
 0x204   : > { %v1803_v41 = vpop.f32.mrf.mxu1 }
 0x205   : > { %v9002_v4 = vpop.f32.mrf.mxu0  ;;  %v9004_v53 = vadd.f32 %v7740_v7, %v1927_v18  ;;  %v9007_v60 = vadd.f32 %v1803_v41, %v8804_v9  ;;  %v4105_v9 = vld [vmem:[#allocation2 + $0x5e] sm:$0xff]  ;;  %v4106_v7 = vld [vmem:[#allocation2 + $0x66] sm:$0xff] }
 0x206   : > { %v7687_v28 = vpop.f32.mrf.mxu1  ;;  %8004 = vmatmul.mubr.msk.f32.gmra.mxu1 %vm674_vm2, %v4103_v52 }
 0x207   : > { %v7743_v1 = vpop.f32.mrf.mxu0  ;;  %v1929_v24 = vadd.f32 %v7687_v28, %v8809_v26  ;;  %8006 = vmatprep.mubr.msk.f32.mxu1 %vm674_vm2, %v4104_v23  ;;  %v4108_v23 = vld [vmem:[#allocation2 + $0x76] sm:$0xff] }
 0x208   : > { %v1813_v5 = vpop.f32.mrf.mxu1 }
 0x209   : > { %v9012_v34 = vpop.f32.mrf.mxu0  ;;  %v9014_v48 = vadd.f32 %v7743_v1, %v1929_v24  ;;  %v9017_v19 = vadd.f32 %v1813_v5, %v8814_v33  ;;  %v4107_v33 = vld [vmem:[#allocation2 + $0x6e] sm:$0xff] }
 0x20a   : > { %v7690_v30 = vpop.f32.mrf.mxu1  ;;  %8007 = vmatmul.mubr.msk.f32.gmra.mxu1 %vm674_vm2, %v4105_v9 }
 0x20b   : > { %v7746_v58 = vpop.f32.mrf.mxu0  ;;  %v1931_v49 = vadd.f32 %v7690_v30, %v8819_v50  ;;  %8009 = vmatprep.mubr.msk.f32.mxu1 %vm674_vm2, %v4106_v7 }
 0x20c   : > { %v1823_v26 = vpop.f32.mrf.mxu1 }
 0x20d   : > { %v9022_v18 = vpop.f32.mrf.mxu0  ;;  %v9024_v41 = vadd.f32 %v7746_v58, %v1931_v49  ;;  %v9027_v52 = vadd.f32 %v1823_v26, %v8824_v61  ;;  %v4109_v61 = vld [vmem:[#allocation2 + $0x7e] sm:$0xff]  ;;  %v4110_v49 = vld [vmem:[#allocation2 + $0x86] sm:$0xff] }
 0x20e   : > { %v7693_v28 = vpop.f32.mrf.mxu1  ;;  %8010 = vmatmul.mubr.msk.f32.gmra.mxu1 %vm674_vm2, %v4107_v33 }
 0x20f   : > { %v7749_v1 = vpop.f32.mrf.mxu0  ;;  %v1933_v24 = vadd.f32 %v7693_v28, %v8829_v2  ;;  %8012 = vmatprep.mubr.msk.f32.mxu1 %vm674_vm2, %v4108_v23 }
 0x210   : > { %v1833_v50 = vpop.f32.mrf.mxu1 }
 0x211   : > { %v9032_v5 = vpop.f32.mrf.mxu0  ;;  %v9034_v9 = vadd.f32 %v7749_v1, %v1933_v24  ;;  %v9037_v30 = vadd.f32 %v1833_v50, %v8834_v13  ;;  %v4111_v13 = vld [vmem:[#allocation2 + $0x8e] sm:$0xff]  ;;  %v4112_v50 = vld [vmem:[#allocation2 + $0x96] sm:$0xff] }
 0x212   : > { %v7696_v58 = vpop.f32.mrf.mxu1  ;;  %8013 = vmatmul.mubr.msk.f32.gmra.mxu1 %vm674_vm2, %v4109_v61 }
 0x213   : > { %v7752_v7 = vpop.f32.mrf.mxu0  ;;  %v1935_v26 = vadd.f32 %v7696_v58, %v8839_v43  ;;  %8015 = vmatprep.mubr.msk.f32.mxu1 %vm674_vm2, %v4110_v49 }
 0x214   : > { %v1843_v2 = vpop.f32.mrf.mxu1 }
 0x215   : > { %v9042_v33 = vpop.f32.mrf.mxu0  ;;  %v9044_v28 = vadd.f32 %v7752_v7, %v1935_v26  ;;  %v9047_v1 = vadd.f32 %v1843_v2, %v8844_v6  ;;  %v4113_v6 = vld [vmem:[#allocation2 + $0x9e] sm:$0xff] }
 0x216   : > { %v7699_v23 = vpop.f32.mrf.mxu1  ;;  %8016 = vmatmul.mubr.msk.f32.gmra.mxu1 %vm674_vm2, %v4111_v13  ;;  %v5662_v26 = vld [vmem:[%s10918_s5] sm:$0xf] }
 0x217   : > { %v7755_v24 = vpop.f32.mrf.mxu0  ;;  %v1937_v61 = vadd.f32 %v7699_v23, %v8849_v54  ;;  %8018 = vmatprep.mubr.msk.f32.mxu1 %vm674_vm2, %v4112_v50  ;;  %v4114_v54 = vld [vmem:[#allocation2 + $0xa6] sm:$0xff]  ;;  %8051 = vmatprep.subr.msk.mxu0 %vm913_vm0, %v5662_v26 }
 0x218   : > { %v1853_v43 = vpop.f32.mrf.mxu1  ;;  %8052 = vmatpush3.msk.msra.mxu0 %vm913_vm0, %v5662_v26 }
 0x219   : > { %v9052_v58 = vpop.f32.mrf.mxu0  ;;  %v9054_v49 = vadd.f32 %v7755_v24, %v1937_v61  ;;  %v9057_v7 = vadd.f32 %v1853_v43, %v8854_v62  ;;  %v4115_v43 = vld [vmem:[#allocation2 + $0xae] sm:$0xff] }
 0x21a   : > { %10947 = vst [vmem:[#allocation3_spill] sm:$0xff] %v9052_v58  ;;  %v7702_v2 = vpop.f32.mrf.mxu1  ;;  %8019 = vmatmul.mubr.msk.f32.gmra.mxu1 %vm674_vm2, %v4113_v6  ;;  %v4116_v58 = vld [vmem:[#allocation2 + $0xb6] sm:$0xff] }
 0x21b   : > { %10948 = vst [vmem:[#allocation4_spill] sm:$0xff] %v9054_v49  ;;  %v7758_v13 = vpop.f32.mrf.mxu0  ;;  %v1939_v23 = vadd.f32 %v7702_v2, %v8859_v11  ;;  %8021 = vmatprep.mubr.msk.f32.mxu1 %vm674_vm2, %v4114_v54 }
 0x21c   : > { %v1863_v62 = vpop.f32.mrf.mxu1 }
 0x21d   : > { %v9067_v24 = vpop.f32.mrf.mxu0  ;;  %v9069_v50 = vadd.f32 %v7758_v13, %v1939_v23  ;;  %v9072_v61 = vadd.f32 %v1863_v62, %v8864_v12  ;;  %v4117_v23 = vld [vmem:[#allocation2 + $0xbe] sm:$0xff]  ;;  %v4118_v62 = vld [vmem:[#allocation2 + $0xc6] sm:$0xff] }
 0x21e   : > { %10949 = vst [vmem:[#allocation5_spill] sm:$0xff] %v9067_v24  ;;  %v7705_v49 = vpop.f32.mrf.mxu1  ;;  %8022 = vmatmul.mubr.msk.f32.gmra.mxu1 %vm674_vm2, %v4115_v43 }
 0x21f   : > { %10950 = vst [vmem:[#allocation6_spill] sm:$0xff] %v9069_v50  ;;  %v7761_v6 = vpop.f32.mrf.mxu0  ;;  %v1941_v11 = vadd.f32 %v7705_v49, %v8869_v39  ;;  %8024 = vmatprep.mubr.msk.f32.mxu1 %vm674_vm2, %v4116_v58 }
 0x220   : > { %v1873_v2 = vpop.f32.mrf.mxu1 }
 0x221   : > { %v2303_v26 = vpop.f32.mrf.mxu0  ;;  %v9077_v54 = vadd.f32 %v7761_v6, %v1941_v11  ;;  %v1940_v13 = vadd.f32 %v1873_v2, %v8874_v16  ;;  %v4119_v11 = vld [vmem:[#allocation2 + $0xce] sm:$0xff] }
 0x222   : > { %v7708_v50 = vpop.f32.mrf.mxu1  ;;  %8025 = vmatmul.mubr.msk.f32.gmra.mxu1 %vm674_vm2, %v4117_v23 }
 0x223   : > { %10951 = vst [vmem:[#allocation7_spill] sm:$0xff] %v9077_v54  ;;  %v7764_v12 = vpop.f32.mrf.mxu0  ;;  %v9081_v24 = vadd.f32 %v2303_v26, %v1940_v13  ;;  %v1943_v43 = vadd.f32 %v7708_v50, %v8879_v8  ;;  %8027 = vmatprep.mubr.msk.f32.mxu1 %vm674_vm2, %v4118_v62  ;;  %v4120_v54 = vld [vmem:[#allocation2 + $0xd6] sm:$0xff]  ;;  %v1500_v26 = vadd.f32 %v8896_v14, %v8894_v47  ;;  %v4122_v47 = vld [vmem:[#allocation2 + $0xe6] sm:$0xff] }
 0x224   : > { %v1883_v39 = vpop.f32.mrf.mxu1  ;;  %v1510_v14 = vadd.f32 %v8908_v46, %v8906_v51 }
 0x225   : > { %v2313_v58 = vpop.f32.mrf.mxu0  ;;  %v9085_v49 = vadd.f32 %v7764_v12, %v1943_v43  ;;  %v1942_v6 = vadd.f32 %v1883_v39, %v8884_v20  ;;  %v1340_v20 = vadd.f32 %v8714_v57, %v8712_v56  ;;  %v4121_v43 = vld [vmem:[#allocation2 + $0xde] sm:$0xff] }
 0x226   : > { %v7711_v16 = vpop.f32.mrf.mxu1  ;;  %8028 = vmatmul.mubr.msk.f32.gmra.mxu1 %vm674_vm2, %v4119_v11 }
 0x227   : > { %v7767_v2 = vpop.f32.mrf.mxu0  ;;  %v9091_v13 = vadd.f32 %v2313_v58, %v1942_v6  ;;  %v1945_v8 = vadd.f32 %v7711_v16, %v8889_v22  ;;  %8030 = vmatprep.mubr.msk.f32.mxu1 %vm674_vm2, %v4120_v54  ;;  %v1912_v22 = vadd.f32 %v8917_v55, %v1340_v20 }
 0x228   : > { %v1893_v50 = vpop.f32.mrf.mxu1 }
 0x229   : > { %v2323_v23 = vpop.f32.mrf.mxu0  ;;  %v9097_v12 = vadd.f32 %v7767_v2, %v1945_v8  ;;  %v1944_v62 = vadd.f32 %v1893_v50, %v1500_v26  ;;  %v4123_v2 = vld [vmem:[#allocation2 + $0xee] sm:$0xff]  ;;  %v4124_v50 = vld [vmem:[#allocation2 + $0xf6] sm:$0xff]  ;;  %v2342_v51 = vadd.f32 %v8919_v44, %v1912_v22  ;;  %v2344_v44 = vadd.f32 %v8930_v45, %v8935_v27 }
 0x22a   : > { %v7714_v39 = vpop.f32.mrf.mxu1  ;;  %8031 = vmatmul.mubr.msk.f32.gmra.mxu1 %vm674_vm2, %v4121_v43  ;;  %v4125_v43 = vld [vmem:[#allocation2 + $0xfe] sm:$0xff]  ;;  %v2346_v45 = vadd.f32 %v8944_v29, %v8949_v31  ;;  %v2348_v29 = vadd.f32 %v8958_v32, %v8963_v59  ;;  %v2350_v32 = vadd.f32 %v8971_v0, %v8976_v15 }
 0x22b   : > { %v7770_v11 = vpop.f32.mrf.mxu0  ;;  %v9103_v54 = vadd.f32 %v2323_v23, %v1944_v62  ;;  %v1947_v58 = vadd.f32 %v7714_v39, %v8901_v38  ;;  %8033 = vmatprep.mubr.msk.f32.mxu1 %vm674_vm2, %v4122_v47  ;;  %v4126_v47 = vld [vmem:[#allocation2 + $0x106] sm:$0xff] }
 0x22c   : > { %v1903_v56 = vpop.f32.mrf.mxu1 }
 0x22d   : > { %v2333_v57 = vpop.f32.mrf.mxu0  ;;  %v9107_v6 = vadd.f32 %v7770_v11, %v1947_v58  ;;  %v1946_v16 = vadd.f32 %v1903_v56, %v1510_v14 }
 0x22e   : > { %v7775_v26 = vpop.f32.mrf.mxu1  ;;  %8034 = vmatmul.mubr.msk.f32.gmra.mxu1 %vm674_vm2, %v4123_v2 }
 0x22f   : > { %v7831_v8 = vpop.f32.mrf.mxu0  ;;  %v9111_v46 = vadd.f32 %v2333_v57, %v1946_v16  ;;  %v2773_v55 = vadd.f32 %v7775_v26, %v8921_v10  ;;  %8036 = vmatprep.mubr.msk.f32.mxu1 %vm674_vm2, %v4124_v50  ;;  %v4127_v16 = vld [vmem:[#allocation2 + $0x10e] sm:$0xff] }
 0x230   : > { %v2593_v38 = vpop.f32.mrf.mxu1 }
 0x231   : > { %v3023_v23 = vpop.f32.mrf.mxu0  ;;  %v9115_v20 = vadd.f32 %v7831_v8, %v2773_v55  ;;  %v2772_v62 = vadd.f32 %v2593_v38, %v2342_v51  ;;  %v4128_v8 = vld [vmem:[#allocation2 + $0x116] sm:$0xff] }
 0x232   : > { %v7778_v39 = vpop.f32.mrf.mxu1  ;;  %8037 = vmatmul.mubr.msk.f32.gmra.mxu1 %vm674_vm2, %v4125_v43 }
 0x233   : > { %v7834_v11 = vpop.f32.mrf.mxu0  ;;  %v9120_v14 = vadd.f32 %v3023_v23, %v2772_v62  ;;  %v2775_v10 = vadd.f32 %v7778_v39, %v8932_v25  ;;  %8039 = vmatprep.mubr.msk.f32.mxu1 %vm674_vm2, %v4126_v47  ;;  %v4129_v23 = vld [vmem:[#allocation2 + $0x11e] sm:$0xff]  ;;  %v4130_v39 = vld [vmem:[#allocation2 + $0x126] sm:$0xff] }
 0x234   : > { %v2603_v22 = vpop.f32.mrf.mxu1 }
 0x235   : > { %v3033_v58 = vpop.f32.mrf.mxu0  ;;  %v9124_v56 = vadd.f32 %v7834_v11, %v2775_v10  ;;  %v2774_v57 = vadd.f32 %v2603_v22, %v2344_v44  ;;  %v4132_v44 = vld [vmem:[#allocation2 + $0x136] sm:$0xff] }
 0x236   : > { %v7781_v2 = vpop.f32.mrf.mxu1  ;;  %8040 = vmatmul.mubr.msk.f32.gmra.mxu1 %vm674_vm2, %v4127_v16 }
 0x237   : > { %v7837_v26 = vpop.f32.mrf.mxu0  ;;  %v9129_v27 = vadd.f32 %v3033_v58, %v2774_v57  ;;  %v2777_v25 = vadd.f32 %v7781_v2, %v8946_v3  ;;  %8042 = vmatprep.mubr.msk.f32.mxu1 %vm674_vm2, %v4128_v8  ;;  %v4131_v58 = vld [vmem:[#allocation2 + $0x12e] sm:$0xff]  ;;  %v4133_v2 = vld [vmem:[#allocation2 + $0x13e] sm:$0xff] }
 0x238   : > { %v2613_v50 = vpop.f32.mrf.mxu1 }
 0x239   : > { %v3043_v51 = vpop.f32.mrf.mxu0  ;;  %v9133_v55 = vadd.f32 %v7837_v26, %v2777_v25  ;;  %v2776_v38 = vadd.f32 %v2613_v50, %v2346_v45 }
 0x23a   : > { %v7784_v62 = vpop.f32.mrf.mxu1  ;;  %8043 = vmatmul.mubr.msk.f32.gmra.mxu1 %vm674_vm2, %v4129_v23 }
 0x23b   : > { %v7840_v43 = vpop.f32.mrf.mxu0  ;;  %v9138_v31 = vadd.f32 %v3043_v51, %v2776_v38  ;;  %v2779_v3 = vadd.f32 %v7784_v62, %v8960_v21  ;;  %8045 = vmatprep.mubr.msk.f32.mxu1 %vm674_vm2, %v4130_v39  ;;  %v2352_v38 = vadd.f32 %v8982_v40, %v8987_v35 }
 0x23c   : > { %v2623_v11 = vpop.f32.mrf.mxu1 }
 0x23d   : > { %v3053_v47 = vpop.f32.mrf.mxu0  ;;  %v9142_v10 = vadd.f32 %v7840_v43, %v2779_v3  ;;  %v2778_v22 = vadd.f32 %v2623_v11, %v2348_v29  ;;  %v2354_v3 = vadd.f32 %v8992_v63, %v8997_v37 }
 0x23e   : > { %v7787_v57 = vpop.f32.mrf.mxu1  ;;  %8046 = vmatmul.mubr.msk.f32.gmra.mxu1 %vm674_vm2, %v4131_v58 }
 0x23f   : > { %v7843_v16 = vpop.f32.mrf.mxu0  ;;  %v9147_v59 = vadd.f32 %v3053_v47, %v2778_v22  ;;  %v2781_v21 = vadd.f32 %v7787_v57, %v8973_v42  ;;  %8048 = vmatprep.mubr.msk.f32.mxu1 %vm674_vm2, %v4132_v44  ;;  %v2356_v57 = vadd.f32 %v9002_v4, %v9007_v60 }
 0x240   : > { %v2633_v26 = vpop.f32.mrf.mxu1 }
 0x241   : > { %v3063_v8 = vpop.f32.mrf.mxu0  ;;  %v9151_v45 = vadd.f32 %v7843_v16, %v2781_v21  ;;  %v2780_v25 = vadd.f32 %v2633_v26, %v2350_v32 }
 0x242   : > { %v7790_v50 = vpop.f32.mrf.mxu1  ;;  %8049 = vmatmul.mubr.msk.f32.gmra.mxu1 %vm674_vm2, %v4133_v2 }
 0x243   : > { %v7846_v51 = vpop.f32.mrf.mxu0  ;;  %v9156_v0 = vadd.f32 %v3063_v8, %v2780_v25  ;;  %v2783_v15 = vadd.f32 %v7790_v50, %v8984_v17  ;;  %v2358_v8 = vadd.f32 %v9012_v34, %v9017_v19 }
 0x244   : > { %v2643_v42 = vpop.f32.mrf.mxu1 }
 0x245   : > { %v3073_v23 = vpop.f32.mrf.mxu0  ;;  %v9159_v62 = vadd.f32 %v7846_v51, %v2783_v15  ;;  %v2782_v43 = vadd.f32 %v2643_v42, %v2352_v38  ;;  %v2360_v42 = vadd.f32 %v9022_v18, %v9027_v52 }
 0x246   : > { %v7793_v39 = vpop.f32.mrf.mxu1 }
 0x247   : > { %v7849_v29 = vpop.f32.mrf.mxu0  ;;  %v9163_v11 = vadd.f32 %v3073_v23, %v2782_v43  ;;  %v2785_v47 = vadd.f32 %v7793_v39, %v8994_v36 }
 0x248   : > { %v2653_v44 = vpop.f32.mrf.mxu1 }
 0x249   : > { %v3083_v40 = vpop.f32.mrf.mxu0  ;;  %v9166_v35 = vadd.f32 %v7849_v29, %v2785_v47  ;;  %v2784_v22 = vadd.f32 %v2653_v44, %v2354_v3  ;;  %v2362_v47 = vadd.f32 %v9032_v5, %v9037_v30 }
 0x24a   : > { %v7796_v17 = vpop.f32.mrf.mxu1 }
 0x24b   : > { %v7852_v58 = vpop.f32.mrf.mxu0  ;;  %v9170_v16 = vadd.f32 %v3083_v40, %v2784_v22  ;;  %v2787_v32 = vadd.f32 %v7796_v17, %v9004_v53 }
 0x24c   : > { %v2663_v21 = vpop.f32.mrf.mxu1 }
 0x24d   : > { %v3093_v63 = vpop.f32.mrf.mxu0  ;;  %v9173_v37 = vadd.f32 %v7852_v58, %v2787_v32  ;;  %v2786_v2 = vadd.f32 %v2663_v21, %v2356_v57  ;;  %v2364_v57 = vadd.f32 %v9042_v33, %v9047_v1 }
 0x24e   : > { %v7799_v36 = vpop.f32.mrf.mxu1 }
 0x24f   : > { %v7855_v26 = vpop.f32.mrf.mxu0  ;;  %v9177_v25 = vadd.f32 %v3093_v63, %v2786_v2  ;;  %v2789_v50 = vadd.f32 %v7799_v36, %v9014_v48 }
 0x250   : > { %v2673_v51 = vpop.f32.mrf.mxu1 }
 0x251   : > { %v3103_v4 = vpop.f32.mrf.mxu0  ;;  %v9180_v60 = vadd.f32 %v7855_v26, %v2789_v50  ;;  %v2788_v38 = vadd.f32 %v2673_v51, %v2358_v8  ;;  %v10952_v26 = vld [vmem:[#allocation3_spill] sm:$0xff]  ;;  %v10953_v51 = vld [vmem:[#allocation4_spill] sm:$0xff] }
 0x252   : > { %v7802_v53 = vpop.f32.mrf.mxu1  ;;  %v2366_v8 = vadd.f32 %v10952_v26, %v9057_v7 }
 0x253   : > { %v7858_v15 = vpop.f32.mrf.mxu0  ;;  %v9184_v23 = vadd.f32 %v3103_v4, %v2788_v38  ;;  %v2791_v43 = vadd.f32 %v7802_v53, %v9024_v41 }
 0x254   : > { %v2683_v39 = vpop.f32.mrf.mxu1 }
 0x255   : > { %v3113_v34 = vpop.f32.mrf.mxu0  ;;  %v9187_v19 = vadd.f32 %v7858_v15, %v2791_v43  ;;  %v2790_v29 = vadd.f32 %v2683_v39, %v2360_v42  ;;  %v10954_v42 = vld [vmem:[#allocation5_spill] sm:$0xff] }
 0x256   : > { %v7805_v48 = vpop.f32.mrf.mxu1  ;;  %v2368_v43 = vadd.f32 %v10954_v42, %v9072_v61 }
 0x257   : > { %v7861_v3 = vpop.f32.mrf.mxu0  ;;  %v9191_v44 = vadd.f32 %v3113_v34, %v2790_v29  ;;  %v2793_v40 = vadd.f32 %v7805_v48, %v9034_v9  ;;  %v10955_v34 = vld [vmem:[#allocation6_spill] sm:$0xff] }
 0x258   : > { %v2693_v22 = vpop.f32.mrf.mxu1 }
 0x259   : > { %v3123_v18 = vpop.f32.mrf.mxu0  ;;  %v9194_v52 = vadd.f32 %v7861_v3, %v2793_v40  ;;  %v2792_v17 = vadd.f32 %v2693_v22, %v2362_v47 }
 0x25a   : > { %v7808_v41 = vpop.f32.mrf.mxu1 }
 0x25b   : > { %v7864_v58 = vpop.f32.mrf.mxu0  ;;  %v9198_v32 = vadd.f32 %v3123_v18, %v2792_v17  ;;  %v2795_v21 = vadd.f32 %v7808_v41, %v9044_v28  ;;  %v10956_v17 = vld [vmem:[#allocation7_spill] sm:$0xff] }
 0x25c   : > { %v2703_v63 = vpop.f32.mrf.mxu1 }
 0x25d   : > { %v3133_v5 = vpop.f32.mrf.mxu0  ;;  %v9201_v30 = vadd.f32 %v7864_v58, %v2795_v21  ;;  %v2794_v2 = vadd.f32 %v2703_v63, %v2364_v57 }
 0x25e   : > { %v7811_v9 = vpop.f32.mrf.mxu1 }
 0x25f   : > { %v7867_v36 = vpop.f32.mrf.mxu0  ;;  %v9205_v50 = vadd.f32 %v3133_v5, %v2794_v2  ;;  %v2797_v4 = vadd.f32 %v7811_v9, %v10953_v51 }
 0x260   : > { %v2713_v38 = vpop.f32.mrf.mxu1 }
 0x261   : > { %v3143_v33 = vpop.f32.mrf.mxu0  ;;  %v9208_v1 = vadd.f32 %v7867_v36, %v2797_v4  ;;  %v2796_v53 = vadd.f32 %v2713_v38, %v2366_v8 }
 0x262   : > { %v7814_v28 = vpop.f32.mrf.mxu1 }
 0x263   : > { %v7870_v15 = vpop.f32.mrf.mxu0  ;;  %v9212_v39 = vadd.f32 %v3143_v33, %v2796_v53  ;;  %v2799_v29 = vadd.f32 %v7814_v28, %v10955_v34 }
 0x264   : > { %v2723_v48 = vpop.f32.mrf.mxu1 }
 0x265   : > { %v3153_v7 = vpop.f32.mrf.mxu0  ;;  %v9215_v3 = vadd.f32 %v7870_v15, %v2799_v29  ;;  %v2798_v47 = vadd.f32 %v2723_v48, %v2368_v43 }
 0x266   : > { %v7817_v40 = vpop.f32.mrf.mxu1 }
 0x267   : > { %v7873_v22 = vpop.f32.mrf.mxu0  ;;  %v9217_v18 = vadd.f32 %v3153_v7, %v2798_v47  ;;  %v2801_v41 = vadd.f32 %v7817_v40, %v10956_v17 }
 0x268   : > { %v2733_v58 = vpop.f32.mrf.mxu1 }
 0x269   : > { %v3163_v57 = vpop.f32.mrf.mxu0  ;;  %v9220_v21 = vadd.f32 %v7873_v22, %v2801_v41  ;;  %v2800_v61 = vadd.f32 %v2733_v58, %v9081_v24 }
 0x26a   : > { %v7820_v63 = vpop.f32.mrf.mxu1 }
 0x26b   : > { %v7876_v5 = vpop.f32.mrf.mxu0  ;;  %v9223_v2 = vadd.f32 %v3163_v57, %v2800_v61  ;;  %v2803_v9 = vadd.f32 %v7820_v63, %v9085_v49 }
 0x26c   : > { %v2743_v36 = vpop.f32.mrf.mxu1 }
 0x26d   : > { %v3173_v26 = vpop.f32.mrf.mxu0  ;;  %v9226_v8 = vadd.f32 %v7876_v5, %v2803_v9  ;;  %v2802_v51 = vadd.f32 %v2743_v36, %v9091_v13 }
 0x26e   : > { %v7823_v4 = vpop.f32.mrf.mxu1 }
 0x26f   : > { %v7879_v38 = vpop.f32.mrf.mxu0  ;;  %v9229_v33 = vadd.f32 %v3173_v26, %v2802_v51  ;;  %v2805_v53 = vadd.f32 %v7823_v4, %v9097_v12 }
 0x270   : > { %v2753_v28 = vpop.f32.mrf.mxu1 }
 0x271   : > { %v3183_v24 = vpop.f32.mrf.mxu0  ;;  %v9232_v15 = vadd.f32 %v7879_v38, %v2805_v53  ;;  %v2804_v42 = vadd.f32 %v2753_v28, %v9103_v54 }
 0x272   : > { %v7826_v43 = vpop.f32.mrf.mxu1 }
 0x273   : > { %v7882_v49 = vpop.f32.mrf.mxu0  ;;  %v9235_v34 = vadd.f32 %v3183_v24, %v2804_v42  ;;  %v2807_v29 = vadd.f32 %v7826_v43, %v9107_v6 }
 0x274   : > { %v2763_v48 = vpop.f32.mrf.mxu1 }
 0x275   : > { %v3193_v13 = vpop.f32.mrf.mxu0  ;;  %v9238_v7 = vadd.f32 %v7882_v49, %v2807_v29  ;;  %v2806_v47 = vadd.f32 %v2763_v48, %v9111_v46 }
 0x276   : > { %v7887_v40 = vpop.f32.mrf.mxu1 }
 0x277   : > { %v9241_v12 = vpop.f32.mrf.mxu0  ;;  %v9243_v22 = vadd.f32 %v3193_v13, %v2806_v47  ;;  %v9246_v17 = vadd.f32 %v7887_v40, %v9115_v20 }
 0x278   : > { %v3453_v54 = vpop.f32.mrf.mxu1 }
 0x279   : > { %v9248_v41 = vpop.f32.mrf.mxu0  ;;  %v9251_v58 = vadd.f32 %v3453_v54, %v9120_v14 }
 0x27a   : > { %v7890_v6 = vpop.f32.mrf.mxu1 }
 0x27b   : > { %v9253_v57 = vpop.f32.mrf.mxu0  ;;  %v9256_v61 = vadd.f32 %v7890_v6, %v9124_v56 }
 0x27c   : > { %v3463_v46 = vpop.f32.mrf.mxu1 }
 0x27d   : > { %v9258_v63 = vpop.f32.mrf.mxu0  ;;  %v9261_v5 = vadd.f32 %v3463_v46, %v9129_v27 }
 0x27e   : > { %v7893_v20 = vpop.f32.mrf.mxu1 }
 0x27f   : > { %v9263_v9 = vpop.f32.mrf.mxu0  ;;  %v9266_v36 = vadd.f32 %v7893_v20, %v9133_v55 }
 0x280   : > { %v3473_v14 = vpop.f32.mrf.mxu1 }
 0x281   : > { %v9268_v26 = vpop.f32.mrf.mxu0  ;;  %v9271_v51 = vadd.f32 %v3473_v14, %v9138_v31 }
 0x282   : > { %v7896_v56 = vpop.f32.mrf.mxu1 }
 0x283   : > { %v9273_v4 = vpop.f32.mrf.mxu0  ;;  %v9276_v38 = vadd.f32 %v7896_v56, %v9142_v10 }
 0x284   : > { %v3483_v27 = vpop.f32.mrf.mxu1 }
 0x285   : > { %v9278_v53 = vpop.f32.mrf.mxu0  ;;  %v9281_v28 = vadd.f32 %v3483_v27, %v9147_v59 }
 0x286   : > { %v7899_v55 = vpop.f32.mrf.mxu1 }
 0x287   : > { %v9283_v24 = vpop.f32.mrf.mxu0  ;;  %v9286_v42 = vadd.f32 %v7899_v55, %v9151_v45 }
 0x288   : > { %v3493_v31 = vpop.f32.mrf.mxu1 }
 0x289   : > { %v9288_v43 = vpop.f32.mrf.mxu0  ;;  %v9291_v49 = vadd.f32 %v3493_v31, %v9156_v0 }
 0x28a   : > { %v7902_v10 = vpop.f32.mrf.mxu1 }
 0x28b   : > { %v9293_v29 = vpop.f32.mrf.mxu0  ;;  %v9296_v48 = vadd.f32 %v7902_v10, %v9159_v62 }
 0x28c   : > { %v3503_v59 = vpop.f32.mrf.mxu1 }
 0x28d   : > { %v9298_v13 = vpop.f32.mrf.mxu0  ;;  %v9301_v47 = vadd.f32 %v3503_v59, %v9163_v11 }
 0x28e   : > { %v7905_v45 = vpop.f32.mrf.mxu1 }
 0x28f   : > { %v9303_v40 = vpop.f32.mrf.mxu0  ;;  %v9306_v54 = vadd.f32 %v7905_v45, %v9166_v35 }
 0x290   : > { %v3513_v0 = vpop.f32.mrf.mxu1 }
 0x291   : > { %v9308_v6 = vpop.f32.mrf.mxu0  ;;  %v9311_v46 = vadd.f32 %v3513_v0, %v9170_v16 }
 0x292   : > { %v7908_v62 = vpop.f32.mrf.mxu1 }
 0x293   : > { %v9313_v20 = vpop.f32.mrf.mxu0  ;;  %v9316_v14 = vadd.f32 %v7908_v62, %v9173_v37 }
 0x294   : > { %v3523_v11 = vpop.f32.mrf.mxu1 }
 0x295   : > { %v9318_v56 = vpop.f32.mrf.mxu0  ;;  %v9321_v27 = vadd.f32 %v3523_v11, %v9177_v25 }
 0x296   : > { %v7911_v35 = vpop.f32.mrf.mxu1 }
 0x297   : > { %v9323_v55 = vpop.f32.mrf.mxu0  ;;  %v9326_v31 = vadd.f32 %v7911_v35, %v9180_v60 }
 0x298   : > { %v3533_v16 = vpop.f32.mrf.mxu1 }
 0x299   : > { %v9328_v10 = vpop.f32.mrf.mxu0  ;;  %v9331_v59 = vadd.f32 %v3533_v16, %v9184_v23 }
 0x29a   : > { %10957 = vst [vmem:[#allocation3_spill] sm:$0xff] %v9328_v10  ;;  %v7914_v37 = vpop.f32.mrf.mxu1 }
 0x29b   : > { %v9333_v45 = vpop.f32.mrf.mxu0  ;;  %v9336_v0 = vadd.f32 %v7914_v37, %v9187_v19 }
 0x29c   : > { %10958 = vst [vmem:[#allocation4_spill] sm:$0xff] %v9333_v45  ;;  %v3543_v25 = vpop.f32.mrf.mxu1 }
 0x29d   : > { %v9338_v62 = vpop.f32.mrf.mxu0  ;;  %v9341_v11 = vadd.f32 %v3543_v25, %v9191_v44 }
 0x29e   : > { %10959 = vst [vmem:[#allocation5_spill] sm:$0xff] %v9338_v62  ;;  %v7917_v60 = vpop.f32.mrf.mxu1 }
 0x29f   : > { %v9343_v35 = vpop.f32.mrf.mxu0  ;;  %v9346_v10 = vadd.f32 %v7917_v60, %v9194_v52 }
 0x2a0   : > { %10960 = vst [vmem:[#allocation6_spill] sm:$0xff] %v9343_v35  ;;  %v3553_v23 = vpop.f32.mrf.mxu1 }
 0x2a1   : > { %v9348_v16 = vpop.f32.mrf.mxu0  ;;  %v9351_v45 = vadd.f32 %v3553_v23, %v9198_v32 }
 0x2a2   : > { %10961 = vst [vmem:[#allocation7_spill] sm:$0xff] %v9348_v16  ;;  %v7920_v19 = vpop.f32.mrf.mxu1 }
 0x2a3   : > { %v9353_v37 = vpop.f32.mrf.mxu0  ;;  %v9356_v62 = vadd.f32 %v7920_v19, %v9201_v30 }
 0x2a4   : > { %10962 = vst [vmem:[#allocation8_spill] sm:$0xff] %v9353_v37  ;;  %v3563_v44 = vpop.f32.mrf.mxu1 }
 0x2a5   : > { %v9358_v25 = vpop.f32.mrf.mxu0  ;;  %v9361_v35 = vadd.f32 %v3563_v44, %v9205_v50 }
 0x2a6   : > { %10963 = vst [vmem:[#allocation9_spill] sm:$0xff] %v9358_v25  ;;  %v7923_v52 = vpop.f32.mrf.mxu1 }
 0x2a7   : > { %v9363_v60 = vpop.f32.mrf.mxu0  ;;  %v9366_v16 = vadd.f32 %v7923_v52, %v9208_v1 }
 0x2a8   : > { %10964 = vst [vmem:[#allocation10_spill] sm:$0xff] %v9363_v60  ;;  %v3573_v32 = vpop.f32.mrf.mxu1 }
 0x2a9   : > { %v9368_v23 = vpop.f32.mrf.mxu0  ;;  %v9371_v37 = vadd.f32 %v3573_v32, %v9212_v39 }
 0x2aa   : > { %10965 = vst [vmem:[#allocation11_spill] sm:$0xff] %v9368_v23  ;;  %v7926_v30 = vpop.f32.mrf.mxu1 }
 0x2ab   : > { %10966 = vst [vmem:[#allocation12_spill] sm:$0xff] %v9371_v37  ;;  %v9373_v19 = vpop.f32.mrf.mxu0  ;;  %v9376_v25 = vadd.f32 %v7926_v30, %v9215_v3  ;;  %v8157_v3 = vmov 1983009808  }
 0x2ac   : > { %10967 = vst [vmem:[#allocation13_spill] sm:$0xff] %v9373_v19  ;;  %v3583_v50 = vpop.f32.mrf.mxu1  ;;  %v4645_v30 = vunpack.c.l.s4 %v8157_v3 }
 0x2ad   : > { %10968 = vst [vmem:[#allocation14_spill] sm:$0xff] %v9376_v25  ;;  %v9378_v44 = vpop.f32.mrf.mxu0  ;;  %v9381_v60 = vadd.f32 %v3583_v50, %v9217_v18  ;;  %v4647_v25 = vlaneseq }
 0x2ae   : > { %10969 = vst [vmem:[#allocation15_spill] sm:$0xff] %v9378_v44  ;;  %v7929_v1 = vpop.f32.mrf.mxu1 }
 0x2af   : > { %10970 = vst [vmem:[#allocation16_spill] sm:$0xff] %v9381_v60  ;;  %v9383_v52 = vpop.f32.mrf.mxu0  ;;  %v9386_v23 = vadd.f32 %v7929_v1, %v9220_v21  ;;  %v4646_v1 = vunpack.c.0.s8 %v4645_v30 }
 0x2b0   : > { %10971 = vst [vmem:[#allocation17_spill] sm:$0xff] %v9383_v52  ;;  %v3593_v39 = vpop.f32.mrf.mxu1 }
 0x2b1   : > { %10972 = vst [vmem:[#allocation18_spill] sm:$0xff] %v9386_v23  ;;  %v9388_v32 = vpop.f32.mrf.mxu0  ;;  %v9391_v19 = vadd.f32 %v3593_v39, %v9223_v2  ;;  %v4648_v23 = vshrl.u32 %v4647_v25, 7  ;;  %v4064_v25 = vadd.f32 %v9258_v63, %v9261_v5 }
 0x2b2   : > { %10973 = vst [vmem:[#allocation19_spill] sm:$0xff] %v9388_v32  ;;  %v7932_v37 = vpop.f32.mrf.mxu1 }
 0x2b3   : > { %10974 = vst [vmem:[#allocation20_spill] sm:$0xff] %v9391_v19  ;;  %v9393_v44 = vpop.f32.mrf.mxu0  ;;  %v9396_v18 = vadd.f32 %v7932_v37, %v9226_v8  ;;  %v9405_v60 = vsub.s32 %v4646_v1, %v4648_v23  ;;  %v4063_v8 = vadd.f32 %v9241_v12, %v9246_v17  ;;  %v9418_v23 = vadd.f32 %v9263_v9, %v9266_v36  ;;  %v10991_v30 = vld [vmem:[#allocation13_spill] sm:$0xff] }
 0x2b4   : > { %v3603_v50 = vpop.f32.mrf.mxu1  ;;  %v9422_v12 = vadd.f32 %v9268_v26, %v9271_v51  ;;  %v9426_v17 = vadd.f32 %v9273_v4, %v9276_v38  ;;  %v9447_v9 = vadd.f32 %v9298_v13, %v9301_v47  ;;  %v9451_v36 = vadd.f32 %v9303_v40, %v9306_v54  ;;  %v10978_v47 = vld [vmem:[#allocation6_spill] sm:$0xff]  ;;  %v10979_v54 = vld [vmem:[#allocation7_spill] sm:$0xff] }
 0x2b5   : > { %v9399_v52 = vadd.f32 %v3603_v50, %v9229_v33  ;;  %v4033_v21 = vpop.f32.mrf.mxu0  ;;  %v4062_v33 = vadd.f32 %v9248_v41, %v9251_v58  ;;  %v9430_v41 = vadd.f32 %v9278_v53, %v9281_v28  ;;  %v9455_v26 = vadd.f32 %v9308_v6, %v9311_v46  ;;  %v10975_v28 = vld [vmem:[#allocation3_spill] sm:$0xff] }
 0x2b6   : > { %v7935_v32 = vpop.f32.mrf.mxu1  ;;  %v9459_v51 = vadd.f32 %v9313_v20, %v9316_v14  ;;  %v9468_v38 = vadd.f32 %v9318_v56, %v9321_v27  ;;  %v9472_v53 = vadd.f32 %v9323_v55, %v9326_v31  ;;  %v9488_v40 = vadd.f32 %v10978_v47, %v9346_v10  ;;  %v10981_v20 = vld [vmem:[#allocation8_spill] sm:$0xff]  ;;  %v10983_v56 = vld [vmem:[#allocation9_spill] sm:$0xff]  ;;  %v10994_v1 = vld [vmem:[#allocation15_spill] sm:$0xff] }
 0x2b7   : > { %v3665_v2 = vadd.f32 %v7935_v32, %v9232_v15  ;;  %v7991_v19 = vpop.f32.mrf.mxu0  ;;  %v4065_v15 = vadd.f32 %v9253_v57, %v9256_v61  ;;  %v9438_v57 = vadd.f32 %v9288_v43, %v9291_v49  ;;  %v9442_v61 = vadd.f32 %v9293_v29, %v9296_v48  ;;  %v10976_v49 = vld [vmem:[#allocation4_spill] sm:$0xff]  ;;  %v10977_v48 = vld [vmem:[#allocation5_spill] sm:$0xff]  ;;  %v10990_v32 = vld [vmem:[#allocation14_spill] sm:$0xff] }
 0x2b8   : > { %v3613_v39 = vpop.f32.mrf.mxu1  ;;  %v9480_v29 = vadd.f32 %v10976_v49, %v9336_v0  ;;  %v9484_v13 = vadd.f32 %v10977_v48, %v9341_v11  ;;  %v9492_v6 = vadd.f32 %v10979_v54, %v9351_v45  ;;  %v9496_v14 = vadd.f32 %v10981_v20, %v9356_v62  ;;  %v10987_v0 = vld [vmem:[#allocation12_spill] sm:$0xff]  ;;  %v10988_v11 = vld [vmem:[#allocation11_spill] sm:$0xff] }
 0x2b9   : > { %v9403_v3 = vadd.f32 %v3613_v39, %v9235_v34  ;;  %v4043_v63 = vpop.f32.mrf.mxu0  ;;  %v9500_v27 = vadd.f32 %v10983_v56, %v9361_v35  ;;  %v9509_v45 = vadd.f32 %v10988_v11, %v10987_v0  ;;  %v9513_v50 = vadd.f32 %v10991_v30, %v10990_v32  ;;  %v10993_v62 = vld [vmem:[#allocation16_spill] sm:$0xff]  ;;  %v11000_v49 = vld [vmem:[#allocation19_spill] sm:$0xff] }
 0x2ba   : > { %v7938_v37 = vpop.f32.mrf.mxu1  ;;  %10980 = vst [vmem:[#allocation3_spill] sm:$0xff] %v9492_v6  ;;  %10982 = vst [vmem:[#allocation4_spill] sm:$0xff] %v9496_v14  ;;  %v9517_v39 = vadd.f32 %v10994_v1, %v10993_v62  ;;  %v9532_v47 = vadd.f32 %v9393_v44, %v9396_v18  ;;  %v9535_v54 = vadd.f32 %v4033_v21, %v9399_v52 }
 0x2bb   : > { %v3667_v34 = vadd.f32 %v7938_v37, %v9238_v7  ;;  %v9434_v7 = vadd.f32 %v9283_v24, %v9286_v42  ;;  %v9476_v24 = vadd.f32 %v10975_v28, %v9331_v59  ;;  %v7994_v42 = vpop.f32.mrf.mxu0  ;;  %10984 = vst [vmem:[#allocation5_spill] sm:$0xff] %v9500_v27  ;;  %v10985_v59 = vld [vmem:[#allocation10_spill] sm:$0xff]  ;;  %10989 = vst [vmem:[#allocation7_spill] sm:$0xff] %v9509_v45  ;;  %v10997_v37 = vld [vmem:[#allocation17_spill] sm:$0xff] }
 0x2bc   : > { %v3623_v58 = vpop.f32.mrf.mxu1  ;;  %v9505_v10 = vadd.f32 %v10985_v59, %v9366_v16  ;;  %10992 = vst [vmem:[#allocation8_spill] sm:$0xff] %v9513_v50  ;;  %10995 = vst [vmem:[#allocation9_spill] sm:$0xff] %v9517_v39  ;;  %v9545_v59 = vadd.f32 %v4043_v63, %v9403_v3 }
 0x2bd   : > { %v3666_v5 = vadd.f32 %v3623_v58, %v9243_v22  ;;  %v9464_v22 = vld [vmem:[%s10917_s4] ss:$0 sm:$0xff]  ;;  %11002 = vst [vmem:[#allocation11_spill] sm:$0xff] %v9532_v47  ;;  %11003 = vst [vmem:[#allocation14_spill] sm:$0xff] %v9535_v54  ;;  %v9547_v44 = vadd.f32 %v7994_v42, %v3667_v34 }
 0x2be   : > { %v7999_v4 = vpop.f32.mrf.mxu1  ;;  %10986 = vst [vmem:[#allocation6_spill] sm:$0xff] %v9505_v10  ;;  %11005 = vst [vmem:[#allocation16_spill] sm:$0xff] %v9545_v59 }
 0x2bf   : > { %v4493_v43 = vadd.f32 %v7999_v4, %v4063_v8  ;;  %v10996_v8 = vld [vmem:[#allocation18_spill] sm:$0xff]  ;;  %11006 = vst [vmem:[#allocation15_spill] sm:$0xff] %v9547_v44 }
 0x2c0   : > { %v4313_v46 = vpop.f32.mrf.mxu1  ;;  %v9523_v16 = vadd.f32 %v10997_v37, %v10996_v8 }
 0x2c1   : > { %v4536_v55 = vadd.f32 %v9464_v22, %v4493_v43  ;;  %v4492_v31 = vadd.f32 %v4313_v46, %v4062_v33  ;;  %v4053_v33 = vpop.f32.mrf.mxu0  ;;  %v10999_v43 = vld [vmem:[#allocation20_spill] sm:$0xff]  ;;  %v9537_v46 = vadd.f32 %v7991_v19, %v3665_v2 }
 0x2c2   : > { %v8002_v35 = vpop.f32.mrf.mxu1  ;;  %10998 = vst [vmem:[#allocation10_spill] sm:$0xff] %v9523_v16  ;;  %v9528_v48 = vadd.f32 %v11000_v49, %v10999_v43  ;;  %v9549_v18 = vadd.f32 %v4053_v33, %v3666_v5 }
 0x2c3   : > { %v4572_v58 = vmax.f32 %v4536_v55, 0.0  ;;  %v4535_v4 = vadd.f32 %v9464_v22, %v4492_v31  ;;  %v4495_v28 = vadd.f32 %v8002_v35, %v4065_v15  ;;  %11004 = vst [vmem:[#allocation13_spill] sm:$0xff] %v9537_v46 }
 0x2c4   : > { %11001 = vst [vmem:[#allocation12_spill] sm:$0xff] %v9528_v48  ;;  %v4323_v20 = vpop.f32.mrf.mxu1  ;;  %11007 = vst [vmem:[#allocation18_spill] sm:$0xff] %v9549_v18 }
 0x2c5   : > { %v4660_v56 = vcombine.high %v4572_v58, %v4572_v58  ;;  %v9540_v55 = vrot.slane %v4572_v58, %v9405_v60  ;;  %v4571_v15 = vmax.f32 %v4535_v4, 0.0  ;;  %v4538_v31 = vadd.f32 %v9464_v22, %v4495_v28 }
 0x2c6   : > { %v4494_v52 = vadd.f32 %v4323_v20, %v4064_v25  ;;  %v8005_v19 = vpop.f32.mrf.mxu1 }
 0x2c7   : > { %v4674_v21 = vrot.slane %v4660_v56, %v9405_v60  ;;  %v4675_v2 = vcombine.high %v9540_v55, %v9540_v55  ;;  %v10921_v0 = vrot.slane %v9540_v55, 7  ;;  %v4643_v11 = vcombine.high %v4571_v15, %v4571_v15 }
 0x2c8   : > { %v4650_v3 = vrot.slane %v4571_v15, %v9405_v60  ;;  %v4574_v34 = vmax.f32 %v4538_v31, 0.0  ;;  %v4537_v63 = vadd.f32 %v9464_v22, %v4494_v52  ;;  %v4497_v25 = vadd.f32 %v8005_v19, %v9418_v23  ;;  %v4333_v5 = vpop.f32.mrf.mxu1 }
 0x2c9   : > { %v4676_v42 = vcombine.high %v4674_v21, %v4674_v21  ;;  %v5275_v30 = vrot.slane %v10921_v0, 2  ;;  %v5276_v62 = vrot.slane %v4675_v2, 7  ;;  %v5279_v1 = vrot.slane %v4674_v21, 7 }
 0x2ca   : > { %v9566_v35 = vrot.slane %v4643_v11, %v9405_v60  ;;  %v4658_v8 = vcombine.high %v4650_v3, %v4650_v3  ;;  %v7041_v37 = vrot.slane %v4650_v3, 9  ;;  %v4694_v33 = vcombine.high %v4574_v34, %v4574_v34  ;;  %v8008_v58 = vpop.f32.mrf.mxu1 }
 0x2cb   : > { %v5277_v4 = vsel %vm9556_vm11, %v5275_v30, %v5276_v62  ;;  %v5278_v28 = vrot.slane %v5276_v62, 2  ;;  %v5281_v43 = vrot.slane %v5279_v1, 2  ;;  %v5282_v23 = vrot.slane %v4676_v42, 7 }
 0x2cc   : > { %v4659_v49 = vcombine.high %v9566_v35, %v9566_v35  ;;  %v9572_v20 = vrot.slane %v4658_v8, 7  ;;  %v10922_v56 = vrot.slane %v9566_v35, 7  ;;  %v9576_v15 = vrot.slane %v4574_v34, %v9405_v60  ;;  %v4343_v2 = vpop.f32.mrf.mxu1 }
 0x2cd   : > { %v5280_v31 = vsel %vm9556_vm11, %v5278_v28, %v5279_v1  ;;  %v5284_v52 = vrot.slane %v5282_v23, 2  ;;  %v4708_v19 = vrot.slane %v4694_v33, %v9405_v60  ;;  %v4573_v21 = vmax.f32 %v4537_v63, 0.0 }
 0x2ce   : > { %v5687_v11 = vcombine.low %v5277_v4, %v5280_v31  ;;  %v9584_v3 = vsel %vm9556_vm11, %v7041_v37, %v9572_v20  ;;  %v9589_v34 = vrot.slane %v10922_v56, 2  ;;  %v9591_v30 = vrot.slane %v4659_v49, 7  ;;  %v8011_v42 = vpop.f32.mrf.mxu1 }
 0x2cf   : > { %v4709_v62 = vcombine.high %v9576_v15, %v9576_v15  ;;  %v4710_v1 = vcombine.high %v4708_v19, %v4708_v19  ;;  %v10923_v63 = vrot.slane %v9576_v15, 7  ;;  %v5301_v33 = vrot.slane %v4708_v19, 7 }
 0x2d0   : > { %v5695_v8 = vrot.slane %v5687_v11, %v9405_v60  ;;  %v4677_v4 = vcombine.high %v4573_v21, %v4573_v21  ;;  %v4684_v37 = vrot.slane %v4573_v21, %v9405_v60  ;;  %v5283_v19 = vsel %vm9556_vm11, %v5281_v43, %v5282_v23  ;;  %v4353_v54 = vpop.f32.mrf.mxu1 }
 0x2d1   : > { %v9601_v31 = vrot.slane %v10923_v63, 2  ;;  %v9603_v49 = vrot.slane %v4709_v62, 7  ;;  %v9605_v0 = vrot.slane %v4710_v1, 7  ;;  %v5303_v56 = vrot.slane %v5301_v33, 2 }
 0x2d2   : > { %v4691_v18 = vrot.slane %v4677_v4, %v9405_v60  ;;  %v4692_v44 = vcombine.high %v4684_v37, %v4684_v37  ;;  %v5285_v63 = vrot.slane %v4684_v37, 7  ;;  %v4540_v21 = vadd.f32 %v9464_v22, %v4497_v25 }
 0x2d3   : > { %v5300_v11 = vrot.slane %v9603_v49, 2  ;;  %v5306_v62 = vrot.slane %v9605_v0, 2  ;;  %v5305_v1 = vsel %vm9556_vm11, %v5303_v56, %v9605_v0  ;;  %v4496_v46 = vadd.f32 %v4333_v5, %v9422_v12 }
 0x2d4   : > { %v4693_v28 = vcombine.high %v4691_v18, %v4691_v18  ;;  %v7042_v4 = vrot.slane %v4692_v44, 9  ;;  %v5289_v59 = vrot.slane %v4691_v18, 7  ;;  %v5286_v23 = vsel %vm9556_vm11, %v5284_v52, %v5285_v63 }
 0x2d5   : > { %v5302_v43 = vsel %vm9556_vm11, %v5300_v11, %v5301_v33  ;;  %v5688_v18 = vcombine.low %v5283_v19, %v5286_v23  ;;  %v4576_v56 = vmax.f32 %v4540_v21, 0.0  ;;  %v4539_v33 = vadd.f32 %v9464_v22, %v4496_v46 }
 0x2d6   : > { %v9625_v47 = vcombine.low %v5302_v43, %v5305_v1  ;;  %v9629_v37 = vsel %vm9556_vm11, %v7042_v4, %v5289_v59  ;;  %v9631_v0 = vrot.slane %v5289_v59, 2  ;;  %v9633_v44 = vrot.slane %v4693_v28, 7 }
 0x2d7   : > { %v4499_v52 = vadd.f32 %v8008_v58, %v9426_v17  ;;  %v4498_v12 = vadd.f32 %v4343_v2, %v9430_v41  ;;  %v4501_v5 = vadd.f32 %v8011_v42, %v9434_v7  ;;  %v4500_v63 = vadd.f32 %v4353_v54, %v9438_v57 }
 0x2d8   : > { %v5702_v11 = vrot.slane %v5688_v18, %v9405_v60  ;;  %v4728_v59 = vcombine.high %v4576_v56, %v4576_v56  ;;  %v9643_v28 = vrot.slane %v4576_v56, %v9405_v60  ;;  %v4575_v19 = vmax.f32 %v4539_v33, 0.0 }
 0x2d9   : > { %v4542_v21 = vadd.f32 %v9464_v22, %v4499_v52  ;;  %v4541_v46 = vadd.f32 %v9464_v22, %v4498_v12  ;;  %v4544_v17 = vadd.f32 %v9464_v22, %v4501_v5  ;;  %v4543_v58 = vadd.f32 %v9464_v22, %v4500_v63 }
 0x2da   : > { %v9649_v41 = vcombine.low %v5695_v8, %v5702_v11  ;;  %v9652_v7 = vrot.slane %v4728_v59, %v9405_v60  ;;  %v4743_v57 = vcombine.high %v9643_v28, %v9643_v28  ;;  %v10924_v54 = vrot.slane %v9643_v28, 7 }
 0x2db   : > { %v4711_v2 = vcombine.high %v4575_v19, %v4575_v19  ;;  %v4718_v42 = vrot.slane %v4575_v19, %v9405_v60  ;;  %v4578_v1 = vmax.f32 %v4542_v21, 0.0  ;;  %v4577_v4 = vmax.f32 %v4541_v46, 0.0  ;;  %v8014_v19 = vpop.f32.mrf.mxu1 }
 0x2dc   : > { %v4744_v43 = vcombine.high %v9652_v7, %v9652_v7  ;;  %v9662_v8 = vrot.slane %v10924_v54, 2  ;;  %v9664_v23 = vrot.slane %v4743_v57, 7  ;;  %v10925_v18 = vrot.slane %v9652_v7, 7 }
 0x2dd   : > { %v9668_v56 = vrot.slane %v4711_v2, %v9405_v60  ;;  %v4726_v33 = vcombine.high %v4718_v42, %v4718_v42  ;;  %v5307_v52 = vrot.slane %v4718_v42, 7  ;;  %v4762_v12 = vcombine.high %v4578_v1, %v4578_v1 }
 0x2de   : > { %v5325_v11 = vrot.slane %v10925_v18, 2  ;;  %v5326_v59 = vrot.slane %v4744_v43, 7  ;;  %v9683_v5 = vrot.slane %v4578_v1, %v9405_v60  ;;  %v4745_v25 = vcombine.high %v4577_v4, %v4577_v4 }
 0x2df   : > { %v4727_v21 = vcombine.high %v9668_v56, %v9668_v56  ;;  %v5308_v46 = vsel %vm9556_vm11, %v5306_v62, %v5307_v52  ;;  %v5309_v57 = vrot.slane %v5307_v52, 2  ;;  %v5310_v2 = vrot.slane %v4726_v33, 7 }
 0x2e0   : > { %v5328_v42 = vrot.slane %v5326_v59, 2  ;;  %v9686_v63 = vrot.slane %v4762_v12, %v9405_v60  ;;  %v4752_v48 = vrot.slane %v4577_v4, %v9405_v60  ;;  %v4777_v33 = vcombine.high %v9683_v5, %v9683_v5  ;;  %v4363_v12 = vpop.f32.mrf.mxu1 }
 0x2e1   : > { %v5311_v43 = vsel %vm9556_vm11, %v5309_v57, %v5310_v2  ;;  %v9690_v18 = vrot.slane %v4727_v21, 7  ;;  %v10926_v52 = vrot.slane %v9683_v5, 7  ;;  %v4759_v21 = vrot.slane %v4745_v25, %v9405_v60 }
 0x2e2   : > { %v9693_v62 = vcombine.low %v5308_v46, %v5311_v43  ;;  %v4778_v1 = vcombine.high %v9686_v63, %v9686_v63  ;;  %v10927_v57 = vrot.slane %v9686_v63, 7  ;;  %v4760_v2 = vcombine.high %v4752_v48, %v4752_v48  ;;  %v8017_v10 = vpop.f32.mrf.mxu1 }
 0x2e3   : > { %v9705_v4 = vrot.slane %v10926_v52, 2  ;;  %v9707_v46 = vrot.slane %v4777_v33, 7  ;;  %v5327_v16 = vsel %vm9556_vm11, %v5325_v11, %v5326_v59  ;;  %v4761_v54 = vcombine.high %v4759_v21, %v4759_v21 }
 0x2e4   : > { %v9709_v43 = vrot.slane %v4778_v1, 7  ;;  %v9715_v39 = vrot.slane %v10927_v57, 2  ;;  %v5329_v50 = vrot.slane %v4752_v48, 7  ;;  %v5332_v45 = vrot.slane %v4760_v2, 7 }
 0x2e5   : > { %v5335_v52 = vrot.slane %v4759_v21, 7  ;;  %v9725_v27 = vrot.slane %v4761_v54, 9  ;;  %v4580_v2 = vmax.f32 %v4544_v17, 0.0  ;;  %v4579_v14 = vmax.f32 %v4543_v58, 0.0 }
 0x2e6   : > { %v5350_v1 = vrot.slane %v9709_v43, 2  ;;  %v5330_v11 = vsel %vm9556_vm11, %v5328_v42, %v5329_v50  ;;  %v5331_v59 = vrot.slane %v5329_v50, 2  ;;  %v5334_v57 = vrot.slane %v5332_v45, 2 }
 0x2e7   : > { %v9727_v48 = vcombine.low %v5327_v16, %v5330_v11  ;;  %v4503_v6 = vadd.f32 %v8014_v19, %v9442_v61  ;;  %v4502_v33 = vadd.f32 %v4363_v12, %v9447_v9  ;;  %v4505_v42 = vadd.f32 %v8017_v10, %v9451_v36 }
 0x2e8   : > { %v5333_v25 = vsel %vm9556_vm11, %v5331_v59, %v5332_v45  ;;  %v5336_v21 = vsel %vm9556_vm11, %v5334_v57, %v5335_v52  ;;  %v4796_v54 = vcombine.high %v4580_v2, %v4580_v2  ;;  %v4803_v16 = vrot.slane %v4580_v2, %v9405_v60 }
 0x2e9   : > { %v9736_v50 = vcombine.low %v5333_v25, %v5336_v21  ;;  %v4779_v11 = vcombine.high %v4579_v14, %v4579_v14  ;;  %v4786_v17 = vrot.slane %v4579_v14, %v9405_v60  ;;  %v4546_v61 = vadd.f32 %v9464_v22, %v4503_v6 }
 0x2ea   : > { %v4545_v58 = vadd.f32 %v9464_v22, %v4502_v33  ;;  %v4548_v45 = vadd.f32 %v9464_v22, %v4505_v42  ;;  %v9744_v19 = vrot.slane %v4796_v54, %v9405_v60  ;;  %v4811_v9 = vcombine.high %v4803_v16, %v4803_v16 }
 0x2eb   : > { %v7045_v52 = vrot.slane %v4803_v16, 9  ;;  %v4793_v36 = vrot.slane %v4779_v11, %v9405_v60  ;;  %v4794_v10 = vcombine.high %v4786_v17, %v4786_v17  ;;  %v5351_v12 = vrot.slane %v4786_v17, 7 }
 0x2ec   : > { %11010 = vst [vmem:[#allocation17_spill] sm:$0xff] %v9744_v19  ;;  %v4582_v57 = vmax.f32 %v4546_v61, 0.0  ;;  %v4581_v25 = vmax.f32 %v4545_v58, 0.0  ;;  %v4812_v14 = vcombine.high %v9744_v19, %v9744_v19  ;;  %v9749_v59 = vrot.slane %v4811_v9, 7 }
 0x2ed   : > { %v10928_v6 = vrot.slane %v9744_v19, 7  ;;  %v4795_v33 = vcombine.high %v4793_v36, %v4793_v36  ;;  %v5352_v2 = vsel %vm9556_vm11, %v5350_v1, %v5351_v12  ;;  %v5353_v21 = vrot.slane %v5351_v12, 2 }
 0x2ee   : > { %11011 = vst [vmem:[#allocation20_spill] sm:$0xff] %v9749_v59  ;;  %v5354_v42 = vrot.slane %v4794_v10, 7  ;;  %v5357_v54 = vrot.slane %v4793_v36, 7  ;;  %v9757_v16 = vsel %vm9556_vm11, %v7045_v52, %v9749_v59  ;;  %v9764_v61 = vrot.slane %v4812_v14, 7 }
 0x2ef   : > { %11012 = vst [vmem:[#allocation19_spill] sm:$0xff] %v9757_v16  ;;  %v9762_v17 = vrot.slane %v10928_v6, 2  ;;  %v5360_v10 = vrot.slane %v4795_v33, 7  ;;  %v4830_v52 = vcombine.high %v4582_v57, %v4582_v57  ;;  %v4837_v16 = vrot.slane %v4582_v57, %v9405_v60 }
 0x2f0   : > { %11014 = vst [vmem:[#allocation22_spill] sm:$0xff] %v9764_v61  ;;  %v5355_v58 = vsel %vm9556_vm11, %v5353_v21, %v5354_v42  ;;  %v5356_v1 = vrot.slane %v5354_v42, 2  ;;  %v5359_v9 = vrot.slane %v5357_v54, 2  ;;  %v5372_v36 = vrot.slane %v9764_v61, 2  ;;  %v4373_v21 = vpop.f32.mrf.mxu1 }
 0x2f1   : > { %11013 = vst [vmem:[#allocation21_spill] sm:$0xff] %v9762_v17  ;;  %v9769_v12 = vcombine.low %v5352_v2, %v5355_v58  ;;  %v4813_v6 = vcombine.high %v4581_v25, %v4581_v25  ;;  %v4820_v17 = vrot.slane %v4581_v25, %v9405_v60  ;;  %v4844_v33 = vrot.slane %v4830_v52, %v9405_v60 }
 0x2f2   : > { %v5358_v11 = vsel %vm9556_vm11, %v5356_v1, %v5357_v54  ;;  %v5361_v14 = vsel %vm9556_vm11, %v5359_v9, %v5360_v10  ;;  %v4845_v61 = vcombine.high %v4837_v16, %v4837_v16  ;;  %v5385_v2 = vrot.slane %v4837_v16, 7 }
 0x2f3   : > { %11015 = vst [vmem:[#allocation23_spill] sm:$0xff] %v9769_v12  ;;  %v9777_v42 = vcombine.low %v5358_v11, %v5361_v14  ;;  %v4827_v58 = vrot.slane %v4813_v6, %v9405_v60  ;;  %v4828_v59 = vcombine.high %v4820_v17, %v4820_v17  ;;  %v5373_v57 = vrot.slane %v4820_v17, 7 }
 0x2f4   : > { %v4584_v19 = vmax.f32 %v4548_v45, 0.0  ;;  %v4846_v12 = vcombine.high %v4844_v33, %v4844_v33  ;;  %v7046_v54 = vrot.slane %v4845_v61, 9  ;;  %v5389_v1 = vrot.slane %v4844_v33, 7 }
 0x2f5   : > { %v4504_v9 = vadd.f32 %v4373_v21, %v9455_v26  ;;  %v4829_v10 = vcombine.high %v4827_v58, %v4827_v58  ;;  %v9784_v25 = vsel %vm9556_vm11, %v5372_v36, %v5373_v57  ;;  %v5375_v11 = vrot.slane %v5373_v57, 2 }
 0x2f6   : > { %v5376_v14 = vrot.slane %v4828_v59, 7  ;;  %v9788_v16 = vsel %vm9556_vm11, %v7046_v54, %v5389_v1  ;;  %v9790_v6 = vrot.slane %v5389_v1, 2  ;;  %v9792_v17 = vrot.slane %v4846_v12, 7 }
 0x2f7   : > { %11016 = vst [vmem:[#allocation24_spill] sm:$0xff] %v9788_v16  ;;  %v5379_v45 = vrot.slane %v4827_v58, 7  ;;  %v5382_v52 = vrot.slane %v4829_v10, 7  ;;  %v4864_v21 = vcombine.high %v4584_v19, %v4584_v19  ;;  %v9798_v59 = vrot.slane %v4584_v19, %v9405_v60 }
 0x2f8   : > { %11017 = vst [vmem:[#allocation25_spill] sm:$0xff] %v9790_v6  ;;  %v5377_v61 = vsel %vm9556_vm11, %v5375_v11, %v5376_v14  ;;  %v5378_v26 = vrot.slane %v5376_v14, 2  ;;  %v5394_v36 = vrot.slane %v9792_v17, 2  ;;  %v4547_v57 = vadd.f32 %v9464_v22, %v4504_v9  ;;  %v8020_v14 = vpop.f32.mrf.mxu1 }
 0x2f9   : > { %v5381_v33 = vrot.slane %v5379_v45, 2  ;;  %v5384_v12 = vrot.slane %v5382_v52, 2  ;;  %v9804_v58 = vrot.slane %v4864_v21, %v9405_v60  ;;  %v11019_v1 = vrot.slane %v9566_v35, 7 }
 0x2fa   : > { %v5380_v54 = vsel %vm9556_vm11, %v5378_v26, %v5379_v45  ;;  %v11020_v10 = vrot.slane %v9572_v20, 2  ;;  %v4879_v9 = vcombine.high %v9798_v59, %v9798_v59  ;;  %v5407_v45 = vrot.slane %v9798_v59, 7 }
 0x2fb   : > { %11018 = vst [vmem:[#allocation26_spill] sm:$0xff] %v9804_v58  ;;  %v5383_v19 = vsel %vm9556_vm11, %v5381_v33, %v5382_v52  ;;  %v9814_v16 = vcombine.low %v5377_v61, %v5380_v54  ;;  %v5386_v26 = vsel %vm9556_vm11, %v5384_v12, %v5385_v2  ;;  %v4880_v35 = vcombine.high %v9804_v58, %v9804_v58 }
 0x2fc   : > { %v5268_v11 = vsel %vm9556_vm11, %v11020_v10, %v11019_v1  ;;  %v4583_v21 = vmax.f32 %v4547_v57, 0.0  ;;  %v9824_v1 = vcombine.low %v5383_v19, %v5386_v26  ;;  %v9826_v10 = vrot.slane %v5407_v45, 2  ;;  %v4383_v19 = vpop.f32.mrf.mxu1 }
 0x2fd   : > { %v9828_v61 = vrot.slane %v4879_v9, 7  ;;  %v5271_v52 = vsel %vm9556_vm11, %v9589_v34, %v9591_v30  ;;  %v9834_v33 = vrot.slane %v4880_v35, 7  ;;  %v11021_v54 = vrot.slane %v9540_v55, 7 }
 0x2fe   : > { %v4847_v2 = vcombine.high %v4583_v21, %v4583_v21  ;;  %v4854_v59 = vrot.slane %v4583_v21, %v9405_v60  ;;  %v11022_v57 = vrot.slane %v9591_v30, 2  ;;  %v5670_v34 = vcombine.low %v9584_v3, %v5268_v11 }
 0x2ff   : > { %v4507_v35 = vadd.f32 %v8020_v14, %v9459_v51  ;;  %v5416_v21 = vrot.slane %v9834_v33, 2  ;;  %v4506_v6 = vadd.f32 %v4383_v19, %v9468_v38 }
 0x300   : > { %v5274_v12 = vsel %vm9556_vm11, %v11022_v57, %v11021_v54  ;;  %v4861_v55 = vrot.slane %v4847_v2, %v9405_v60  ;;  %v4862_v20 = vcombine.high %v4854_v59, %v4854_v59  ;;  %v5395_v30 = vrot.slane %v4854_v59, 7 }
 0x301   : > { %v5671_v26 = vcombine.low %v5271_v52, %v5274_v12  ;;  %v5678_v58 = vrot.slane %v5670_v34, %v9405_v60  ;;  %v4550_v57 = vadd.f32 %v9464_v22, %v4507_v35  ;;  %v4549_v59 = vadd.f32 %v9464_v22, %v4506_v6 }
 0x302   : > { %v4863_v9 = vcombine.high %v4861_v55, %v4861_v55  ;;  %v9857_v3 = vsel %vm9556_vm11, %v5394_v36, %v5395_v30  ;;  %v9859_v51 = vrot.slane %v5395_v30, 2  ;;  %v9861_v11 = vrot.slane %v4862_v20, 7 }
 0x303   : > { %v5685_v54 = vrot.slane %v5671_v26, %v9405_v60  ;;  %v5401_v14 = vrot.slane %v4861_v55, 7  ;;  %v4586_v2 = vmax.f32 %v4550_v57, 0.0  ;;  %v5293_v36 = vsel %vm9556_vm11, %v9631_v0, %v9633_v44 }
 0x304   : > { %v5399_v12 = vsel %vm9556_vm11, %v9859_v51, %v9861_v11  ;;  %v5400_v38 = vrot.slane %v9861_v11, 2  ;;  %v5404_v19 = vrot.slane %v4863_v9, 7  ;;  %v4585_v6 = vmax.f32 %v4549_v59, 0.0  ;;  %v8023_v59 = vpop.f32.mrf.mxu1 }
 0x305   : > { %v5686_v52 = vcombine.low %v5678_v58, %v5685_v54  ;;  %v5403_v20 = vrot.slane %v5401_v14, 2  ;;  %v4898_v58 = vcombine.high %v4586_v2, %v4586_v2  ;;  %v4905_v34 = vrot.slane %v4586_v2, %v9405_v60 }
 0x306   : > { %v5402_v26 = vsel %vm9556_vm11, %v5400_v38, %v5401_v14  ;;  %v5406_v35 = vrot.slane %v5404_v19, 2  ;;  %v11023_v9 = vrot.slane %v9576_v15, 7  ;;  %v11024_v55 = vrot.slane %v9633_v44, 2 }
 0x307   : > { %8053 = vmatprep.mubr.msk.f32.mxu0 %vm674_vm2, %v5686_v52  ;;  %v5704_v30 = vcombine.low %v9629_v37, %v5293_v36  ;;  %v5405_v54 = vsel %vm9556_vm11, %v5403_v20, %v5404_v19  ;;  %v4912_v57 = vrot.slane %v4898_v58, %v9405_v60  ;;  %v4913_v52 = vcombine.high %v4905_v34, %v4905_v34 }
 0x308   : > { %8054 = vmatmul.mubr.msk.f32.vlgmr.msra.gmra.mxu0 %vm674_vm2, %v9649_v41  ;;  %v5296_v0 = vsel %vm9556_vm11, %v11024_v55, %v11023_v9  ;;  %v5429_v14 = vrot.slane %v4905_v34, 7  ;;  %v9891_v2 = vsel %vm9556_vm11, %v5406_v35, %v5407_v45  ;;  %v9893_v41 = vcombine.low %v5402_v26, %v5405_v54 }
 0x309   : > { %v4881_v15 = vcombine.high %v4585_v6, %v4585_v6  ;;  %v4888_v44 = vrot.slane %v4585_v6, %v9405_v60  ;;  %v4914_v38 = vcombine.high %v4912_v57, %v4912_v57  ;;  %v5432_v37 = vrot.slane %v4913_v52, 7 }
 0x30a   : > { %v5431_v9 = vrot.slane %v5429_v14, 2  ;;  %v5435_v36 = vrot.slane %v4912_v57, 7  ;;  %v11025_v45 = vsel %vm9556_vm11, %v9601_v31, %v9603_v49  ;;  %v5712_v55 = vrot.slane %v5704_v30, %v9405_v60  ;;  %v4393_v31 = vpop.f32.mrf.mxu1 }
 0x30b   : > { %v9897_v19 = vrot.slane %v4881_v15, %v9405_v60  ;;  %v4896_v20 = vcombine.high %v4888_v44, %v4888_v44  ;;  %v5417_v58 = vrot.slane %v4888_v44, 7  ;;  %v5705_v34 = vcombine.low %v5296_v0, %v11025_v45 }
 0x30c   : > { %v5433_v26 = vsel %vm9556_vm11, %v5431_v9, %v5432_v37  ;;  %v5434_v6 = vrot.slane %v5432_v37, 2  ;;  %v9906_v35 = vrot.slane %v4914_v38, 9  ;;  %v5729_v30 = vrot.slane %v9625_v47, %v9405_v60  ;;  %v11045_v9 = vld [vmem:[#allocation4_spill] sm:$0xff] }
 0x30d   : > { %v4897_v54 = vcombine.high %v9897_v19, %v9897_v19  ;;  %v9913_v57 = vsel %vm9556_vm11, %v5416_v21, %v5417_v58  ;;  %v9915_v52 = vrot.slane %v5417_v58, 2  ;;  %v9917_v15 = vrot.slane %v4896_v20, 7 }
 0x30e   : > { %v5436_v49 = vsel %vm9556_vm11, %v5434_v6, %v5435_v36  ;;  %v10937_v0 = vrot.slane %v9897_v19, 7  ;;  %v5719_v44 = vrot.slane %v5705_v34, %v9405_v60  ;;  %v5736_v58 = vrot.slane %v9693_v62, %v9405_v60 }
 0x30f   : > { %v9925_v38 = vcombine.low %v5433_v26, %v5436_v49  ;;  %v5426_v37 = vrot.slane %v4897_v54, 7  ;;  %v4509_v45 = vadd.f32 %v8023_v59, %v9472_v53  ;;  %v4508_v34 = vadd.f32 %v4393_v31, %v9476_v24 }
 0x310   : > { %v5425_v36 = vrot.slane %v10937_v0, 2  ;;  %v5720_v20 = vcombine.low %v5712_v55, %v5719_v44  ;;  %v11026_v26 = vrot.slane %v9668_v56, 9  ;;  %v11027_v54 = vrot.slane %v9643_v28, 7  ;;  %v8026_v44 = vpop.f32.mrf.mxu1 }
 0x311   : > { %v5428_v47 = vrot.slane %v5426_v37, 2  ;;  %v11028_v49 = vrot.slane %v9690_v18, 2  ;;  %v5737_v24 = vcombine.low %v5729_v30, %v5736_v58  ;;  %v4552_v62 = vadd.f32 %v9464_v22, %v4509_v45 }
 0x312   : > { %v5315_v6 = vsel %vm9556_vm11, %v11026_v26, %v9690_v18  ;;  %v5427_v53 = vsel %vm9556_vm11, %v5425_v36, %v5426_v37  ;;  %8056 = vmatprep.mubr.msk.f32.mxu0 %vm674_vm2, %v5720_v20  ;;  %v11029_v56 = vrot.slane %v9652_v7, 7  ;;  %v11030_v59 = vrot.slane %v9664_v23, 2 }
 0x313   : > { %v5318_v55 = vsel %vm9556_vm11, %v11028_v49, %v11027_v54  ;;  %v5430_v18 = vsel %vm9556_vm11, %v5428_v47, %v5429_v14  ;;  %v4551_v31 = vadd.f32 %v9464_v22, %v4508_v34  ;;  %v11031_v30 = vsel %vm9556_vm11, %v9662_v8, %v9664_v23  ;;  %8057 = vmatmul.mubr.msk.f32.gmra.mxu0 %vm674_vm2, %v5737_v24 }
 0x314   : > { %v5324_v28 = vsel %vm9556_vm11, %v11030_v59, %v11029_v56  ;;  %v5738_v26 = vcombine.low %v5315_v6, %v5318_v55  ;;  %v9967_v36 = vcombine.low %v5427_v53, %v5430_v18  ;;  %v4588_v7 = vmax.f32 %v4552_v62, 0.0 }
 0x315   : > { %v5739_v37 = vcombine.low %v11031_v30, %v5324_v28  ;;  %v4511_v20 = vadd.f32 %v8026_v44, %v9480_v29  ;;  %v5763_v58 = vrot.slane %v9727_v48, %v9405_v60  ;;  %v4587_v14 = vmax.f32 %v4551_v31, 0.0  ;;  %v4403_v31 = vpop.f32.mrf.mxu1 }
 0x316   : > { %v5746_v45 = vrot.slane %v5738_v26, %v9405_v60  ;;  %v5770_v34 = vrot.slane %v9736_v50, %v9405_v60  ;;  %v4932_v8 = vcombine.high %v4588_v7, %v4588_v7  ;;  %v4939_v23 = vrot.slane %v4588_v7, %v9405_v60 }
 0x317   : > { %v5753_v47 = vrot.slane %v5739_v37, %v9405_v60  ;;  %v4554_v6 = vadd.f32 %v9464_v22, %v4511_v20  ;;  %v11032_v54 = vrot.slane %v9683_v5, 7  ;;  %v4915_v48 = vcombine.high %v4587_v14, %v4587_v14 }
 0x318   : > { %v4922_v49 = vrot.slane %v4587_v14, %v9405_v60  ;;  %v5771_v44 = vcombine.low %v5763_v58, %v5770_v34  ;;  %v4946_v53 = vrot.slane %v4932_v8, %v9405_v60  ;;  %v4947_v24 = vcombine.high %v4939_v23, %v4939_v23 }
 0x319   : > { %v5340_v29 = vsel %vm9556_vm11, %v9725_v27, %v11032_v54  ;;  %v5754_v55 = vcombine.low %v5746_v45, %v5753_v47  ;;  %v5451_v50 = vrot.slane %v4939_v23, 7  ;;  %v4590_v62 = vmax.f32 %v4554_v6, 0.0 }
 0x31a   : > { %v9987_v56 = vrot.slane %v4915_v48, %v9405_v60  ;;  %v4930_v59 = vcombine.high %v4922_v49, %v4922_v49  ;;  %v5439_v28 = vrot.slane %v4922_v49, 7  ;;  %v11033_v5 = vrot.slane %v9686_v63, 7  ;;  %v8029_v48 = vpop.f32.mrf.mxu1 }
 0x31b   : > { %8059 = vmatprep.mubr.msk.f32.mxu0 %vm674_vm2, %v5754_v55  ;;  %v11034_v27 = vrot.slane %v9707_v46, 2  ;;  %v4948_v26 = vcombine.high %v4946_v53, %v4946_v53  ;;  %v9996_v30 = vrot.slane %v5451_v50, 2  ;;  %v9998_v37 = vrot.slane %v4947_v24, 7 }
 0x31c   : > { %v5457_v7 = vrot.slane %v4946_v53, 7  ;;  %8060 = vmatmul.mubr.msk.f32.gmra.mxu0 %vm674_vm2, %v5771_v44  ;;  %v4931_v20 = vcombine.high %v9987_v56, %v9987_v56  ;;  %v10006_v63 = vsel %vm9556_vm11, %v9906_v35, %v5439_v28  ;;  %v10008_v58 = vrot.slane %v5439_v28, 2 }
 0x31d   : > { %v5346_v18 = vsel %vm9556_vm11, %v11034_v27, %v11033_v5  ;;  %v10010_v14 = vrot.slane %v4930_v59, 7  ;;  %v5456_v47 = vrot.slane %v9998_v37, 2  ;;  %v5460_v8 = vrot.slane %v4948_v26, 7 }
 0x31e   : > { %v5459_v34 = vrot.slane %v5457_v7, 2  ;;  %v10935_v6 = vrot.slane %v9987_v56, 7  ;;  %v10023_v54 = vrot.slane %v4931_v20, 7  ;;  %v4966_v44 = vcombine.high %v4590_v62, %v4590_v62 }
 0x31f   : > { %v5458_v49 = vsel %vm9556_vm11, %v5456_v47, %v5457_v7  ;;  %v10030_v53 = vrot.slane %v4590_v62, %v9405_v60  ;;  %v5349_v5 = vsel %vm9556_vm11, %v9715_v39, %v9709_v43  ;;  %v11035_v7 = vsel %vm9556_vm11, %v9705_v4, %v9707_v46 }
 0x320   : > { %v5461_v55 = vsel %vm9556_vm11, %v5459_v34, %v5460_v8  ;;  %v10036_v59 = vrot.slane %v10935_v6, 2  ;;  %v5450_v28 = vrot.slane %v10023_v54, 2  ;;  %v4980_v27 = vrot.slane %v4966_v44, %v9405_v60  ;;  %v4413_v8 = vpop.f32.mrf.mxu1  ;;  %v11044_v6 = vld [vmem:[#allocation3_spill] sm:$0xff] }
 0x321   : > { %v10032_v24 = vcombine.low %v5458_v49, %v5461_v55  ;;  %v4981_v26 = vcombine.high %v10030_v53, %v10030_v53  ;;  %v10933_v62 = vrot.slane %v10030_v53, 7  ;;  %v5772_v20 = vcombine.low %v5340_v29, %v11035_v7 }
 0x322   : > { %v10054_v47 = vsel %vm9556_vm11, %v5450_v28, %v5451_v50  ;;  %v5773_v34 = vcombine.low %v5346_v18, %v5349_v5  ;;  %v4510_v39 = vadd.f32 %v4403_v31, %v9484_v13  ;;  %v4513_v43 = vadd.f32 %v8029_v48, %v9488_v40  ;;  %v11036_v5 = vld [vmem:[#allocation23_spill] sm:$0xff] }
 0x323   : > { %v4982_v49 = vcombine.high %v4980_v27, %v4980_v27  ;;  %v5475_v55 = vrot.slane %v10933_v62, 2  ;;  %v5476_v44 = vrot.slane %v4981_v26, 7  ;;  %v5479_v45 = vrot.slane %v4980_v27, 7  ;;  %v8032_v26 = vpop.f32.mrf.mxu1 }
 0x324   : > { %v5780_v23 = vrot.slane %v5772_v20, %v9405_v60  ;;  %v5787_v4 = vrot.slane %v5773_v34, %v9405_v60  ;;  %v4553_v46 = vadd.f32 %v9464_v22, %v4510_v39  ;;  %v4556_v29 = vadd.f32 %v9464_v22, %v4513_v43  ;;  %v11037_v39 = vld [vmem:[#allocation17_spill] sm:$0xff] }
 0x325   : > { %v5477_v13 = vsel %vm9556_vm11, %v5475_v55, %v5476_v44  ;;  %v5478_v50 = vrot.slane %v5476_v44, 2  ;;  %v10066_v40 = vrot.slane %v5479_v45, 2  ;;  %v10068_v18 = vrot.slane %v4982_v49, 7  ;;  %v11039_v55 = vld [vmem:[#allocation20_spill] sm:$0xff] }
 0x326   : > { %v5788_v31 = vcombine.low %v5780_v23, %v5787_v4  ;;  %v4589_v48 = vmax.f32 %v4553_v46, 0.0  ;;  %v4592_v28 = vmax.f32 %v4556_v29, 0.0  ;;  %v5797_v27 = vrot.slane %v11036_v5, %v9405_v60  ;;  %v11042_v5 = vld [vmem:[#allocation21_spill] sm:$0xff] }
 0x327   : > { %v5480_v7 = vsel %vm9556_vm11, %v5478_v50, %v5479_v45  ;;  %v5804_v34 = vrot.slane %v9777_v42, %v9405_v60  ;;  %v11038_v43 = vrot.slane %v11037_v39, 7  ;;  %v11040_v49 = vrot.slane %v11039_v55, 2  ;;  %v11041_v42 = vld [vmem:[#allocation22_spill] sm:$0xff]  ;;  %v11043_v55 = vld [vmem:[#allocation19_spill] sm:$0xff] }
 0x328   : > { %v10083_v44 = vcombine.low %v5477_v13, %v5480_v7  ;;  %8062 = vmatprep.mubr.msk.f32.mxu0 %vm674_vm2, %v5788_v31  ;;  %v4949_v4 = vcombine.high %v4589_v48, %v4589_v48  ;;  %v4956_v46 = vrot.slane %v4589_v48, %v9405_v60  ;;  %v5000_v45 = vcombine.high %v4592_v28, %v4592_v28  ;;  %v4423_v48 = vpop.f32.mrf.mxu1 }
 0x329   : > { %v5368_v23 = vsel %vm9556_vm11, %v11040_v49, %v11038_v43  ;;  %v10088_v29 = vrot.slane %v4592_v28, %v9405_v60  ;;  %v5805_v50 = vcombine.low %v5797_v27, %v5804_v34  ;;  %v5371_v39 = vsel %vm9556_vm11, %v11042_v5, %v11041_v42 }
 0x32a   : > { %v5806_v62 = vcombine.low %v11043_v55, %v5368_v23  ;;  %v10096_v13 = vrot.slane %v4949_v4, %v9405_v60  ;;  %v4964_v7 = vcombine.high %v4956_v46, %v4956_v46  ;;  %v7049_v31 = vrot.slane %v4956_v46, 9 }
 0x32b   : > { %v5014_v43 = vrot.slane %v5000_v45, %v9405_v60  ;;  %v5015_v28 = vcombine.high %v10088_v29, %v10088_v29  ;;  %v10934_v27 = vrot.slane %v10088_v29, 7  ;;  %8063 = vmatmul.mubr.msk.f32.gmra.mxu0 %vm674_vm2, %v5805_v50  ;;  %v5807_v34 = vcombine.low %v5371_v39, %v9784_v25 }
 0x32c   : > { %v5814_v49 = vrot.slane %v5806_v62, %v9405_v60  ;;  %v4965_v23 = vcombine.high %v10096_v13, %v10096_v13  ;;  %v10107_v4 = vrot.slane %v4964_v7, 7  ;;  %v10936_v46 = vrot.slane %v10096_v13, 7 }
 0x32d   : > { %v5016_v45 = vcombine.high %v5014_v43, %v5014_v43  ;;  %v10112_v42 = vrot.slane %v10934_v27, 2  ;;  %v10114_v5 = vrot.slane %v5015_v28, 7  ;;  %v5501_v55 = vrot.slane %v5014_v43, 7  ;;  %v8035_v27 = vpop.f32.mrf.mxu1 }
 0x32e   : > { %v5821_v50 = vrot.slane %v5807_v34, %v9405_v60  ;;  %v10120_v25 = vsel %vm9556_vm11, %v7049_v31, %v10107_v4  ;;  %v10125_v39 = vrot.slane %v10936_v46, 2  ;;  %v10127_v7 = vrot.slane %v4965_v23, 7 }
 0x32f   : > { %v5500_v28 = vrot.slane %v10114_v5, 2  ;;  %v5503_v34 = vrot.slane %v5501_v55, 2  ;;  %v10134_v35 = vrot.slane %v5016_v45, 7  ;;  %v4512_v21 = vadd.f32 %v4413_v8, %v11044_v6  ;;  %v11047_v8 = vld [vmem:[#allocation5_spill] sm:$0xff]  ;;  %v11051_v45 = vld [vmem:[#allocation7_spill] sm:$0xff] }
 0x330   : > { %v5822_v62 = vcombine.low %v5814_v49, %v5821_v50  ;;  %v5483_v23 = vsel %vm9556_vm11, %v10066_v40, %v10068_v18  ;;  %v4515_v0 = vadd.f32 %v8032_v26, %v11045_v9  ;;  %v4514_v49 = vadd.f32 %v4423_v48, %v11047_v8  ;;  %v11049_v48 = vld [vmem:[#allocation24_spill] sm:$0xff] }
 0x331   : > { %v5502_v46 = vsel %vm9556_vm11, %v5500_v28, %v5501_v55  ;;  %v5505_v43 = vsel %vm9556_vm11, %v5503_v34, %v10134_v35  ;;  %v4555_v6 = vadd.f32 %v9464_v22, %v4512_v21  ;;  %v5831_v40 = vrot.slane %v9814_v16, %v9405_v60  ;;  %v4433_v55 = vpop.f32.mrf.mxu1  ;;  %v11048_v34 = vld [vmem:[#allocation25_spill] sm:$0xff] }
 0x332   : > { %v10149_v31 = vcombine.low %v5502_v46, %v5505_v43  ;;  %8065 = vmatprep.mubr.msk.f32.mxu0 %vm674_vm2, %v5822_v62  ;;  %v4558_v50 = vadd.f32 %v9464_v22, %v4515_v0  ;;  %v5838_v28 = vrot.slane %v9824_v1, %v9405_v60  ;;  %v5393_v9 = vsel %vm9556_vm11, %v11048_v34, %v9792_v17  ;;  %v11050_v46 = vld [vmem:[#allocation6_spill] sm:$0xff] }
 0x333   : > { %v5841_v21 = vcombine.low %v9857_v3, %v5399_v12  ;;  %v4591_v26 = vmax.f32 %v4555_v6, 0.0  ;;  %v4557_v16 = vadd.f32 %v9464_v22, %v4514_v49  ;;  %v5840_v0 = vcombine.low %v11049_v48, %v5393_v9  ;;  %v10183_v22 = vld [vmem:[%s10917_s4] ss:$0 sm:$0xff] }
 0x334   : > { %11046 = vst [vmem:[#allocation23_spill] sm:$0xff] %v10149_v31  ;;  %v4517_v62 = vadd.f32 %v8035_v27, %v11050_v46  ;;  %v4594_v1 = vmax.f32 %v4558_v50, 0.0  ;;  %v5839_v43 = vcombine.low %v5831_v40, %v5838_v28  ;;  %v4516_v17 = vadd.f32 %v4433_v55, %v11051_v45 }
 0x335   : > { %v5855_v8 = vrot.slane %v5841_v21, %v9405_v60  ;;  %v4983_v34 = vcombine.high %v4591_v26, %v4591_v26  ;;  %v4990_v20 = vrot.slane %v4591_v26, %v9405_v60  ;;  %v4593_v31 = vmax.f32 %v4557_v16, 0.0 }
 0x336   : > { %v5848_v51 = vrot.slane %v5840_v0, %v9405_v60  ;;  %v5034_v3 = vcombine.high %v4594_v1, %v4594_v1  ;;  %v10177_v11 = vrot.slane %v4594_v1, %v9405_v60  ;;  %8066 = vmatmul.mubr.msk.f32.gmra.mxu0 %vm674_vm2, %v5839_v43  ;;  %v4560_v12 = vadd.f32 %v10183_v22, %v4517_v62 }
 0x337   : > { %v4559_v27 = vadd.f32 %v10183_v22, %v4516_v17  ;;  %v4997_v45 = vrot.slane %v4983_v34, %v9405_v60  ;;  %v4998_v6 = vcombine.high %v4990_v20, %v4990_v20  ;;  %v5485_v49 = vrot.slane %v4990_v20, 7 }
 0x338   : > { %v5017_v40 = vcombine.high %v4593_v31, %v4593_v31  ;;  %v10189_v55 = vrot.slane %v5034_v3, %v9405_v60  ;;  %v5049_v50 = vcombine.high %v10177_v11, %v10177_v11  ;;  %v10938_v28 = vrot.slane %v10177_v11, 7 }
 0x339   : > { %v5024_v9 = vrot.slane %v4593_v31, %v9405_v60  ;;  %v4999_v21 = vcombine.high %v4997_v45, %v4997_v45  ;;  %v11052_v26 = vrot.slane %v10068_v18, 2  ;;  %v7050_v48 = vrot.slane %v4998_v6, 9 }
 0x33a   : > { %v5489_v0 = vrot.slane %v4997_v45, 7  ;;  %v5050_v46 = vcombine.high %v10189_v55, %v10189_v55  ;;  %v10205_v62 = vrot.slane %v10938_v28, 2  ;;  %v10207_v1 = vrot.slane %v5049_v50, 7 }
 0x33b   : > { %v5486_v16 = vsel %vm9556_vm11, %v11052_v26, %v5485_v49  ;;  %v10215_v43 = vrot.slane %v4999_v21, 7  ;;  %v10224_v45 = vrot.slane %v5017_v40, %v9405_v60  ;;  %v5032_v50 = vcombine.high %v5024_v9, %v5024_v9 }
 0x33c   : > { %v10199_v20 = vcombine.low %v5483_v23, %v5486_v16  ;;  %11053 = vst [vmem:[#allocation17_spill] sm:$0xff] %v10205_v62  ;;  %11054 = vst [vmem:[#allocation20_spill] sm:$0xff] %v10207_v1  ;;  %v10211_v31 = vsel %vm9556_vm11, %v7050_v48, %v5489_v0  ;;  %v10213_v18 = vrot.slane %v5489_v0, 2  ;;  %v10939_v23 = vrot.slane %v10189_v55, 7 }
 0x33d   : > { %v5526_v3 = vrot.slane %v5050_v46, 7  ;;  %v5507_v21 = vrot.slane %v5024_v9, 7  ;;  %v5033_v16 = vcombine.high %v10224_v45, %v10224_v45  ;;  %v5856_v0 = vcombine.low %v5848_v51, %v5855_v8 }
 0x33e   : > { %v5525_v49 = vrot.slane %v10939_v23, 2  ;;  %v11055_v17 = vrot.slane %v10134_v35, 2  ;;  %v5510_v34 = vrot.slane %v5032_v50, 7  ;;  %v4596_v28 = vmax.f32 %v4560_v12, 0.0  ;;  %v8038_v50 = vpop.f32.mrf.mxu1 }
 0x33f   : > { %v5528_v26 = vrot.slane %v5526_v3, 2  ;;  %v5509_v46 = vrot.slane %v5507_v21, 2  ;;  %v10236_v6 = vrot.slane %v5033_v16, 7  ;;  %8068 = vmatprep.mubr.msk.f32.mxu0 %vm674_vm2, %v5856_v0  ;;  %v4595_v9 = vmax.f32 %v4559_v27, 0.0 }
 0x340   : > { %v5508_v40 = vsel %vm9556_vm11, %v11055_v17, %v5507_v21  ;;  %v5527_v23 = vsel %vm9556_vm11, %v5525_v49, %v5526_v3  ;;  %v11056_v8 = vsel %vm9556_vm11, %v9826_v10, %v9828_v61  ;;  %v5068_v17 = vcombine.high %v4596_v28, %v4596_v28  ;;  %v4443_v3 = vpop.f32.mrf.mxu1 }
 0x341   : > { %v5858_v35 = vcombine.low %v9891_v2, %v11056_v8  ;;  %v5511_v51 = vsel %vm9556_vm11, %v5509_v46, %v5510_v34  ;;  %v10250_v12 = vrot.slane %v4596_v28, %v9405_v60  ;;  %v5865_v27 = vrot.slane %v9893_v41, %v9405_v60  ;;  %v11058_v46 = vld [vmem:[#allocation8_spill] sm:$0xff] }
 0x342   : > { %v10255_v49 = vcombine.low %v5508_v40, %v5511_v51  ;;  %v5051_v21 = vcombine.high %v4595_v9, %v4595_v9  ;;  %v5058_v10 = vrot.slane %v4595_v9, %v9405_v60  ;;  %v10259_v61 = vrot.slane %v5068_v17, %v9405_v60 }
 0x343   : > { %11057 = vst [vmem:[#allocation22_spill] sm:$0xff] %v10250_v12  ;;  %v5083_v2 = vcombine.high %v10250_v12, %v10250_v12  ;;  %v10940_v28 = vrot.slane %v10250_v12, 7  ;;  %v5872_v34 = vrot.slane %v5858_v35, %v9405_v60  ;;  %v4519_v40 = vadd.f32 %v8038_v50, %v11058_v46 }
 0x344   : > { %v5065_v41 = vrot.slane %v5051_v21, %v9405_v60  ;;  %v5066_v16 = vcombine.high %v5058_v10, %v5058_v10  ;;  %v5529_v0 = vrot.slane %v5058_v10, 7  ;;  %v5084_v8 = vcombine.high %v10259_v61, %v10259_v61 }
 0x345   : > { %v10271_v9 = vrot.slane %v10940_v28, 2  ;;  %v10273_v51 = vrot.slane %v5083_v2, 7  ;;  %v10946_v17 = vrot.slane %v10259_v61, 7  ;;  %v5873_v50 = vcombine.low %v5865_v27, %v5872_v34  ;;  %v11065_v27 = vld [vmem:[#allocation9_spill] sm:$0xff] }
 0x346   : > { %v5067_v48 = vcombine.high %v5065_v41, %v5065_v41  ;;  %v5530_v35 = vsel %vm9556_vm11, %v5528_v26, %v5529_v0  ;;  %v5531_v21 = vrot.slane %v5529_v0, 2  ;;  %v5532_v10 = vrot.slane %v5066_v16, 7 }
 0x347   : > { %11059 = vst [vmem:[#allocation21_spill] sm:$0xff] %v10271_v9  ;;  %v10285_v2 = vrot.slane %v10946_v17, 2  ;;  %v10287_v28 = vrot.slane %v5084_v8, 7  ;;  %v5535_v26 = vrot.slane %v5065_v41, 7  ;;  %v10294_v1 = vcombine.low %v5527_v23, %v5530_v35  ;;  %v8041_v9 = vpop.f32.mrf.mxu1  ;;  %v11061_v8 = vld [vmem:[#allocation26_spill] sm:$0xff]  ;;  %8069 = vmatmul.mubr.msk.f32.gmra.mxu0 %vm674_vm2, %v5873_v50 }
 0x348   : > { %v5533_v12 = vsel %vm9556_vm11, %v5531_v21, %v5532_v10  ;;  %v5534_v62 = vrot.slane %v5532_v10, 2  ;;  %v10291_v0 = vrot.slane %v5067_v48, 9  ;;  %v4562_v46 = vadd.f32 %v10183_v22, %v4519_v40 }
 0x349   : > { %11060 = vst [vmem:[#allocation19_spill] sm:$0xff] %v10285_v2  ;;  %v5550_v16 = vrot.slane %v10287_v28, 2  ;;  %v11062_v2 = vrot.slane %v11061_v8, 9  ;;  %v11063_v48 = vrot.slane %v9897_v19, 7  ;;  %v11064_v41 = vrot.slane %v9917_v15, 2 }
 0x34a   : > { %v5536_v17 = vsel %vm9556_vm11, %v5534_v62, %v5535_v26  ;;  %v4518_v34 = vadd.f32 %v4443_v3, %v11065_v27  ;;  %v4598_v62 = vmax.f32 %v4562_v46, 0.0  ;;  %v11067_v3 = vld [vmem:[#allocation10_spill] sm:$0xff] }
 0x34b   : > { %v5415_v21 = vsel %vm9556_vm11, %v11062_v2, %v9834_v33  ;;  %v5424_v23 = vsel %vm9556_vm11, %v11064_v41, %v11063_v48  ;;  %v10311_v40 = vcombine.low %v5533_v12, %v5536_v17  ;;  %v11066_v33 = vsel %vm9556_vm11, %v9915_v52, %v9917_v15 }
 0x34c   : > { %v5874_v35 = vcombine.low %v5415_v21, %v9913_v57  ;;  %v5875_v19 = vcombine.low %v11066_v33, %v5424_v23  ;;  %v4561_v10 = vadd.f32 %v10183_v22, %v4518_v34  ;;  %v5899_v2 = vrot.slane %v9967_v36, %v9405_v60 }
 0x34d   : > { %v5906_v12 = vrot.slane %v9925_v38, %v9405_v60  ;;  %v4521_v17 = vadd.f32 %v8041_v9, %v11067_v3  ;;  %v5102_v50 = vcombine.high %v4598_v62, %v4598_v62  ;;  %v5109_v46 = vrot.slane %v4598_v62, %v9405_v60 }
 0x34e   : > { %v5882_v57 = vrot.slane %v5874_v35, %v9405_v60  ;;  %v5889_v26 = vrot.slane %v5875_v19, %v9405_v60  ;;  %v4597_v8 = vmax.f32 %v4561_v10, 0.0  ;;  %v11068_v21 = vrot.slane %v9987_v56, 7  ;;  %v4453_v35 = vpop.f32.mrf.mxu1 }
 0x34f   : > { %v5907_v52 = vcombine.low %v5899_v2, %v5906_v12  ;;  %v4564_v15 = vadd.f32 %v10183_v22, %v4521_v17  ;;  %v11069_v36 = vrot.slane %v10010_v14, 2  ;;  %v10337_v9 = vrot.slane %v5102_v50, %v9405_v60 }
 0x350   : > { %v5117_v48 = vcombine.high %v5109_v46, %v5109_v46  ;;  %v7053_v41 = vrot.slane %v5109_v46, 9  ;;  %v5890_v23 = vcombine.low %v5882_v57, %v5889_v26  ;;  %v5085_v27 = vcombine.high %v4597_v8, %v4597_v8 }
 0x351   : > { %v5446_v38 = vsel %vm9556_vm11, %v11069_v36, %v11068_v21  ;;  %v5092_v34 = vrot.slane %v4597_v8, %v9405_v60  ;;  %v4600_v62 = vmax.f32 %v4564_v15, 0.0  ;;  %v5449_v56 = vsel %vm9556_vm11, %v10036_v59, %v10023_v54 }
 0x352   : > { %v5118_v33 = vcombine.high %v10337_v9, %v10337_v9  ;;  %v10346_v19 = vrot.slane %v5117_v48, 7  ;;  %v5567_v10 = vrot.slane %v10337_v9, 7  ;;  %8071 = vmatprep.mubr.msk.f32.mxu0 %vm674_vm2, %v5890_v23  ;;  %v11070_v2 = vsel %vm9556_vm11, %v10008_v58, %v10010_v14 }
 0x353   : > { %v5908_v12 = vcombine.low %v10006_v63, %v11070_v2  ;;  %v5099_v3 = vrot.slane %v5085_v27, %v9405_v60  ;;  %v5100_v54 = vcombine.high %v5092_v34, %v5092_v34  ;;  %v5551_v59 = vrot.slane %v5092_v34, 7  ;;  %8072 = vmatmul.mubr.msk.f32.gmra.mxu0 %vm674_vm2, %v5907_v52  ;;  %v8044_v52 = vpop.f32.mrf.mxu1 }
 0x354   : > { %v5136_v17 = vcombine.high %v4600_v62, %v4600_v62  ;;  %v10361_v50 = vsel %vm9556_vm11, %v7053_v41, %v10346_v19  ;;  %v10366_v57 = vrot.slane %v5567_v10, 2  ;;  %v10368_v58 = vrot.slane %v5118_v33, 7 }
 0x355   : > { %v5101_v63 = vcombine.high %v5099_v3, %v5099_v3  ;;  %v5552_v14 = vsel %vm9556_vm11, %v5550_v16, %v5551_v59  ;;  %v5553_v26 = vrot.slane %v5551_v59, 2  ;;  %v5554_v8 = vrot.slane %v5100_v54, 7  ;;  %v4463_v46 = vpop.f32.mrf.mxu1 }
 0x356   : > { %v5572_v15 = vrot.slane %v10368_v58, 2  ;;  %v5557_v21 = vrot.slane %v5099_v3, 7  ;;  %v10374_v36 = vrot.slane %v4600_v62, %v9405_v60  ;;  %v5150_v48 = vrot.slane %v5136_v17, %v9405_v60 }
 0x357   : > { %v5555_v41 = vsel %vm9556_vm11, %v5553_v26, %v5554_v8  ;;  %v5556_v23 = vrot.slane %v5554_v8, 2  ;;  %v5560_v27 = vrot.slane %v5101_v63, 7  ;;  %v5909_v34 = vcombine.low %v5446_v38, %v5449_v56 }
 0x358   : > { %v5559_v33 = vrot.slane %v5557_v21, 2  ;;  %v10379_v2 = vcombine.low %v5552_v14, %v5555_v41  ;;  %v5151_v16 = vcombine.high %v10374_v36, %v10374_v36  ;;  %v5152_v54 = vcombine.high %v5150_v48, %v5150_v48  ;;  %v11071_v41 = vld [vmem:[#allocation12_spill] sm:$0xff] }
 0x359   : > { %v5558_v3 = vsel %vm9556_vm11, %v5556_v23, %v5557_v21  ;;  %v5585_v62 = vrot.slane %v10374_v36, 7  ;;  %v5589_v59 = vrot.slane %v5150_v48, 7  ;;  %v5916_v17 = vrot.slane %v5908_v12, %v9405_v60 }
 0x35a   : > { %v5561_v63 = vsel %vm9556_vm11, %v5559_v33, %v5560_v27  ;;  %v7054_v38 = vrot.slane %v5151_v16, 9  ;;  %v10389_v56 = vrot.slane %v5152_v54, 7  ;;  %v5923_v14 = vrot.slane %v5909_v34, %v9405_v60  ;;  %v11073_v54 = vld [vmem:[#allocation11_spill] sm:$0xff] }
 0x35b   : > { %v10392_v26 = vcombine.low %v5558_v3, %v5561_v63  ;;  %v10394_v8 = vrot.slane %v5589_v59, 2  ;;  %v4520_v21 = vadd.f32 %v4453_v35, %v11071_v41  ;;  %v11072_v12 = vsel %vm9556_vm11, %v9996_v30, %v9998_v37  ;;  %v11074_v63 = vld [vmem:[#allocation14_spill] sm:$0xff]  ;;  %v8047_v37 = vpop.f32.mrf.mxu1 }
 0x35c   : > { %v5925_v48 = vcombine.low %v10054_v47, %v11072_v12  ;;  %v10405_v23 = vsel %vm9556_vm11, %v7054_v38, %v5589_v59  ;;  %v5594_v27 = vrot.slane %v10389_v56, 2  ;;  %v5924_v34 = vcombine.low %v5916_v17, %v5923_v14 }
 0x35d   : > { %v5940_v33 = vrot.slane %v10032_v24, %v9405_v60  ;;  %v4563_v16 = vadd.f32 %v10183_v22, %v4520_v21  ;;  %v4523_v3 = vadd.f32 %v8044_v52, %v11073_v54  ;;  %v4522_v30 = vadd.f32 %v4463_v46, %v11074_v63 }
 0x35e   : > { %v5933_v35 = vrot.slane %v5925_v48, %v9405_v60  ;;  %8074 = vmatprep.mubr.msk.f32.mxu0 %vm674_vm2, %v5924_v34  ;;  %v11075_v47 = vrot.slane %v10096_v13, 7  ;;  %v11076_v59 = vrot.slane %v10107_v4, 2  ;;  %v5471_v24 = vsel %vm9556_vm11, %v10125_v39, %v10127_v7  ;;  %v11079_v39 = vld [vmem:[#allocation13_spill] sm:$0xff] }
 0x35f   : > { %v11077_v38 = vrot.slane %v10030_v53, 7  ;;  %v11078_v52 = vrot.slane %v10127_v7, 2  ;;  %v5967_v13 = vrot.slane %v10083_v44, %v9405_v60  ;;  %v4599_v14 = vmax.f32 %v4563_v16, 0.0 }
 0x360   : > { %v5468_v17 = vsel %vm9556_vm11, %v11076_v59, %v11075_v47  ;;  %v5941_v4 = vcombine.low %v5933_v35, %v5940_v33  ;;  %v4566_v41 = vadd.f32 %v10183_v22, %v4523_v3  ;;  %v4565_v21 = vadd.f32 %v10183_v22, %v4522_v30 }
 0x361   : > { %v5474_v46 = vsel %vm9556_vm11, %v11078_v52, %v11077_v38  ;;  %v5942_v12 = vcombine.low %v10120_v25, %v5468_v17  ;;  %v5974_v53 = vrot.slane %v10199_v20, %v9405_v60  ;;  %v4525_v7 = vadd.f32 %v8047_v37, %v11079_v39 }
 0x362   : > { %v5943_v48 = vcombine.low %v5471_v24, %v5474_v46  ;;  %v5119_v34 = vcombine.high %v4599_v14, %v4599_v14  ;;  %v5126_v54 = vrot.slane %v4599_v14, %v9405_v60  ;;  %8075 = vmatmul.mubr.msk.f32.gmra.mxu0 %vm674_vm2, %v5941_v4  ;;  %v4602_v44 = vmax.f32 %v4566_v41, 0.0 }
 0x363   : > { %v4601_v16 = vmax.f32 %v4565_v21, 0.0  ;;  %v5950_v33 = vrot.slane %v5942_v12, %v9405_v60  ;;  %v5975_v3 = vcombine.low %v5967_v13, %v5974_v53  ;;  %v4568_v25 = vadd.f32 %v10183_v22, %v4525_v7 }
 0x364   : > { %v5957_v35 = vrot.slane %v5943_v48, %v9405_v60  ;;  %v5133_v63 = vrot.slane %v5119_v34, %v9405_v60  ;;  %v5134_v30 = vcombine.high %v5126_v54, %v5126_v54  ;;  %v5573_v20 = vrot.slane %v5126_v54, 7 }
 0x365   : > { %v5170_v47 = vcombine.high %v4602_v44, %v4602_v44  ;;  %v5177_v37 = vrot.slane %v4602_v44, %v9405_v60  ;;  %v5153_v59 = vcombine.high %v4601_v16, %v4601_v16  ;;  %v5160_v17 = vrot.slane %v4601_v16, %v9405_v60 }
 0x366   : > { %v5958_v24 = vcombine.low %v5950_v33, %v5957_v35  ;;  %v5135_v38 = vcombine.high %v5133_v63, %v5133_v63  ;;  %v10451_v52 = vsel %vm9556_vm11, %v5572_v15, %v5573_v20  ;;  %v5575_v46 = vrot.slane %v5573_v20, 2 }
 0x367   : > { %v5576_v13 = vrot.slane %v5134_v30, 7  ;;  %v5579_v14 = vrot.slane %v5133_v63, 7  ;;  %v10454_v4 = vrot.slane %v5170_v47, %v9405_v60  ;;  %v5185_v41 = vcombine.high %v5177_v37, %v5177_v37 }
 0x368   : > { %v5607_v21 = vrot.slane %v5177_v37, 7  ;;  %8077 = vmatprep.mubr.msk.f32.mxu0 %vm674_vm2, %v5958_v24  ;;  %v5582_v53 = vrot.slane %v5135_v38, 7  ;;  %v5167_v39 = vrot.slane %v5153_v59, %v9405_v60  ;;  %v5168_v35 = vcombine.high %v5160_v17, %v5160_v17  ;;  %v4473_v38 = vpop.f32.mrf.mxu1 }
 0x369   : > { %v5577_v12 = vsel %vm9556_vm11, %v5575_v46, %v5576_v13  ;;  %v5578_v48 = vrot.slane %v5576_v13, 2  ;;  %8078 = vmatmul.mubr.msk.f32.gmra.mxu0 %vm674_vm2, %v5975_v3  ;;  %v5581_v15 = vrot.slane %v5579_v14, 2  ;;  %v5186_v7 = vcombine.high %v10454_v4, %v10454_v4 }
 0x36a   : > { %v10463_v34 = vrot.slane %v5607_v21, 2  ;;  %v10465_v54 = vrot.slane %v5185_v41, 7  ;;  %v5584_v16 = vrot.slane %v5582_v53, 2  ;;  %v5169_v37 = vcombine.high %v5167_v39, %v5167_v39 }
 0x36b   : > { %v5580_v44 = vsel %vm9556_vm11, %v5578_v48, %v5579_v14  ;;  %v5583_v63 = vsel %vm9556_vm11, %v5581_v15, %v5582_v53  ;;  %v10478_v20 = vrot.slane %v5186_v7, 7  ;;  %v5595_v59 = vrot.slane %v5160_v17, 7  ;;  %v11080_v7 = vld [vmem:[#allocation16_spill] sm:$0xff] }
 0x36c   : > { %v10472_v30 = vcombine.low %v5577_v12, %v5580_v44  ;;  %v5586_v47 = vsel %vm9556_vm11, %v5584_v16, %v5585_v62  ;;  %v10484_v24 = vrot.slane %v5168_v35, 7  ;;  %v5601_v14 = vrot.slane %v5167_v39, 7  ;;  %v8050_v35 = vpop.f32.mrf.mxu1 }
 0x36d   : > { %v10486_v46 = vcombine.low %v5583_v63, %v5586_v47  ;;  %v5616_v13 = vrot.slane %v10478_v20, 2  ;;  %v4604_v41 = vmax.f32 %v4568_v25, 0.0  ;;  %v10493_v12 = vsel %vm9556_vm11, %v5594_v27, %v5595_v59 }
 0x36e   : > { %v10495_v36 = vrot.slane %v5595_v59, 2  ;;  %v5600_v62 = vrot.slane %v10484_v24, 2  ;;  %v5604_v17 = vrot.slane %v5169_v37, 7  ;;  %v5603_v48 = vrot.slane %v5601_v14, 2 }
 0x36f   : > { %v5204_v53 = vcombine.high %v4604_v41, %v4604_v41  ;;  %v10499_v15 = vrot.slane %v4604_v41, %v9405_v60  ;;  %v4524_v44 = vadd.f32 %v4473_v38, %v11080_v7  ;;  %v5493_v16 = vsel %vm9556_vm11, %v10213_v18, %v10215_v43 }
 0x370   : > { %v5599_v25 = vsel %vm9556_vm11, %v10495_v36, %v10484_v24  ;;  %v5602_v27 = vsel %vm9556_vm11, %v5600_v62, %v5601_v14  ;;  %v5606_v39 = vrot.slane %v5604_v17, 2  ;;  %v5605_v63 = vsel %vm9556_vm11, %v5603_v48, %v5604_v17 }
 0x371   : > { %v5218_v47 = vrot.slane %v5204_v53, %v9405_v60  ;;  %v5219_v37 = vcombine.high %v10499_v15, %v10499_v15  ;;  %v5629_v59 = vrot.slane %v10499_v15, 7  ;;  %v10522_v14 = vcombine.low %v5602_v27, %v5605_v63 }
 0x372   : > { %v10520_v38 = vsel %vm9556_vm11, %v5606_v39, %v5607_v21  ;;  %v4567_v41 = vadd.f32 %v10183_v22, %v4524_v44  ;;  %v11081_v18 = vrot.slane %v10088_v29, 7  ;;  %v11082_v62 = vrot.slane %v10215_v43, 2  ;;  %v11084_v29 = vld [vmem:[#allocation23_spill] sm:$0xff]  ;;  %v4483_v43 = vpop.f32.mrf.mxu1 }
 0x373   : > { %v5220_v48 = vcombine.high %v5218_v47, %v5218_v47  ;;  %v5631_v53 = vrot.slane %v5629_v59, 2  ;;  %v5632_v7 = vrot.slane %v5219_v37, 7  ;;  %v5635_v33 = vrot.slane %v5218_v47, 7 }
 0x374   : > { %v5496_v17 = vsel %vm9556_vm11, %v11082_v62, %v11081_v18  ;;  %v4603_v15 = vmax.f32 %v4567_v41, 0.0  ;;  %v5976_v3 = vcombine.low %v10211_v31, %v5493_v16  ;;  %v11083_v21 = vsel %vm9556_vm11, %v10112_v42, %v10114_v5  ;;  %v11085_v62 = vld [vmem:[#allocation15_spill] sm:$0xff] }
 0x375   : > { %v5977_v44 = vcombine.low %v5496_v17, %v11083_v21  ;;  %v6001_v27 = vrot.slane %v11084_v29, %v9405_v60  ;;  %v5633_v39 = vsel %vm9556_vm11, %v5631_v53, %v5632_v7  ;;  %v5634_v63 = vrot.slane %v5632_v7, 2  ;;  %v11086_v21 = vld [vmem:[#allocation18_spill] sm:$0xff] }
 0x376   : > { %v7056_v18 = vrot.slane %v5220_v48, 9  ;;  %v6008_v47 = vrot.slane %v10255_v49, %v9405_v60  ;;  %v5187_v37 = vcombine.high %v4603_v15, %v4603_v15  ;;  %v5194_v31 = vrot.slane %v4603_v15, %v9405_v60 }
 0x377   : > { %v5984_v16 = vrot.slane %v5976_v3, %v9405_v60  ;;  %v5991_v42 = vrot.slane %v5977_v44, %v9405_v60  ;;  %v5636_v5 = vsel %vm9556_vm11, %v5634_v63, %v5635_v33  ;;  %v4527_v17 = vadd.f32 %v8050_v35, %v11085_v62 }
 0x378   : > { %v6009_v41 = vcombine.low %v6001_v27, %v6008_v47  ;;  %v4526_v53 = vadd.f32 %v4483_v43, %v11086_v21  ;;  %v10550_v7 = vcombine.low %v5633_v39, %v5636_v5  ;;  %v10553_v48 = vrot.slane %v5187_v37, %v9405_v60 }
 0x379   : > { %v5202_v49 = vcombine.high %v5194_v31, %v5194_v31  ;;  %v5617_v29 = vrot.slane %v5194_v31, 7  ;;  %v5992_v15 = vcombine.low %v5984_v16, %v5991_v42  ;;  %v4570_v3 = vadd.f32 %v10183_v22, %v4527_v17  ;;  %v11091_v17 = vld [vmem:[#allocation20_spill] sm:$0xff] }
 0x37a   : > { %v4569_v44 = vadd.f32 %v10183_v22, %v4526_v53  ;;  %v11087_v33 = vrot.slane %v10224_v45, 9  ;;  %v5203_v27 = vcombine.high %v10553_v48, %v10553_v48  ;;  %v5623_v47 = vrot.slane %v10553_v48, 7 }
 0x37b   : > { %v10566_v43 = vsel %vm9556_vm11, %v5616_v13, %v5617_v29  ;;  %v10568_v39 = vrot.slane %v5617_v29, 2  ;;  %v10570_v63 = vrot.slane %v5202_v49, 7  ;;  %8080 = vmatprep.mubr.msk.f32.mxu0 %vm674_vm2, %v5992_v15  ;;  %v4606_v22 = vmax.f32 %v4570_v3, 0.0 }
 0x37c   : > { %v5515_v35 = vsel %vm9556_vm11, %v11087_v33, %v10236_v6  ;;  %v4605_v45 = vmax.f32 %v4569_v44, 0.0  ;;  %v11088_v37 = vrot.slane %v10177_v11, 7  ;;  %v11089_v31 = vrot.slane %v10236_v6, 2  ;;  %8081 = vmatmul.mubr.msk.f32.gmra.mxu0 %vm674_vm2, %v6009_v41  ;;  %v11093_v41 = vld [vmem:[#allocation17_spill] sm:$0xff] }
 0x37d   : > { %v5622_v42 = vrot.slane %v10570_v63, 2  ;;  %v5626_v5 = vrot.slane %v5203_v27, 7  ;;  %v11090_v62 = vrot.slane %v10189_v55, 7  ;;  %v11092_v21 = vrot.slane %v11091_v17, 2 }
 0x37e   : > { %v5518_v16 = vsel %vm9556_vm11, %v11089_v31, %v11088_v37  ;;  %v5625_v6 = vrot.slane %v5623_v47, 2  ;;  %v5238_v53 = vcombine.high %v4606_v22, %v4606_v22  ;;  %v5245_v49 = vrot.slane %v4606_v22, %v9405_v60 }
 0x37f   : > { %v5524_v11 = vsel %vm9556_vm11, %v11092_v21, %v11090_v62  ;;  %v5221_v29 = vcombine.high %v4605_v45, %v4605_v45  ;;  %v5628_v15 = vrot.slane %v5626_v5, 2  ;;  %v5228_v3 = vrot.slane %v4605_v45, %v9405_v60 }
 0x380   : > { %v6010_v44 = vcombine.low %v5515_v35, %v5518_v16  ;;  %v11094_v55 = vsel %vm9556_vm11, %v11093_v41, %v11091_v17  ;;  %v5627_v27 = vsel %vm9556_vm11, %v5625_v6, %v5626_v5  ;;  %v5252_v37 = vrot.slane %v5238_v53, %v9405_v60 }
 0x381   : > { %v6011_v33 = vcombine.low %v11094_v55, %v5524_v11  ;;  %v5253_v31 = vcombine.high %v5245_v49, %v5245_v49  ;;  %v5651_v62 = vrot.slane %v5245_v49, 7  ;;  %v5630_v22 = vsel %vm9556_vm11, %v5628_v15, %v5629_v59 }
 0x382   : > { %v10607_v21 = vrot.slane %v5221_v29, %v9405_v60  ;;  %v5236_v35 = vcombine.high %v5228_v3, %v5228_v3  ;;  %v5639_v45 = vrot.slane %v5228_v3, 7  ;;  %v10609_v16 = vcombine.low %v5627_v27, %v5630_v22 }
 0x383   : > { %v5254_v13 = vcombine.high %v5252_v37, %v5252_v37  ;;  %v10611_v17 = vrot.slane %v5651_v62, 2  ;;  %v10613_v11 = vrot.slane %v5253_v31, 7  ;;  %v5657_v5 = vrot.slane %v5252_v37, 7 }
 0x384   : > { %v5237_v6 = vcombine.high %v10607_v21, %v10607_v21  ;;  %v10619_v53 = vsel %vm9556_vm11, %v7056_v18, %v5639_v45  ;;  %v10621_v59 = vrot.slane %v5639_v45, 2  ;;  %v10628_v3 = vrot.slane %v5236_v35, 7 }
 0x385   : > { %v5656_v29 = vrot.slane %v10613_v11, 2  ;;  %v5660_v15 = vrot.slane %v5254_v13, 7  ;;  %v5659_v41 = vrot.slane %v5657_v5, 2  ;;  %v5645_v55 = vrot.slane %v10607_v21, 7 }
 0x386   : > { %v10631_v27 = vrot.slane %v5237_v6, 7  ;;  %v6018_v18 = vrot.slane %v6010_v44, %v9405_v60  ;;  %v5643_v31 = vsel %vm9556_vm11, %v10621_v59, %v10628_v3  ;;  %v5644_v22 = vrot.slane %v10628_v3, 2  ;;  %v11095_v59 = vld [vmem:[#allocation22_spill] sm:$0xff] }
 0x387   : > { %v5658_v37 = vsel %vm9556_vm11, %v5656_v29, %v5657_v5  ;;  %v6025_v13 = vrot.slane %v6011_v33, %v9405_v60  ;;  %v5661_v35 = vsel %vm9556_vm11, %v5659_v41, %v5660_v15  ;;  %v5647_v21 = vrot.slane %v5645_v55, 2 }
 0x388   : > { %v5650_v45 = vrot.slane %v10631_v27, 2  ;;  %v6035_v44 = vrot.slane %v10294_v1, %v9405_v60  ;;  %v10647_v6 = vcombine.low %v5658_v37, %v5661_v35  ;;  %v6042_v29 = vrot.slane %v10311_v40, %v9405_v60  ;;  %v11100_v37 = vld [vmem:[#allocation21_spill] sm:$0xff] }
 0x389   : > { %v6026_v5 = vcombine.low %v6018_v18, %v6025_v13  ;;  %v11096_v49 = vrot.slane %v11095_v59, 7  ;;  %v11097_v3 = vrot.slane %v10259_v61, 7  ;;  %v11098_v41 = vrot.slane %v10273_v51, 2  ;;  %v11099_v18 = vld [vmem:[#allocation19_spill] sm:$0xff] }
 0x38a   : > { %v5652_v15 = vsel %vm9556_vm11, %v5650_v45, %v5651_v62  ;;  %v5549_v40 = vsel %vm9556_vm11, %v11099_v18, %v10287_v28  ;;  %v6043_v62 = vcombine.low %v6035_v44, %v6042_v29  ;;  %v6069_v13 = vrot.slane %v10379_v2, %v9405_v60 }
 0x38b   : > { %v5540_v33 = vsel %vm9556_vm11, %v10291_v0, %v11096_v49  ;;  %v5546_v1 = vsel %vm9556_vm11, %v11098_v41, %v11097_v3  ;;  %v11101_v0 = vsel %vm9556_vm11, %v11100_v37, %v10273_v51  ;;  %8083 = vmatprep.mubr.msk.f32.mxu0 %vm674_vm2, %v6026_v5  ;;  %v6076_v35 = vrot.slane %v10392_v26, %v9405_v60 }
 0x38c   : > { %v6044_v49 = vcombine.low %v5540_v33, %v11101_v0  ;;  %v6045_v61 = vcombine.low %v5546_v1, %v5549_v40  ;;  %v11102_v28 = vrot.slane %v10346_v19, 2  ;;  %v5571_v44 = vsel %vm9556_vm11, %v10366_v57, %v10368_v58  ;;  %8084 = vmatmul.mubr.msk.f32.gmra.mxu0 %vm674_vm2, %v6043_v62  ;;  %v8117_v0 = vld [vmem:[%s8223_s12] sm:$0xff] }
 0x38d   : > { %v6103_v2 = vrot.slane %v10472_v30, %v9405_v60  ;;  %v6077_v5 = vcombine.low %v6069_v13, %v6076_v35  ;;  %v6079_v19 = vcombine.low %v5571_v44, %v10451_v52  ;;  %v5593_v57 = vsel %vm9556_vm11, %v10394_v8, %v10389_v56 }
 0x38e   : > { %v6052_v45 = vrot.slane %v6044_v49, %v9405_v60  ;;  %v5568_v51 = vsel %vm9556_vm11, %v11102_v28, %v5567_v10  ;;  %v6059_v26 = vrot.slane %v6045_v61, %v9405_v60  ;;  %v6110_v10 = vrot.slane %v10486_v46, %v9405_v60 }
 0x38f   : > { %v6078_v9 = vcombine.low %v10361_v50, %v5568_v51  ;;  %v6113_v58 = vcombine.low %v10493_v12, %v5599_v25  ;;  %v11103_v50 = vsel %vm9556_vm11, %v10463_v34, %v10465_v54  ;;  %v6093_v29 = vrot.slane %v6079_v19, %v9405_v60 }
 0x390   : > { %v6130_v52 = vcombine.low %v10520_v38, %v11103_v50  ;;  %v6060_v30 = vcombine.low %v6052_v45, %v6059_v26  ;;  %v6112_v56 = vcombine.low %v10405_v23, %v5593_v57  ;;  %v6111_v8 = vcombine.low %v6103_v2, %v6110_v10  ;;  %v8118_v45 = vld [vmem:[%s8223_s12 + $0x18] sm:$0xff]  ;;  %v8119_v2 = vld [vmem:[%s8223_s12 + $0x10] sm:$0xff]  ;;  %v8120_v57 = vld [vmem:[%s8223_s12 + $0x28] sm:$0xff] }
 0x391   : > { %v6086_v46 = vrot.slane %v6078_v9, %v9405_v60  ;;  %v6127_v59 = vrot.slane %v6113_v58, %v9405_v60  ;;  %v6137_v24 = vrot.slane %v10522_v14, %v9405_v60  ;;  %v11104_v36 = vrot.slane %v10454_v4, 9 }
 0x392   : > { %v6144_v12 = vrot.slane %v6130_v52, %v9405_v60  ;;  %8086 = vmatprep.mubr.msk.f32.mxu0 %vm674_vm2, %v6060_v30  ;;  %v6120_v54 = vrot.slane %v6112_v56, %v9405_v60  ;;  %v5624_v23 = vsel %vm9556_vm11, %v5622_v42, %v5623_v47  ;;  %v11105_v4 = vsel %vm9556_vm11, %v10568_v39, %v10570_v63  ;;  %v8121_v30 = vld [vmem:[%s8223_s12 + $0x20] sm:$0xff] }
 0x393   : > { %v6094_v34 = vcombine.low %v6086_v46, %v6093_v29  ;;  %v5615_v25 = vsel %vm9556_vm11, %v11104_v36, %v10478_v20  ;;  %8087 = vmatmul.mubr.msk.f32.gmra.mxu0 %vm674_vm2, %v6077_v5  ;;  %v6147_v33 = vcombine.low %v11105_v4, %v5624_v23  ;;  %v6171_v20 = vrot.slane %v10609_v16, %v9405_v60  ;;  %v8123_v36 = vld [vmem:[%s8223_s12 + $0x30] sm:$0xff] }
 0x394   : > { %v6145_v38 = vcombine.low %v6137_v24, %v6144_v12  ;;  %v6146_v14 = vcombine.low %v5615_v25, %v10566_v43  ;;  %v6128_v48 = vcombine.low %v6120_v54, %v6127_v59  ;;  %v6178_v47 = vrot.slane %v10550_v7, %v9405_v60  ;;  %v8122_v24 = vld [vmem:[%s8223_s12 + $0x38] sm:$0xff] }
 0x395   : > { %8089 = vmatprep.mubr.msk.f32.mxu0 %vm674_vm2, %v6094_v34  ;;  %v5646_v42 = vsel %vm9556_vm11, %v5644_v22, %v5645_v55  ;;  %v5649_v43 = vsel %vm9556_vm11, %v5647_v21, %v10631_v27  ;;  %v6161_v39 = vrot.slane %v6147_v33, %v9405_v60  ;;  %v6180_v63 = vcombine.low %v10619_v53, %v5643_v31  ;;  %v8124_v33 = vld [vmem:[%s8223_s12 + $0x48] sm:$0xff] }
 0x396   : > { %v6154_v3 = vrot.slane %v6146_v14, %v9405_v60  ;;  %v6181_v16 = vcombine.low %v5646_v42, %v5649_v43  ;;  %v6179_v41 = vcombine.low %v6171_v20, %v6178_v47  ;;  %v11106_v7 = vsel %vm9556_vm11, %v10611_v17, %v10613_v11  ;;  %v10773_v11 = vld [vmem:[%s10919_s6] ss:$0 sm:$0xff] }
 0x397   : > { %v6197_v1 = vcombine.low %v5652_v15, %v11106_v7  ;;  %8090 = vmatmul.mubr.msk.f32.gmra.mxu0 %vm674_vm2, %v6111_v8  ;;  %v6188_v22 = vrot.slane %v6180_v63, %v9405_v60  ;;  %v6212_v32 = vrot.slane %v10647_v6, %v9405_v60  ;;  %v8116_v15 = vld [vmem:[%s8223_s12 + $0x8] sm:$0xff]  ;;  %v8125_v42 = vld [vmem:[%s8223_s12 + $0x40] sm:$0xff] }
 0x398   : > { %v6162_v55 = vcombine.low %v6154_v3, %v6161_v39  ;;  %v6195_v27 = vrot.slane %v6181_v16, %v9405_v60  ;;  %8092 = vmatprep.mubr.msk.f32.mxu0 %vm674_vm2, %v6128_v48 }
 0x399   : > { %v6205_v53 = vrot.slane %v6197_v1, %v9405_v60 }
 0x39a   : > { %v6196_v31 = vcombine.low %v6188_v22, %v6195_v27  ;;  %v8127_v22 = vld [vmem:[%s8223_s12 + $0x50] sm:$0xff] }
 0x39b   : > { %v6213_v17 = vcombine.low %v6205_v53, %v6212_v32  ;;  %8093 = vmatmul.mubr.msk.f32.gmra.mxu0 %vm674_vm2, %v6145_v38 }
 0x39c   : > { %8095 = vmatprep.mubr.msk.f32.mxu0 %vm674_vm2, %v6162_v55 }
 0x39f   : > { %8096 = vmatmul.mubr.msk.f32.gmra.mxu0 %vm674_vm2, %v6179_v41  ;;  %v8126_v41 = vld [vmem:[%s8223_s12 + $0x58] sm:$0xff] }
 0x3a0   : > { %8098 = vmatprep.mubr.msk.f32.mxu0 %vm674_vm2, %v6196_v31 }
 0x3a3   : > { %8099 = vmatmul.mubr.msk.f32.gmra.mxu0 %vm674_vm2, %v6213_v17 }
 0x3c8   : > { %v8055_v21 = vpop.f32.mrf.mxu0 }
 0x3c9   : > { %v6353_v60 = vadd.f32 %v8055_v21, %v10773_v11  ;;  %v8128_v21 = vld [vmem:[%s8223_s12 + $0x68] sm:$0xff] }
 0x3ca   : > { %v6347_v6 = vpop.f32.mrf.mxu0 }
 0x3cb   : > { %v6507_v18 = vadd.f32 %v8116_v15, %v6353_v60  ;;  %v6348_v40 = vadd.f32 %v10773_v11, %v6347_v6 }
 0x3cd   : > { %v6539_v37 = vmax.f32 %v6507_v18, 0.0  ;;  %v6506_v49 = vadd.f32 %v8117_v0, %v6348_v40  ;;  %v8129_v18 = vld [vmem:[%s8223_s12 + $0x60] sm:$0xff] }
 0x3cf   : > { %6571 = vst.msk [vmem:[%s10783_s22 + $0x8] sm:$0xff] %vm320_vm1, %v6539_v37  ;;  %v6538_v62 = vmax.f32 %v6506_v49, 0.0 }
 0x3d1   : > { %6570 = vst.msk [vmem:[%s10783_s22] sm:$0xff] %vm320_vm1, %v6538_v62 }
 0x3d3   : > { %v8058_v61 = vpop.f32.mrf.mxu0 }
 0x3d4   : > { %v6363_v13 = vadd.f32 %v8058_v61, %v10773_v11  ;;  %v8130_v61 = vld [vmem:[%s8223_s12 + $0x78] sm:$0xff] }
 0x3d5   : > { %v6357_v35 = vpop.f32.mrf.mxu0 }
 0x3d6   : > { %v6509_v28 = vadd.f32 %v8118_v45, %v6363_v13  ;;  %v6358_v51 = vadd.f32 %v10773_v11, %v6357_v35 }
 0x3d8   : > { %v6541_v44 = vmax.f32 %v6509_v28, 0.0  ;;  %v6508_v26 = vadd.f32 %v8119_v2, %v6358_v51  ;;  %v8131_v28 = vld [vmem:[%s8223_s12 + $0x70] sm:$0xff] }
 0x3da   : > { %6573 = vst.msk [vmem:[%s10783_s22 + $0x18] sm:$0xff] %vm320_vm1, %v6541_v44  ;;  %v6540_v9 = vmax.f32 %v6508_v26, 0.0 }
 0x3dc   : > { %v8061_v5 = vpop.f32.mrf.mxu0  ;;  %6572 = vst.msk [vmem:[%s10783_s22 + $0x10] sm:$0xff] %vm320_vm1, %v6540_v9  ;;  %v8132_v9 = vld [vmem:[%s8223_s12 + $0x88] sm:$0xff] }
 0x3dd   : > { %v6373_v19 = vadd.f32 %v8061_v5, %v10773_v11 }
 0x3de   : > { %v6367_v10 = vpop.f32.mrf.mxu0 }
 0x3df   : > { %v6511_v58 = vadd.f32 %v8120_v57, %v6373_v19  ;;  %v6368_v50 = vadd.f32 %v10773_v11, %v6367_v10 }
 0x3e1   : > { %v6543_v52 = vmax.f32 %v6511_v58, 0.0  ;;  %v6510_v46 = vadd.f32 %v8121_v30, %v6368_v50  ;;  %v8133_v58 = vld [vmem:[%s8223_s12 + $0x80] sm:$0xff] }
 0x3e3   : > { %6575 = vst.msk [vmem:[%s10783_s22 + $0x28] sm:$0xff] %vm320_vm1, %v6543_v52  ;;  %v6542_v29 = vmax.f32 %v6510_v46, 0.0 }
 0x3e5   : > { %6574 = vst.msk [vmem:[%s10783_s22 + $0x20] sm:$0xff] %vm320_vm1, %v6542_v29 }
 0x3eb   : > { %v8064_v56 = vpop.f32.mrf.mxu0 }
 0x3ec   : > { %v6383_v8 = vadd.f32 %v8064_v56, %v10773_v11  ;;  %v8134_v56 = vld [vmem:[%s8223_s12 + $0x98] sm:$0xff] }
 0x3ed   : > { %v6377_v59 = vpop.f32.mrf.mxu0 }
 0x3ee   : > { %v6513_v12 = vadd.f32 %v8122_v24, %v6383_v8  ;;  %v6378_v34 = vadd.f32 %v10773_v11, %v6377_v59 }
 0x3f0   : > { %v6545_v54 = vmax.f32 %v6513_v12, 0.0  ;;  %v6512_v25 = vadd.f32 %v8123_v36, %v6378_v34  ;;  %v8135_v12 = vld [vmem:[%s8223_s12 + $0x90] sm:$0xff] }
 0x3f2   : > { %6577 = vst.msk [vmem:[%s10783_s22 + $0x38] sm:$0xff] %vm320_vm1, %v6545_v54  ;;  %v6544_v23 = vmax.f32 %v6512_v25, 0.0 }
 0x3f4   : > { %6576 = vst.msk [vmem:[%s10783_s22 + $0x30] sm:$0xff] %vm320_vm1, %v6544_v23 }
 0x3f6   : > { %v8067_v38 = vpop.f32.mrf.mxu0 }
 0x3f7   : > { %v6393_v14 = vadd.f32 %v8067_v38, %v10773_v11  ;;  %v8136_v38 = vld [vmem:[%s8223_s12 + $0xa8] sm:$0xff] }
 0x3f8   : > { %v6387_v4 = vpop.f32.mrf.mxu0 }
 0x3f9   : > { %v6515_v20 = vadd.f32 %v8124_v33, %v6393_v14  ;;  %v6388_v48 = vadd.f32 %v10773_v11, %v6387_v4 }
 0x3fb   : > { %v6547_v47 = vmax.f32 %v6515_v20, 0.0  ;;  %v6514_v43 = vadd.f32 %v8125_v42, %v6388_v48  ;;  %v8137_v20 = vld [vmem:[%s8223_s12 + $0xa0] sm:$0xff] }
 0x3fd   : > { %6579 = vst.msk [vmem:[%s10783_s22 + $0x48] sm:$0xff] %vm320_vm1, %v6547_v47  ;;  %v6546_v3 = vmax.f32 %v6514_v43, 0.0 }
 0x3ff   : > { %6578 = vst.msk [vmem:[%s10783_s22 + $0x40] sm:$0xff] %vm320_vm1, %v6546_v3 }
 0x407   : > { %v8070_v39 = vpop.f32.mrf.mxu0 }
 0x408   : > { %v6403_v63 = vadd.f32 %v8070_v39, %v10773_v11  ;;  %v8138_v39 = vld [vmem:[%s8223_s12 + $0xb8] sm:$0xff] }
 0x409   : > { %v6397_v16 = vpop.f32.mrf.mxu0 }
 0x40a   : > { %v6517_v7 = vadd.f32 %v8126_v41, %v6403_v63  ;;  %v6398_v1 = vadd.f32 %v10773_v11, %v6397_v16 }
 0x40c   : > { %v6549_v55 = vmax.f32 %v6517_v7, 0.0  ;;  %v6516_v27 = vadd.f32 %v8127_v22, %v6398_v1  ;;  %v8139_v1 = vld [vmem:[%s8223_s12 + $0xb0] sm:$0xff] }
 0x40e   : > { %6581 = vst.msk [vmem:[%s10783_s22 + $0x58] sm:$0xff] %vm320_vm1, %v6549_v55  ;;  %v6548_v53 = vmax.f32 %v6516_v27, 0.0 }
 0x410   : > { %6580 = vst.msk [vmem:[%s10783_s22 + $0x50] sm:$0xff] %vm320_vm1, %v6548_v53 }
 0x413   : > { %v8073_v32 = vpop.f32.mrf.mxu0 }
 0x414   : > { %v6413_v31 = vadd.f32 %v8073_v32, %v10773_v11  ;;  %v8140_v32 = vld [vmem:[%s8223_s12 + $0xc8] sm:$0xff] }
 0x415   : > { %v6407_v17 = vpop.f32.mrf.mxu0 }
 0x416   : > { %v6519_v60 = vadd.f32 %v8128_v21, %v6413_v31  ;;  %v6408_v6 = vadd.f32 %v10773_v11, %v6407_v17 }
 0x418   : > { %v6551_v15 = vmax.f32 %v6519_v60, 0.0  ;;  %v6518_v40 = vadd.f32 %v8129_v18, %v6408_v6  ;;  %v8141_v6 = vld [vmem:[%s8223_s12 + $0xc0] sm:$0xff] }
 0x41a   : > { %6583 = vst.msk [vmem:[%s10783_s22 + $0x68] sm:$0xff] %vm320_vm1, %v6551_v15  ;;  %v6550_v37 = vmax.f32 %v6518_v40, 0.0 }
 0x41c   : > { %6582 = vst.msk [vmem:[%s10783_s22 + $0x60] sm:$0xff] %vm320_vm1, %v6550_v37 }
 0x422   : > { %v8076_v0 = vpop.f32.mrf.mxu0 }
 0x423   : > { %v6423_v49 = vadd.f32 %v8076_v0, %v10773_v11  ;;  %v8142_v0 = vld [vmem:[%s8223_s12 + $0xd8] sm:$0xff] }
 0x424   : > { %v6417_v62 = vpop.f32.mrf.mxu0 }
 0x425   : > { %v6521_v13 = vadd.f32 %v8130_v61, %v6423_v49  ;;  %v6418_v35 = vadd.f32 %v10773_v11, %v6417_v62 }
 0x427   : > { %v6553_v45 = vmax.f32 %v6521_v13, 0.0  ;;  %v6520_v51 = vadd.f32 %v8131_v28, %v6418_v35  ;;  %v8143_v35 = vld [vmem:[%s8223_s12 + $0xd0] sm:$0xff] }
 0x429   : > { %v8079_v44 = vpop.f32.mrf.mxu0  ;;  %6585 = vst.msk [vmem:[%s10783_s22 + $0x78] sm:$0xff] %vm320_vm1, %v6553_v45  ;;  %v6552_v2 = vmax.f32 %v6520_v51, 0.0 }
 0x42a   : > { %v6433_v26 = vadd.f32 %v8079_v44, %v10773_v11 }
 0x42b   : > { %v6427_v5 = vpop.f32.mrf.mxu0  ;;  %6584 = vst.msk [vmem:[%s10783_s22 + $0x70] sm:$0xff] %vm320_vm1, %v6552_v2  ;;  %v8144_v2 = vld [vmem:[%s8223_s12 + $0xe8] sm:$0xff] }
 0x42c   : > { %v6523_v19 = vadd.f32 %v8132_v9, %v6433_v26  ;;  %v6428_v10 = vadd.f32 %v10773_v11, %v6427_v5 }
 0x42e   : > { %v6555_v57 = vmax.f32 %v6523_v19, 0.0  ;;  %v6522_v50 = vadd.f32 %v8133_v58, %v6428_v10  ;;  %v8145_v10 = vld [vmem:[%s8223_s12 + $0xe0] sm:$0xff] }
 0x430   : > { %6587 = vst.msk [vmem:[%s10783_s22 + $0x88] sm:$0xff] %vm320_vm1, %v6555_v57  ;;  %v6554_v52 = vmax.f32 %v6522_v50, 0.0 }
 0x432   : > { %6586 = vst.msk [vmem:[%s10783_s22 + $0x80] sm:$0xff] %vm320_vm1, %v6554_v52 }
 0x43c   : > { %v8082_v30 = vpop.f32.mrf.mxu0 }
 0x43d   : > { %v6443_v46 = vadd.f32 %v8082_v30, %v10773_v11  ;;  %v8146_v30 = vld [vmem:[%s8223_s12 + $0xf8] sm:$0xff] }
 0x43e   : > { %v6437_v29 = vpop.f32.mrf.mxu0 }
 0x43f   : > { %v6525_v8 = vadd.f32 %v8134_v56, %v6443_v46  ;;  %v6438_v59 = vadd.f32 %v10773_v11, %v6437_v29 }
 0x441   : > { %v6557_v24 = vmax.f32 %v6525_v8, 0.0  ;;  %v6524_v34 = vadd.f32 %v8135_v12, %v6438_v59  ;;  %v8147_v8 = vld [vmem:[%s8223_s12 + $0xf0] sm:$0xff] }
 0x443   : > { %6589 = vst.msk [vmem:[%s10783_s22 + $0x98] sm:$0xff] %vm320_vm1, %v6557_v24  ;;  %v6556_v54 = vmax.f32 %v6524_v34, 0.0 }
 0x445   : > { %6588 = vst.msk [vmem:[%s10783_s22 + $0x90] sm:$0xff] %vm320_vm1, %v6556_v54 }
 0x44c   : > { %v8085_v36 = vpop.f32.mrf.mxu0 }
 0x44d   : > { %v6453_v25 = vadd.f32 %v8085_v36, %v10773_v11 }
 0x44e   : > { %v6447_v23 = vpop.f32.mrf.mxu0 }
 0x44f   : > { %v6527_v14 = vadd.f32 %v8136_v38, %v6453_v25  ;;  %v6448_v4 = vadd.f32 %v10773_v11, %v6447_v23 }
 0x451   : > { %v6559_v33 = vmax.f32 %v6527_v14, 0.0  ;;  %v6526_v48 = vadd.f32 %v8137_v20, %v6448_v4 }
 0x453   : > { %v8088_v47 = vpop.f32.mrf.mxu0  ;;  %6591 = vst.msk [vmem:[%s10783_s22 + $0xa8] sm:$0xff] %vm320_vm1, %v6559_v33  ;;  %v6558_v43 = vmax.f32 %v6526_v48, 0.0 }
 0x454   : > { %v6463_v42 = vadd.f32 %v8088_v47, %v10773_v11 }
 0x455   : > { %v6457_v3 = vpop.f32.mrf.mxu0  ;;  %6590 = vst.msk [vmem:[%s10783_s22 + $0xa0] sm:$0xff] %vm320_vm1, %v6558_v43 }
 0x456   : > { %v6529_v63 = vadd.f32 %v8138_v39, %v6463_v42  ;;  %v6458_v16 = vadd.f32 %v10773_v11, %v6457_v3 }
 0x457   : > { %v8091_v41 = vpop.f32.mrf.mxu0 }
 0x458   : > { %v6561_v7 = vmax.f32 %v6529_v63, 0.0  ;;  %v6528_v55 = vadd.f32 %v8139_v1, %v6458_v16  ;;  %v6473_v22 = vadd.f32 %v8091_v41, %v10773_v11 }
 0x459   : > { %v6467_v27 = vpop.f32.mrf.mxu0 }
 0x45a   : > { %6593 = vst.msk [vmem:[%s10783_s22 + $0xb8] sm:$0xff] %vm320_vm1, %v6561_v7  ;;  %v6560_v53 = vmax.f32 %v6528_v55, 0.0  ;;  %v6531_v31 = vadd.f32 %v8140_v32, %v6473_v22  ;;  %v6468_v17 = vadd.f32 %v10773_v11, %v6467_v27 }
 0x45b   : > { %v8094_v21 = vpop.f32.mrf.mxu0 }
 0x45c   : > { %6592 = vst.msk [vmem:[%s10783_s22 + $0xb0] sm:$0xff] %vm320_vm1, %v6560_v53  ;;  %v6563_v60 = vmax.f32 %v6531_v31, 0.0  ;;  %v6530_v15 = vadd.f32 %v8141_v6, %v6468_v17  ;;  %v6483_v18 = vadd.f32 %v8094_v21, %v10773_v11 }
 0x45d   : > { %v6477_v40 = vpop.f32.mrf.mxu0 }
 0x45e   : > { %6595 = vst.msk [vmem:[%s10783_s22 + $0xc8] sm:$0xff] %vm320_vm1, %v6563_v60  ;;  %v6562_v37 = vmax.f32 %v6530_v15, 0.0  ;;  %v6533_v49 = vadd.f32 %v8142_v0, %v6483_v18  ;;  %v6478_v62 = vadd.f32 %v10773_v11, %v6477_v40 }
 0x45f   : > { %v8097_v61 = vpop.f32.mrf.mxu0 }
 0x460   : > { %6594 = vst.msk [vmem:[%s10783_s22 + $0xc0] sm:$0xff] %vm320_vm1, %v6562_v37  ;;  %v6565_v13 = vmax.f32 %v6533_v49, 0.0  ;;  %v6532_v45 = vadd.f32 %v8143_v35, %v6478_v62  ;;  %v6493_v28 = vadd.f32 %v8097_v61, %v10773_v11 }
 0x461   : > { %v6487_v51 = vpop.f32.mrf.mxu0 }
 0x462   : > { %6597 = vst.msk [vmem:[%s10783_s22 + $0xd8] sm:$0xff] %vm320_vm1, %v6565_v13  ;;  %v6564_v44 = vmax.f32 %v6532_v45, 0.0  ;;  %v6535_v26 = vadd.f32 %v8144_v2, %v6493_v28  ;;  %v6488_v5 = vadd.f32 %v10773_v11, %v6487_v51 }
 0x463   : > { %v8100_v9 = vpop.f32.mrf.mxu0 }
 0x464   : > { %6596 = vst.msk [vmem:[%s10783_s22 + $0xd0] sm:$0xff] %vm320_vm1, %v6564_v44  ;;  %v6567_v19 = vmax.f32 %v6535_v26, 0.0  ;;  %v6534_v57 = vadd.f32 %v8145_v10, %v6488_v5  ;;  %v6503_v58 = vadd.f32 %v8100_v9, %v10773_v11 }
 0x465   : > { %v6497_v50 = vpop.f32.mrf.mxu0 }
 0x466   : > { %6599 = vst.msk [vmem:[%s10783_s22 + $0xe8] sm:$0xff] %vm320_vm1, %v6567_v19  ;;  %v6566_v52 = vmax.f32 %v6534_v57, 0.0  ;;  %v6537_v46 = vadd.f32 %v8146_v30, %v6503_v58  ;;  %v6498_v29 = vadd.f32 %v10773_v11, %v6497_v50 }
 0x468   : > { %6598 = vst.msk [vmem:[%s10783_s22 + $0xe0] sm:$0xff] %vm320_vm1, %v6566_v52  ;;  %v6569_v56 = vmax.f32 %v6537_v46, 0.0  ;;  %v6536_v59 = vadd.f32 %v8147_v8, %v6498_v29 }
 0x46a   : > { %6601 = vst.msk [vmem:[%s10783_s22 + $0xf8] sm:$0xff] %vm320_vm1, %v6569_v56  ;;  %v6568_v24 = vmax.f32 %v6536_v59, 0.0 }
 0x46c   : > { %6600 = vst.msk [vmem:[%s10783_s22 + $0xf0] sm:$0xff] %vm320_vm1, %v6568_v24 }
 0x46d PF: > { %s17_s24 = sadd.s32 1, %s8154_s24  }
 0x46e   : > { %p14_p4 = scmp.ge.s32.totalorder %s17_s24, 4  }
 0x470   :  { %16 = sbr.rel (!%p14_p4) target bundleno = 1 (0x1), region = 86 }

</bundles_post_ra>
